<compile_context>
chip_gen: v5e
topology: v5e:2x2
jax: 0.10.0
libtpu: 0.0.40
codegen_flags: <defaults>
</compile_context>

<pallas_src>
import functools

import jax
import jax.numpy as jnp
import numpy as np
from jax.experimental import pallas as pl
from jax.experimental.pallas import tpu as pltpu


COMPUTE_DTYPE = jnp.bfloat16   # MXU feed dtype (accumulation is always f32)
TILE_M = 1024                  # lane-tile of flattened frames*OH*OW (conv path)
TILE_F = 512                   # lane-tile of frames (head path)
LRELU_SLOPE = 0.01             # torch F.leaky_relu default


# ----------------------------------------------------------------------------
# Pallas kernels
# ----------------------------------------------------------------------------
def _conv_mm_kernel(x_ref, w_ref, b_ref, o_ref, *, slope):
    """o(Cout, TM) = leaky_relu(W(Cout,K) @ patches^T(K,TM) + b(Cout,1))."""
    y = jnp.dot(w_ref[...], x_ref[...], preferred_element_type=jnp.float32)
    y = y + b_ref[...]                       # f32 bias, broadcast over lanes
    y = jnp.where(y > 0, y, slope * y)       # f32 leaky_relu epilogue
    o_ref[...] = y.astype(o_ref.dtype)       # cast only at the store


def conv_mm(patches_t, w_mat, b_col, *, out_dtype, tile_m=TILE_M,
            slope=LRELU_SLOPE):
    """patches_t: (K, M), w_mat: (Cout, K), b_col: (Cout, 1) -> (Cout, M)."""
    k, m = patches_t.shape
    cout, kw_ = w_mat.shape
    assert k == kw_
    tm = min(tile_m, m)                      # full-dim block when M is small
    kernel = functools.partial(_conv_mm_kernel, slope=slope)
    return pl.pallas_call(
        kernel,
        out_shape=jax.ShapeDtypeStruct((cout, m), out_dtype),
        grid=(pl.cdiv(m, tm),),
        in_specs=[
            pl.BlockSpec((k, tm), lambda i: (0, i)),      # patch tile (lane-tiled)
            pl.BlockSpec((cout, k), lambda i: (0, 0)),    # weights, resident
            pl.BlockSpec((cout, 1), lambda i: (0, 0)),    # bias, resident
        ],
        out_specs=pl.BlockSpec((cout, tm), lambda i: (0, i)),
        compiler_params=pltpu.CompilerParams(
            dimension_semantics=("parallel",)),           # megacore sharding
    )(patches_t, w_mat, b_col)


def _head_kernel(x_ref, w1_ref, b1_ref, w2_ref, b2_ref, oi_ref, oj_ref,
                 *, n_i, n_total, tile_f, slope):
    """Fused fc1 + leaky_relu + fc2 + segmented per-trajectory reward sums.

    Tiled over frames; (1,1) outputs are resident f32 accumulators.
    x:(784,TF) bf16, w1:(64,784) bf16, b1:(64,1) f32, w2:(64,1) f32, b2:(1,1) f32.
    """
    t = pl.program_id(0)

    @pl.when(t == 0)
    def _():
        oi_ref[...] = jnp.zeros_like(oi_ref)
        oj_ref[...] = jnp.zeros_like(oj_ref)

    h = jnp.dot(w1_ref[...], x_ref[...], preferred_element_type=jnp.float32)
    h = h + b1_ref[...]
    h = jnp.where(h > 0, h, slope * h)                            # (64, TF) f32
    # fc2 (out_features=1) as a VPU multiply + sublane reduction (f32).
    r = jnp.sum(h * w2_ref[...], axis=0, keepdims=True) + b2_ref[...]  # (1, TF)
    # Global frame index of each column; mask traj-i / traj-j / padding.
    col = t * tile_f + jax.lax.broadcasted_iota(jnp.int32, r.shape, 1)
    mask_i = col < n_i
    mask_j = jnp.logical_and(col >= n_i, col < n_total)
    oi_ref[...] += jnp.sum(jnp.where(mask_i, r, 0.0), axis=1, keepdims=True)
    oj_ref[...] += jnp.sum(jnp.where(mask_j, r, 0.0), axis=1, keepdims=True)


def head(x784_t, w1, b1, w2_col, b2, n_i, n_total, *, tile_f=TILE_F,
         slope=LRELU_SLOPE):
    """x784_t: (784, F) -> ((1,1), (1,1)) cumulative returns for traj i / j."""
    k, f = x784_t.shape
    tf = min(tile_f, f)
    kernel = functools.partial(_head_kernel, n_i=n_i, n_total=n_total,
                               tile_f=tf, slope=slope)
    return pl.pallas_call(
        kernel,
        out_shape=(jax.ShapeDtypeStruct((1, 1), jnp.float32),
                   jax.ShapeDtypeStruct((1, 1), jnp.float32)),
        grid=(pl.cdiv(f, tf),),
        in_specs=[
            pl.BlockSpec((k, tf), lambda t: (0, t)),      # frame tile
            pl.BlockSpec((64, k), lambda t: (0, 0)),      # fc1 weights, resident
            pl.BlockSpec((64, 1), lambda t: (0, 0)),      # fc1 bias
            pl.BlockSpec((64, 1), lambda t: (0, 0)),      # fc2 weights (column)
            pl.BlockSpec((1, 1), lambda t: (0, 0)),       # fc2 bias
        ],
        out_specs=(pl.BlockSpec((1, 1), lambda t: (0, 0)),
                   pl.BlockSpec((1, 1), lambda t: (0, 0))),
        compiler_params=pltpu.CompilerParams(
            dimension_semantics=("arbitrary",)),          # accumulation axis
    )(x784_t, w1, b1, w2_col, b2)


# ----------------------------------------------------------------------------
# XLA glue: transposed im2col on (C, N, H, W) activations
# ----------------------------------------------------------------------------
def _im2col_t(x_cnhw, kh, kw, stride):
    """x: (C, N, H, W) -> patches^T (kh*kw*C, N*OH*OW), K ordered (ky, kx, c)."""
    c, n, h, w = x_cnhw.shape
    oh = (h - kh) // stride + 1
    ow = (w - kw) // stride + 1
    hi = (oh - 1) * stride + 1
    wi = (ow - 1) * stride + 1
    slabs = [x_cnhw[:, :, ky:ky + hi:stride, kx:kx + wi:stride]
             for ky in range(kh) for kx in range(kw)]
    p = jnp.stack(slabs, axis=0)                    # (kh*kw, C, N, OH, OW)
    return p.reshape(kh * kw * c, n * oh * ow), oh, ow


def _conv_lrelu(x_cnhw, w_oikk, b, stride):
    """PyTorch Conv2d(valid, stride) + leaky_relu on (C, N, H, W) activations."""
    o, cin, kh, kw = w_oikk.shape
    n = x_cnhw.shape[1]
    patches_t, oh, ow = _im2col_t(x_cnhw, kh, kw, stride)
    # (O, C, kh, kw) -> (O, kh*kw*C) with K ordered (ky, kx, c) to match patches
    w_mat = jnp.transpose(w_oikk, (0, 2, 3, 1)).reshape(o, kh * kw * cin)
    y = conv_mm(patches_t, w_mat.astype(COMPUTE_DTYPE),
                b.reshape(o, 1).astype(jnp.float32),
                out_dtype=COMPUTE_DTYPE)             # (O, N*OH*OW), lane-dense
    return y.reshape(o, n, oh, ow)


# ----------------------------------------------------------------------------
# Net forward
# ----------------------------------------------------------------------------
def init_params(key):
    ks = jax.random.split(key, 12)
    s = 0.05
    return {
        "c1w": jax.random.normal(ks[0], (16, 4, 7, 7), jnp.float32) * s,
        "c1b": jax.random.normal(ks[1], (16,), jnp.float32) * s,
        "c2w": jax.random.normal(ks[2], (16, 16, 5, 5), jnp.float32) * s,
        "c2b": jax.random.normal(ks[3], (16,), jnp.float32) * s,
        "c3w": jax.random.normal(ks[4], (16, 16, 3, 3), jnp.float32) * s,
        "c3b": jax.random.normal(ks[5], (16,), jnp.float32) * s,
        "c4w": jax.random.normal(ks[6], (16, 16, 3, 3), jnp.float32) * s,
        "c4b": jax.random.normal(ks[7], (16,), jnp.float32) * s,
        "fc1w": jax.random.normal(ks[8], (64, 784), jnp.float32) * s,
        "fc1b": jax.random.normal(ks[9], (64,), jnp.float32) * s,
        "fc2w": jax.random.normal(ks[10], (1, 64), jnp.float32) * s,
        "fc2b": jax.random.normal(ks[11], (1,), jnp.float32) * s,
    }


@jax.jit
def net_forward(params, traj_i, traj_j):
    """traj_*: (Ni/Nj, 84, 84, 4) NHWC -> ((1,1), (1,1)) cumulative returns."""
    n_i = traj_i.shape[0]                      # static at trace time
    traj = jnp.concatenate([traj_i, traj_j], axis=0)             # (F, 84, 84, 4)
    f_total = traj.shape[0]
    # NHWC -> (C, N, H, W), bf16 for MXU feeds and halved patch HBM traffic.
    x = jnp.transpose(traj, (3, 0, 1, 2)).astype(COMPUTE_DTYPE)  # (4, F, 84, 84)

    x = _conv_lrelu(x, params["c1w"], params["c1b"], stride=3)   # (16, F, 26, 26)
    x = _conv_lrelu(x, params["c2w"], params["c2b"], stride=2)   # (16, F, 11, 11)
    x = _conv_lrelu(x, params["c3w"], params["c3b"], stride=1)   # (16, F,  9,  9)
    x = _conv_lrelu(x, params["c4w"], params["c4b"], stride=1)   # (16, F,  7,  7)

    # torch: x.reshape(-1, 784) on NCHW -> per-frame flatten ordered (c, h, w)
    x784 = jnp.transpose(x, (0, 2, 3, 1)).reshape(16 * 7 * 7, f_total)  # (784, F)

    w1 = params["fc1w"].astype(COMPUTE_DTYPE)                # (64, 784), K=(c,h,w)
    b1 = params["fc1b"].reshape(64, 1).astype(jnp.float32)
    w2 = params["fc2w"].reshape(64, 1).astype(jnp.float32)   # (1,64) -> (64,1)
    b2 = params["fc2b"].reshape(1, 1).astype(jnp.float32)

    cum_r_i, cum_r_j = head(x784, w1, b1, w2, b2, n_i, f_total)
    return cum_r_i, cum_r_j                                  # each (1, 1)


# ----------------------------------------------------------------------------
# Pure-JAX reference (same bf16 quantization points, f32 accumulation)
# ----------------------------------------------------------------------------
def _q(a):
    return a.astype(jnp.bfloat16).astype(jnp.float32)


@jax.jit
def ref_forward(params, traj_i, traj_j):
    def conv(x, w, b, stride):
        y = jax.lax.conv_general_dilated(
            x, w, window_strides=(stride, stride), padding="VALID",
            dimension_numbers=("NCHW", "OIHW", "NCHW"))
        y = y + b.reshape(1, -1, 1, 1)
        y = jnp.where(y > 0, y, LRELU_SLOPE * y)
        return _q(y)                                 # emulate bf16 activation store

    traj = jnp.concatenate([traj_i, traj_j], axis=0)
    x = _q(jnp.transpose(traj, (0, 3, 1, 2)))
    x = conv(x, _q(params["c1w"]), params["c1b"], 3)
    x = conv(x, _q(params["c2w"]), params["c2b"], 2)
    x = conv(x, _q(params["c3w"]), params["c3b"], 1)
    x = conv(x, _q(params["c4w"]), params["c4b"], 1)
    f = x.shape[0]
    x784 = x.reshape(f, 784)
    h = x784 @ _q(params["fc1w"]).T + params["fc1b"]
    h = jnp.where(h > 0, h, LRELU_SLOPE * h)
    r = jnp.sum(h * params["fc2w"].reshape(1, 64), axis=1, keepdims=True)
    r = r + params["fc2b"].reshape(1, 1)             # (F, 1)
    n_i = traj_i.shape[0]
    return (jnp.sum(r[:n_i]).reshape(1, 1), jnp.sum(r[n_i:]).reshape(1, 1))


# ----------------------------------------------------------------------------
if __name__ == "__main__":
    key = jax.random.PRNGKey(0)
    kp, ki, kj = jax.random.split(key, 3)
    params = init_params(kp)

    # Small batch; spatial must be 84x84 so fc1's 784-dim flatten is exact.
    traj_i = jax.random.uniform(ki, (3, 84, 84, 4), jnp.float32)
    traj_j = jax.random.uniform(kj, (2, 84, 84, 4), jnp.float32)

    out_i, out_j = net_forward(params, traj_i, traj_j)
    jax.block_until_ready((out_i, out_j))
    assert out_i.shape == (1, 1) and out_j.shape == (1, 1)

    ref_i, ref_j = ref_forward(params, traj_i, traj_j)
    jax.block_until_ready((ref_i, ref_j))
    np.testing.assert_allclose(np.asarray(out_i), np.asarray(ref_i),
                               rtol=2e-2, atol=5e-3)
    np.testing.assert_allclose(np.asarray(out_j), np.asarray(ref_j),
                               rtol=2e-2, atol=5e-3)
    print("KERNEL_OK")
</pallas_src>

<mosaic_0001>
module attributes {stable_mosaic.version = 11 : i64} {
  func.func @_conv_mm_kernel(%arg0: i32, %arg1: memref<196x1024xbf16, #tpu.memory_space<vmem>>, %arg2: memref<16x196xbf16, #tpu.memory_space<vmem>>, %arg3: memref<16x1xf32, #tpu.memory_space<vmem>>, %arg4: memref<16x1024xbf16, #tpu.memory_space<vmem>>) attributes {dimension_semantics = [#tpu.dimension_semantics<parallel>], iteration_bounds = array<i64: 4>, scalar_prefetch = 0 : i64, scratch_operands = 0 : i64, tpu.core_type = #tpu.core_type<tc>, window_params = [{transform_indices = @transform_0, window_bounds = array<i64: 196, 1024>}, {pipeline_mode = #tpu.pipeline_mode<synchronous>, transform_indices = @transform_1, window_bounds = array<i64: 16, 196>}, {pipeline_mode = #tpu.pipeline_mode<synchronous>, transform_indices = @transform_2, window_bounds = array<i64: 16, 1>}, {transform_indices = @transform_3, window_bounds = array<i64: 16, 1024>}]} {
    %c0 = arith.constant 0 : index
    %c0_0 = arith.constant 0 : index
    %0 = vector.load %arg2[%c0, %c0_0] : memref<16x196xbf16, #tpu.memory_space<vmem>>, vector<16x196xbf16>
    %c0_1 = arith.constant 0 : index
    %c0_2 = arith.constant 0 : index
    %1 = vector.load %arg1[%c0_1, %c0_2] : memref<196x1024xbf16, #tpu.memory_space<vmem>>, vector<196x1024xbf16>
    %cst = arith.constant dense<0.000000e+00> : vector<16x1024xf32>
    %2 = tpu.matmul %0, %1, %cst {dimension_numbers = #tpu.dot_dimension_numbers<[1], [0], [0], [1], [0, 0, 1, 1], [], []>} : vector<16x196xbf16>, vector<196x1024xbf16>, vector<16x1024xf32> -> vector<16x1024xf32>
    %c0_3 = arith.constant 0 : index
    %c0_4 = arith.constant 0 : index
    %3 = vector.load %arg3[%c0_3, %c0_4] : memref<16x1xf32, #tpu.memory_space<vmem>>, vector<16x1xf32>
    %4 = vector.broadcast %3 : vector<16x1xf32> to vector<16x1024xf32>
    %5 = arith.addf %2, %4 : vector<16x1024xf32>
    %cst_5 = arith.constant 0.000000e+00 : f32
    %6 = vector.broadcast %cst_5 : f32 to vector<16x1024xf32>
    %7 = arith.cmpf ogt, %5, %6 : vector<16x1024xf32>
    %cst_6 = arith.constant 0.00999999977 : f32
    %8 = vector.broadcast %cst_6 : f32 to vector<16x1024xf32>
    %9 = arith.mulf %8, %5 : vector<16x1024xf32>
    %10 = arith.select %7, %5, %9 : vector<16x1024xi1>, vector<16x1024xf32>
    %11 = arith.truncf %10 : vector<16x1024xf32> to vector<16x1024xbf16>
    %c0_7 = arith.constant 0 : index
    %c0_8 = arith.constant 0 : index
    %12 = vector.load %arg4[%c0_7, %c0_8] : memref<16x1024xbf16, #tpu.memory_space<vmem>>, vector<16x1024xbf16>
    tpu.vector_store %arg4[%c0_7, %c0_8], %11 {strides = array<i32>} : memref<16x1024xbf16, #tpu.memory_space<vmem>>, vector<16x1024xbf16>,
    return
  }
  func.func @transform_0(%arg0: i32) -> (i32, i32) {
    %c0_i32 = arith.constant 0 : i32
    %c0_i32_0 = arith.constant 0 : i32
    return %c0_i32, %arg0 : i32, i32
  }
  func.func @transform_1(%arg0: i32) -> (i32, i32) {
    %c0_i32 = arith.constant 0 : i32
    %c0_i32_0 = arith.constant 0 : i32
    %c0_i32_1 = arith.constant 0 : i32
    return %c0_i32, %c0_i32_0 : i32, i32
  }
  func.func @transform_2(%arg0: i32) -> (i32, i32) {
    %c0_i32 = arith.constant 0 : i32
    %c0_i32_0 = arith.constant 0 : i32
    %c0_i32_1 = arith.constant 0 : i32
    return %c0_i32, %c0_i32_0 : i32, i32
  }
  func.func @transform_3(%arg0: i32) -> (i32, i32) {
    %c0_i32 = arith.constant 0 : i32
    %c0_i32_0 = arith.constant 0 : i32
    return %c0_i32, %arg0 : i32, i32
  }
}

module attributes {stable_mosaic.version = 11 : i64} {
  func.func @_conv_mm_kernel(%arg0: i32, %arg1: memref<400x605xbf16, #tpu.memory_space<vmem>>, %arg2: memref<16x400xbf16, #tpu.memory_space<vmem>>, %arg3: memref<16x1xf32, #tpu.memory_space<vmem>>, %arg4: memref<16x605xbf16, #tpu.memory_space<vmem>>) attributes {dimension_semantics = [#tpu.dimension_semantics<parallel>], iteration_bounds = array<i64: 1>, scalar_prefetch = 0 : i64, scratch_operands = 0 : i64, tpu.core_type = #tpu.core_type<tc>, window_params = [{transform_indices = @transform_0, window_bounds = array<i64: 400, 605>}, {pipeline_mode = #tpu.pipeline_mode<synchronous>, transform_indices = @transform_1, window_bounds = array<i64: 16, 400>}, {pipeline_mode = #tpu.pipeline_mode<synchronous>, transform_indices = @transform_2, window_bounds = array<i64: 16, 1>}, {transform_indices = @transform_3, window_bounds = array<i64: 16, 605>}]} {
    %c0 = arith.constant 0 : index
    %c0_0 = arith.constant 0 : index
    %0 = vector.load %arg2[%c0, %c0_0] : memref<16x400xbf16, #tpu.memory_space<vmem>>, vector<16x400xbf16>
    %c0_1 = arith.constant 0 : index
    %c0_2 = arith.constant 0 : index
    %1 = vector.load %arg1[%c0_1, %c0_2] : memref<400x605xbf16, #tpu.memory_space<vmem>>, vector<400x605xbf16>
    %cst = arith.constant dense<0.000000e+00> : vector<16x605xf32>
    %2 = tpu.matmul %0, %1, %cst {dimension_numbers = #tpu.dot_dimension_numbers<[1], [0], [0], [1], [0, 0, 1, 1], [], []>} : vector<16x400xbf16>, vector<400x605xbf16>, vector<16x605xf32> -> vector<16x605xf32>
    %c0_3 = arith.constant 0 : index
    %c0_4 = arith.constant 0 : index
    %3 = vector.load %arg3[%c0_3, %c0_4] : memref<16x1xf32, #tpu.memory_space<vmem>>, vector<16x1xf32>
    %4 = vector.broadcast %3 : vector<16x1xf32> to vector<16x605xf32>
    %5 = arith.addf %2, %4 : vector<16x605xf32>
    %cst_5 = arith.constant 0.000000e+00 : f32
    %6 = vector.broadcast %cst_5 : f32 to vector<16x605xf32>
    %7 = arith.cmpf ogt, %5, %6 : vector<16x605xf32>
    %cst_6 = arith.constant 0.00999999977 : f32
    %8 = vector.broadcast %cst_6 : f32 to vector<16x605xf32>
    %9 = arith.mulf %8, %5 : vector<16x605xf32>
    %10 = arith.select %7, %5, %9 : vector<16x605xi1>, vector<16x605xf32>
    %11 = arith.truncf %10 : vector<16x605xf32> to vector<16x605xbf16>
    %c0_7 = arith.constant 0 : index
    %c0_8 = arith.constant 0 : index
    %12 = vector.load %arg4[%c0_7, %c0_8] : memref<16x605xbf16, #tpu.memory_space<vmem>>, vector<16x605xbf16>
    tpu.vector_store %arg4[%c0_7, %c0_8], %11 {strides = array<i32>} : memref<16x605xbf16, #tpu.memory_space<vmem>>, vector<16x605xbf16>,
    return
  }
  func.func @transform_0(%arg0: i32) -> (i32, i32) {
    %c0_i32 = arith.constant 0 : i32
    %c0_i32_0 = arith.constant 0 : i32
    return %c0_i32, %arg0 : i32, i32
  }
  func.func @transform_1(%arg0: i32) -> (i32, i32) {
    %c0_i32 = arith.constant 0 : i32
    %c0_i32_0 = arith.constant 0 : i32
    %c0_i32_1 = arith.constant 0 : i32
    return %c0_i32, %c0_i32_0 : i32, i32
  }
  func.func @transform_2(%arg0: i32) -> (i32, i32) {
    %c0_i32 = arith.constant 0 : i32
    %c0_i32_0 = arith.constant 0 : i32
    %c0_i32_1 = arith.constant 0 : i32
    return %c0_i32, %c0_i32_0 : i32, i32
  }
  func.func @transform_3(%arg0: i32) -> (i32, i32) {
    %c0_i32 = arith.constant 0 : i32
    %c0_i32_0 = arith.constant 0 : i32
    return %c0_i32, %arg0 : i32, i32
  }
}

module attributes {stable_mosaic.version = 11 : i64} {
  func.func @_conv_mm_kernel(%arg0: i32, %arg1: memref<144x405xbf16, #tpu.memory_space<vmem>>, %arg2: memref<16x144xbf16, #tpu.memory_space<vmem>>, %arg3: memref<16x1xf32, #tpu.memory_space<vmem>>, %arg4: memref<16x405xbf16, #tpu.memory_space<vmem>>) attributes {dimension_semantics = [#tpu.dimension_semantics<parallel>], iteration_bounds = array<i64: 1>, scalar_prefetch = 0 : i64, scratch_operands = 0 : i64, tpu.core_type = #tpu.core_type<tc>, window_params = [{transform_indices = @transform_0, window_bounds = array<i64: 144, 405>}, {pipeline_mode = #tpu.pipeline_mode<synchronous>, transform_indices = @transform_1, window_bounds = array<i64: 16, 144>}, {pipeline_mode = #tpu.pipeline_mode<synchronous>, transform_indices = @transform_2, window_bounds = array<i64: 16, 1>}, {transform_indices = @transform_3, window_bounds = array<i64: 16, 405>}]} {
    %c0 = arith.constant 0 : index
    %c0_0 = arith.constant 0 : index
    %0 = vector.load %arg2[%c0, %c0_0] : memref<16x144xbf16, #tpu.memory_space<vmem>>, vector<16x144xbf16>
    %c0_1 = arith.constant 0 : index
    %c0_2 = arith.constant 0 : index
    %1 = vector.load %arg1[%c0_1, %c0_2] : memref<144x405xbf16, #tpu.memory_space<vmem>>, vector<144x405xbf16>
    %cst = arith.constant dense<0.000000e+00> : vector<16x405xf32>
    %2 = tpu.matmul %0, %1, %cst {dimension_numbers = #tpu.dot_dimension_numbers<[1], [0], [0], [1], [0, 0, 1, 1], [], []>} : vector<16x144xbf16>, vector<144x405xbf16>, vector<16x405xf32> -> vector<16x405xf32>
    %c0_3 = arith.constant 0 : index
    %c0_4 = arith.constant 0 : index
    %3 = vector.load %arg3[%c0_3, %c0_4] : memref<16x1xf32, #tpu.memory_space<vmem>>, vector<16x1xf32>
    %4 = vector.broadcast %3 : vector<16x1xf32> to vector<16x405xf32>
    %5 = arith.addf %2, %4 : vector<16x405xf32>
    %cst_5 = arith.constant 0.000000e+00 : f32
    %6 = vector.broadcast %cst_5 : f32 to vector<16x405xf32>
    %7 = arith.cmpf ogt, %5, %6 : vector<16x405xf32>
    %cst_6 = arith.constant 0.00999999977 : f32
    %8 = vector.broadcast %cst_6 : f32 to vector<16x405xf32>
    %9 = arith.mulf %8, %5 : vector<16x405xf32>
    %10 = arith.select %7, %5, %9 : vector<16x405xi1>, vector<16x405xf32>
    %11 = arith.truncf %10 : vector<16x405xf32> to vector<16x405xbf16>
    %c0_7 = arith.constant 0 : index
    %c0_8 = arith.constant 0 : index
    %12 = vector.load %arg4[%c0_7, %c0_8] : memref<16x405xbf16, #tpu.memory_space<vmem>>, vector<16x405xbf16>
    tpu.vector_store %arg4[%c0_7, %c0_8], %11 {strides = array<i32>} : memref<16x405xbf16, #tpu.memory_space<vmem>>, vector<16x405xbf16>,
    return
  }
  func.func @transform_0(%arg0: i32) -> (i32, i32) {
    %c0_i32 = arith.constant 0 : i32
    %c0_i32_0 = arith.constant 0 : i32
    return %c0_i32, %arg0 : i32, i32
  }
  func.func @transform_1(%arg0: i32) -> (i32, i32) {
    %c0_i32 = arith.constant 0 : i32
    %c0_i32_0 = arith.constant 0 : i32
    %c0_i32_1 = arith.constant 0 : i32
    return %c0_i32, %c0_i32_0 : i32, i32
  }
  func.func @transform_2(%arg0: i32) -> (i32, i32) {
    %c0_i32 = arith.constant 0 : i32
    %c0_i32_0 = arith.constant 0 : i32
    %c0_i32_1 = arith.constant 0 : i32
    return %c0_i32, %c0_i32_0 : i32, i32
  }
  func.func @transform_3(%arg0: i32) -> (i32, i32) {
    %c0_i32 = arith.constant 0 : i32
    %c0_i32_0 = arith.constant 0 : i32
    return %c0_i32, %arg0 : i32, i32
  }
}

module attributes {stable_mosaic.version = 11 : i64} {
  func.func @_conv_mm_kernel(%arg0: i32, %arg1: memref<144x245xbf16, #tpu.memory_space<vmem>>, %arg2: memref<16x144xbf16, #tpu.memory_space<vmem>>, %arg3: memref<16x1xf32, #tpu.memory_space<vmem>>, %arg4: memref<16x245xbf16, #tpu.memory_space<vmem>>) attributes {dimension_semantics = [#tpu.dimension_semantics<parallel>], iteration_bounds = array<i64: 1>, scalar_prefetch = 0 : i64, scratch_operands = 0 : i64, tpu.core_type = #tpu.core_type<tc>, window_params = [{transform_indices = @transform_0, window_bounds = array<i64: 144, 245>}, {pipeline_mode = #tpu.pipeline_mode<synchronous>, transform_indices = @transform_1, window_bounds = array<i64: 16, 144>}, {pipeline_mode = #tpu.pipeline_mode<synchronous>, transform_indices = @transform_2, window_bounds = array<i64: 16, 1>}, {transform_indices = @transform_3, window_bounds = array<i64: 16, 245>}]} {
    %c0 = arith.constant 0 : index
    %c0_0 = arith.constant 0 : index
    %0 = vector.load %arg2[%c0, %c0_0] : memref<16x144xbf16, #tpu.memory_space<vmem>>, vector<16x144xbf16>
    %c0_1 = arith.constant 0 : index
    %c0_2 = arith.constant 0 : index
    %1 = vector.load %arg1[%c0_1, %c0_2] : memref<144x245xbf16, #tpu.memory_space<vmem>>, vector<144x245xbf16>
    %cst = arith.constant dense<0.000000e+00> : vector<16x245xf32>
    %2 = tpu.matmul %0, %1, %cst {dimension_numbers = #tpu.dot_dimension_numbers<[1], [0], [0], [1], [0, 0, 1, 1], [], []>} : vector<16x144xbf16>, vector<144x245xbf16>, vector<16x245xf32> -> vector<16x245xf32>
    %c0_3 = arith.constant 0 : index
    %c0_4 = arith.constant 0 : index
    %3 = vector.load %arg3[%c0_3, %c0_4] : memref<16x1xf32, #tpu.memory_space<vmem>>, vector<16x1xf32>
    %4 = vector.broadcast %3 : vector<16x1xf32> to vector<16x245xf32>
    %5 = arith.addf %2, %4 : vector<16x245xf32>
    %cst_5 = arith.constant 0.000000e+00 : f32
    %6 = vector.broadcast %cst_5 : f32 to vector<16x245xf32>
    %7 = arith.cmpf ogt, %5, %6 : vector<16x245xf32>
    %cst_6 = arith.constant 0.00999999977 : f32
    %8 = vector.broadcast %cst_6 : f32 to vector<16x245xf32>
    %9 = arith.mulf %8, %5 : vector<16x245xf32>
    %10 = arith.select %7, %5, %9 : vector<16x245xi1>, vector<16x245xf32>
    %11 = arith.truncf %10 : vector<16x245xf32> to vector<16x245xbf16>
    %c0_7 = arith.constant 0 : index
    %c0_8 = arith.constant 0 : index
    %12 = vector.load %arg4[%c0_7, %c0_8] : memref<16x245xbf16, #tpu.memory_space<vmem>>, vector<16x245xbf16>
    tpu.vector_store %arg4[%c0_7, %c0_8], %11 {strides = array<i32>} : memref<16x245xbf16, #tpu.memory_space<vmem>>, vector<16x245xbf16>,
    return
  }
  func.func @transform_0(%arg0: i32) -> (i32, i32) {
    %c0_i32 = arith.constant 0 : i32
    %c0_i32_0 = arith.constant 0 : i32
    return %c0_i32, %arg0 : i32, i32
  }
  func.func @transform_1(%arg0: i32) -> (i32, i32) {
    %c0_i32 = arith.constant 0 : i32
    %c0_i32_0 = arith.constant 0 : i32
    %c0_i32_1 = arith.constant 0 : i32
    return %c0_i32, %c0_i32_0 : i32, i32
  }
  func.func @transform_2(%arg0: i32) -> (i32, i32) {
    %c0_i32 = arith.constant 0 : i32
    %c0_i32_0 = arith.constant 0 : i32
    %c0_i32_1 = arith.constant 0 : i32
    return %c0_i32, %c0_i32_0 : i32, i32
  }
  func.func @transform_3(%arg0: i32) -> (i32, i32) {
    %c0_i32 = arith.constant 0 : i32
    %c0_i32_0 = arith.constant 0 : i32
    return %c0_i32, %arg0 : i32, i32
  }
}

module attributes {stable_mosaic.version = 11 : i64} {
  func.func @_head_kernel(%arg0: i32, %arg1: memref<784x5xbf16, #tpu.memory_space<vmem>>, %arg2: memref<64x784xbf16, #tpu.memory_space<vmem>>, %arg3: memref<64x1xf32, #tpu.memory_space<vmem>>, %arg4: memref<64x1xf32, #tpu.memory_space<vmem>>, %arg5: memref<1x1xf32, #tpu.memory_space<vmem>>, %arg6: memref<1x1xf32, #tpu.memory_space<vmem>>, %arg7: memref<1x1xf32, #tpu.memory_space<vmem>>) attributes {dimension_semantics = [#tpu.dimension_semantics<arbitrary>], iteration_bounds = array<i64: 1>, scalar_prefetch = 0 : i64, scratch_operands = 0 : i64, tpu.core_type = #tpu.core_type<tc>, window_params = [{transform_indices = @transform_0, window_bounds = array<i64: 784, 5>}, {pipeline_mode = #tpu.pipeline_mode<synchronous>, transform_indices = @transform_1, window_bounds = array<i64: 64, 784>}, {pipeline_mode = #tpu.pipeline_mode<synchronous>, transform_indices = @transform_2, window_bounds = array<i64: 64, 1>}, {pipeline_mode = #tpu.pipeline_mode<synchronous>, transform_indices = @transform_3, window_bounds = array<i64: 64, 1>}, {pipeline_mode = #tpu.pipeline_mode<synchronous>, transform_indices = @transform_4, window_bounds = array<i64: 1, 1>}, {pipeline_mode = #tpu.pipeline_mode<synchronous>, transform_indices = @transform_5, window_bounds = array<i64: 1, 1>}, {pipeline_mode = #tpu.pipeline_mode<synchronous>, transform_indices = @transform_6, window_bounds = array<i64: 1, 1>}]} {
    %c0_i32 = arith.constant 0 : i32
    %0 = arith.cmpi eq, %arg0, %c0_i32 : i32
    %1 = arith.extui %0 : i1 to i32
    %c0_i32_0 = arith.constant 0 : i32
    %2 = arith.cmpi ne, %1, %c0_i32_0 : i32
    scf.if %2 {
      %cst_27 = arith.constant 0.000000e+00 : f32
      %47 = vector.broadcast %cst_27 : f32 to vector<1x1xf32>
      %c0_28 = arith.constant 0 : index
      %c0_29 = arith.constant 0 : index
      %48 = vector.load %arg6[%c0_28, %c0_29] : memref<1x1xf32, #tpu.memory_space<vmem>>, vector<1x1xf32>
      tpu.vector_store %arg6[%c0_28, %c0_29], %47 {strides = array<i32>} : memref<1x1xf32, #tpu.memory_space<vmem>>, vector<1x1xf32>,
      %cst_30 = arith.constant 0.000000e+00 : f32
      %49 = vector.broadcast %cst_30 : f32 to vector<1x1xf32>
      %c0_31 = arith.constant 0 : index
      %c0_32 = arith.constant 0 : index
      %50 = vector.load %arg7[%c0_31, %c0_32] : memref<1x1xf32, #tpu.memory_space<vmem>>, vector<1x1xf32>
      tpu.vector_store %arg7[%c0_31, %c0_32], %49 {strides = array<i32>} : memref<1x1xf32, #tpu.memory_space<vmem>>, vector<1x1xf32>,
    } else {
    }
    %c0 = arith.constant 0 : index
    %c0_1 = arith.constant 0 : index
    %3 = vector.load %arg2[%c0, %c0_1] : memref<64x784xbf16, #tpu.memory_space<vmem>>, vector<64x784xbf16>
    %c0_2 = arith.constant 0 : index
    %c0_3 = arith.constant 0 : index
    %4 = vector.load %arg1[%c0_2, %c0_3] : memref<784x5xbf16, #tpu.memory_space<vmem>>, vector<784x5xbf16>
    %cst = arith.constant dense<0.000000e+00> : vector<64x5xf32>
    %5 = tpu.matmul %3, %4, %cst {dimension_numbers = #tpu.dot_dimension_numbers<[1], [0], [0], [1], [0, 0, 1, 1], [], []>} : vector<64x784xbf16>, vector<784x5xbf16>, vector<64x5xf32> -> vector<64x5xf32>
    %c0_4 = arith.constant 0 : index
    %c0_5 = arith.constant 0 : index
    %6 = vector.load %arg3[%c0_4, %c0_5] : memref<64x1xf32, #tpu.memory_space<vmem>>, vector<64x1xf32>
    %7 = vector.broadcast %6 : vector<64x1xf32> to vector<64x5xf32>
    %8 = arith.addf %5, %7 : vector<64x5xf32>
    %cst_6 = arith.constant 0.000000e+00 : f32
    %9 = vector.broadcast %cst_6 : f32 to vector<64x5xf32>
    %10 = arith.cmpf ogt, %8, %9 : vector<64x5xf32>
    %cst_7 = arith.constant 0.00999999977 : f32
    %11 = vector.broadcast %cst_7 : f32 to vector<64x5xf32>
    %12 = arith.mulf %11, %8 : vector<64x5xf32>
    %13 = arith.select %10, %8, %12 : vector<64x5xi1>, vector<64x5xf32>
    %c0_8 = arith.constant 0 : index
    %c0_9 = arith.constant 0 : index
    %14 = vector.load %arg4[%c0_8, %c0_9] : memref<64x1xf32, #tpu.memory_space<vmem>>, vector<64x1xf32>
    %15 = vector.broadcast %14 : vector<64x1xf32> to vector<64x5xf32>
    %16 = arith.mulf %13, %15 : vector<64x5xf32>
    %cst_10 = arith.constant dense<0.000000e+00> : vector<5xf32>
    %17 = vector.multi_reduction <add>, %16, %cst_10 [0] : vector<64x5xf32> to vector<5xf32>
    %18 = vector.shape_cast %17 : vector<5xf32> to vector<1x5xf32>
    %c0_11 = arith.constant 0 : index
    %c0_12 = arith.constant 0 : index
    %19 = vector.load %arg5[%c0_11, %c0_12] : memref<1x1xf32, #tpu.memory_space<vmem>>, vector<1x1xf32>
    %20 = vector.broadcast %19 : vector<1x1xf32> to vector<1x5xf32>
    %21 = arith.addf %18, %20 : vector<1x5xf32>
    %c5_i32 = arith.constant 5 : i32
    %22 = arith.muli %arg0, %c5_i32 : i32
    %23 = tpu.iota {dimensions = array<i32: 1>} : vector<1x5xi32>
    %24 = vector.broadcast %22 : i32 to vector<1x5xi32>
    %25 = arith.addi %24, %23 : vector<1x5xi32>
    %c3_i32 = arith.constant 3 : i32
    %26 = vector.broadcast %c3_i32 : i32 to vector<1x5xi32>
    %27 = arith.cmpi slt, %25, %26 : vector<1x5xi32>
    %c3_i32_13 = arith.constant 3 : i32
    %28 = vector.broadcast %c3_i32_13 : i32 to vector<1x5xi32>
    %29 = arith.cmpi sge, %25, %28 : vector<1x5xi32>
    %c5_i32_14 = arith.constant 5 : i32
    %30 = vector.broadcast %c5_i32_14 : i32 to vector<1x5xi32>
    %31 = arith.cmpi slt, %25, %30 : vector<1x5xi32>
    %32 = arith.andi %29, %31 : vector<1x5xi1>
    %c0_15 = arith.constant 0 : index
    %c0_16 = arith.constant 0 : index
    %33 = vector.load %arg6[%c0_15, %c0_16] : memref<1x1xf32, #tpu.memory_space<vmem>>, vector<1x1xf32>
    %cst_17 = arith.constant 0.000000e+00 : f32
    %34 = vector.broadcast %cst_17 : f32 to vector<1x5xf32>
    %35 = arith.select %27, %21, %34 : vector<1x5xi1>, vector<1x5xf32>
    %cst_18 = arith.constant dense<0.000000e+00> : vector<1xf32>
    %36 = vector.multi_reduction <add>, %35, %cst_18 [1] : vector<1x5xf32> to vector<1xf32>
    %37 = vector.shape_cast %36 : vector<1xf32> to vector<1x1xf32>
    %38 = arith.addf %33, %37 : vector<1x1xf32>
    %c0_19 = arith.constant 0 : index
    %c0_20 = arith.constant 0 : index
    %39 = vector.load %arg6[%c0_19, %c0_20] : memref<1x1xf32, #tpu.memory_space<vmem>>, vector<1x1xf32>
    tpu.vector_store %arg6[%c0_19, %c0_20], %38 {strides = array<i32>} : memref<1x1xf32, #tpu.memory_space<vmem>>, vector<1x1xf32>,
    %c0_21 = arith.constant 0 : index
    %c0_22 = arith.constant 0 : index
    %40 = vector.load %arg7[%c0_21, %c0_22] : memref<1x1xf32, #tpu.memory_space<vmem>>, vector<1x1xf32>
    %cst_23 = arith.constant 0.000000e+00 : f32
    %41 = vector.broadcast %cst_23 : f32 to vector<1x5xf32>
    %42 = arith.select %32, %21, %41 : vector<1x5xi1>, vector<1x5xf32>
    %cst_24 = arith.constant dense<0.000000e+00> : vector<1xf32>
    %43 = vector.multi_reduction <add>, %42, %cst_24 [1] : vector<1x5xf32> to vector<1xf32>
    %44 = vector.shape_cast %43 : vector<1xf32> to vector<1x1xf32>
    %45 = arith.addf %40, %44 : vector<1x1xf32>
    %c0_25 = arith.constant 0 : index
    %c0_26 = arith.constant 0 : index
    %46 = vector.load %arg7[%c0_25, %c0_26] : memref<1x1xf32, #tpu.memory_space<vmem>>, vector<1x1xf32>
    tpu.vector_store %arg7[%c0_25, %c0_26], %45 {strides = array<i32>} : memref<1x1xf32, #tpu.memory_space<vmem>>, vector<1x1xf32>,
    return
  }
  func.func @transform_0(%arg0: i32) -> (i32, i32) {
    %c0_i32 = arith.constant 0 : i32
    %c0_i32_0 = arith.constant 0 : i32
    return %c0_i32, %arg0 : i32, i32
  }
  func.func @transform_1(%arg0: i32) -> (i32, i32) {
    %c0_i32 = arith.constant 0 : i32
    %c0_i32_0 = arith.constant 0 : i32
    %c0_i32_1 = arith.constant 0 : i32
    return %c0_i32, %c0_i32_0 : i32, i32
  }
  func.func @transform_2(%arg0: i32) -> (i32, i32) {
    %c0_i32 = arith.constant 0 : i32
    %c0_i32_0 = arith.constant 0 : i32
    %c0_i32_1 = arith.constant 0 : i32
    return %c0_i32, %c0_i32_0 : i32, i32
  }
  func.func @transform_3(%arg0: i32) -> (i32, i32) {
    %c0_i32 = arith.constant 0 : i32
    %c0_i32_0 = arith.constant 0 : i32
    %c0_i32_1 = arith.constant 0 : i32
    return %c0_i32, %c0_i32_0 : i32, i32
  }
  func.func @transform_4(%arg0: i32) -> (i32, i32) {
    %c0_i32 = arith.constant 0 : i32
    %c0_i32_0 = arith.constant 0 : i32
    %c0_i32_1 = arith.constant 0 : i32
    return %c0_i32, %c0_i32_0 : i32, i32
  }
  func.func @transform_5(%arg0: i32) -> (i32, i32) {
    %c0_i32 = arith.constant 0 : i32
    %c0_i32_0 = arith.constant 0 : i32
    %c0_i32_1 = arith.constant 0 : i32
    return %c0_i32, %c0_i32_0 : i32, i32
  }
  func.func @transform_6(%arg0: i32) -> (i32, i32) {
    %c0_i32 = arith.constant 0 : i32
    %c0_i32_0 = arith.constant 0 : i32
    %c0_i32_1 = arith.constant 0 : i32
    return %c0_i32, %c0_i32_0 : i32, i32
  }
}

</mosaic_0001>

<bundles_post_ra>
// kernel: net_forward.5
= control target key start
LH: loop header
LB: loop body
LE: loop exit
PB: predicated region body
PF: predicated region fallthrough
CT: control target
= control target key end

     0   :  { %s3330_s12 = smov 0   ;;  %s3332_s13 = smov 0   ;;  %s4680_s0 = inlined_call_operand.vmem [shape: bf16[196,3380], index: 0, kind: input, shape index: {}]   ;;  %s4681_s1 = inlined_call_operand.vmem [shape: bf16[16,196], index: 1, kind: input, shape index: {}]   ;;  %s4682_s2 = inlined_call_operand.vmem [shape: f32[16,1], index: 2, kind: input, shape index: {}]   ;;  %s4683_s3 = inlined_call_operand.vmem [shape: bf16[16,3380], index: 3, kind: output, shape index: {}]  }
   0x1   :  { %s3334_s14 = smov 0  }
   0x2 LB: > { %s3346_s15 = sadd.s32 4294967295, %s3175_s14   ;;  %s3349_s16 = sadd.s32 1, %s3175_s14   ;;  %s3175_s14 = sphi %s3334_s14, %s4717_s14   ;;  %s3171_s13 = sphi %s3332_s13, %s4716_s13   ;;  %s3167_s12 = sphi %s3330_s12, %s4715_s12  }
   0x3   : > { %s17_s17 = ssub.s32 %s3175_s14, %s3349_s16  ;;  %s20_s18 = sadd.s32 1, %s3171_s13 }
   0x4   : > { %p18_p0 = scmp.eq.s32.totalorder %s17_s17, 0  ;;  %p27_p1 = scmp.ne.s32.totalorder %s3171_s13, %s3167_s12 }
   0x5   : > { %p28_p2 = scmp.eq.s32.totalorder %s3175_s14, 0  ;;  %p99_p3 = scmp.eq.s32.totalorder %s3346_s15, 3 }
   0x6   : > { %s3359_s19 = scalar_select %p18_p0, %s3171_s13, %s20_s18  }
   0x7   : > { %p29_p4 = por %p28_p2, %p27_p1  ;;  %p3361_p5 = por %p99_p3, %p27_p1 }
   0x8   : > { %p2168_p6 = scmp.ge.s32.totalorder %s3175_s14, 4 }
   0xa   : > { %127 = sbr.rel (%p2168_p6) target bundleno = 289 (0x121), region = 24 }
   0xf   : > { %130 = sbr.rel (!%p29_p4) target bundleno = 289 (0x121), region = 28  ;;  %s132_s21 = sand.u32 (%p29_p4), 1, %s3171_s13  }
  0x10   : > { %s2169_s22 = sshll.u32 (%p29_p4), %s3175_s14, 3  ;;  %s2737_s23 = smul.u32 (%p29_p4), 800, %s132_s21 }
  0x11   : > { %s136_s24 = ssub.s32 (%p29_p4), 27, %s2169_s22  ;;  %s2629_s25 = sshll.u32 (%p29_p4), %s3175_s14, 5 }
  0x12   : > { %p137_p7 = scmp.lt.s32.totalorder (%p29_p4), %s136_s24, 8  ;;  %s3372_s28 = scalar_lea.vmem (%p29_p4), %s4680_s0, %s2629_s25  }
  0x13   : > { %s3376_s4 = scalar_lea.vmem (%p29_p4), [#allocation2], %s2737_s23  }
  0x14   : > { %s4719_s24 = smov (!%p137_p7, %s136_s24), 8 }
  0x15   : > { %s139_s29 = smul.u32 100, %s4719_s24  ;;  %s3374_s30 = sshll.u32 %s4719_s24, 2 }
  0x17   : > { %p2173_p8 = scmp.eq.s32.totalorder %s139_s29, 0 }
  0x18   : > { %p147_p9 = scmp.lt.u32.totalorder (!%p2173_p8), %s3374_s30, 8 }
  0x19   : > { %146 = sbr.rel (%p2173_p8) target bundleno = 289 (0x121), region = 32 }
  0x1e   : > { %150 = sbr.rel (%p147_p9) target bundleno = 256 (0x100), region = 36  ;;  %s3380_s5 = sand.u32 (!%p147_p9), 7, %s3374_s30  }
  0x1f   : > { %p215_p10 = scmp.eq.s32.totalorder (!%p147_p9), %s3380_s5, 0  ;;  %p2174_p11 = scmp.ne.s32.totalorder (!%p147_p9), %s3380_s5, 0 }
  0x23   : > { %218 = sbr.rel (%p2174_p11) target bundleno = 131 (0x83), region = 51  ;;  %s219_s6 = sshrl.u32 (!%p2174_p11), %s3374_s30, 3 }
  0x24   : > { %s3387_s7 = sshrl.u32 (!%p2174_p11), %s219_s6, 1 }
  0x25   : > { %p2175_p12 = scmp.le.s32.totalorder (!%p2174_p11), %s3387_s7, 0 }
  0x28   : > { %2038 = sbr.rel (%p2175_p12) target bundleno = 96 (0x60), region = 229  ;;  %s4685_s8 = smov (!%p2175_p12), %s3376_s4 }
  0x29   : > { %s4686_s9 = smov (!%p2175_p12), %s3372_s28  ;;  %s3396_s10 = smov (!%p2175_p12), 0  }
  0x2a   : > { %s3398_s11 = smov (!%p2175_p12), 0  }
  0x2d LB: >> { %v230_v0 = vld [vmem:[%s3183_s9] sm:$0xff]  ;;  %v232_v1 = vld [vmem:[%s3183_s9 + $0x8] sm:$0xff]  ;;  %s330_s17 = sadd.s32 1, %s3187_s10  ;;  %v236_v3 = vld [vmem:[%s3183_s9 + $0x74] sm:$0xff]  ;;  %s224_s11 = sadd.s32 1, %s3191_s11   ;;  %s3191_s11 = sphi %s3398_s11, %s224_s11   ;;  %s3187_s10 = sphi %s3396_s10, %s4689_s10   ;;  %s3183_s9 = sphi %s4686_s9, %s4688_s9   ;;  %s3179_s8 = sphi %s4685_s8, %s4687_s8  }
  0x2e   : >> { %v234_v2 = vld [vmem:[%s3183_s9 + $0x6c] sm:$0xff]  ;;  %231 = vst [vmem:[%s3179_s8] sm:$0xff] %v230_v0  ;;  %p331_p13 = scmp.ge.s32.totalorder %s330_s17, %s3387_s7  ;;  %v238_v4 = vld [vmem:[%s3183_s9 + $0xd8] sm:$0xff]  ;;  %v240_v5 = vld [vmem:[%s3183_s9 + $0xe0] sm:$0xff]  ;;  %p223_p0 = scmp.ge.s32.totalorder %s224_s11, %s3387_s7 }
  0x2f   : >> { %233 = vst [vmem:[%s3179_s8 + $0x8] sm:$0xff] %v232_v1  ;;  %v242_v6 = vld [vmem:[%s3183_s9 + $0x144] sm:$0xff]  ;;  %v244_v7 = vld [vmem:[%s3183_s9 + $0x14c] sm:$0xff]  ;;  %v248_v9 = vld [vmem:[%s3183_s9 + $0x1b8] sm:$0xff] }
  0x30   : >> { %235 = vst [vmem:[%s3179_s8 + $0x20] sm:$0xff] %v234_v2  ;;  %s4721_s17 = smov (%p331_p13, %s330_s17), 0  ;;  %v246_v8 = vld [vmem:[%s3183_s9 + $0x1b0] sm:$0xff]  ;;  %v250_v10 = vld [vmem:[%s3183_s9 + $0x21c] sm:$0xff]  ;;  %v252_v11 = vld [vmem:[%s3183_s9 + $0x224] sm:$0xff] }
  0x31   : >> { %237 = vst [vmem:[%s3179_s8 + $0x28] sm:$0xff] %v236_v3  ;;  %s2176_s18 = sshll.u32 %s4721_s17, 4  ;;  %v254_v12 = vld [vmem:[%s3183_s9 + $0x288] sm:$0xff]  ;;  %v256_v13 = vld [vmem:[%s3183_s9 + $0x290] sm:$0xff]  ;;  %v260_v15 = vld [vmem:[%s3183_s9 + $0x2fc] sm:$0xff]  ;;  %s4689_s10 = smov %s4721_s17 }
  0x32   : >> { %239 = vst [vmem:[%s3179_s8 + $0x40] sm:$0xff] %v238_v4  ;;  %s3430_s21 = scalar_lea.vmem %s3372_s28, %s2176_s18   ;;  %s3433_s22 = scalar_lea.vmem %s3376_s4, %s2176_s18 [#allocation2]   ;;  %v258_v14 = vld [vmem:[%s3183_s9 + $0x2f4] sm:$0xff]  ;;  %v262_v16 = vld [vmem:[%s3183_s9 + $0x360] sm:$0xff]  ;;  %v264_v17 = vld [vmem:[%s3183_s9 + $0x368] sm:$0xff] }
  0x33   : >> { %241 = vst [vmem:[%s3179_s8 + $0x48] sm:$0xff] %v240_v5  ;;  %v266_v18 = vld [vmem:[%s3183_s9 + $0x3cc] sm:$0xff]  ;;  %v268_v19 = vld [vmem:[%s3183_s9 + $0x3d4] sm:$0xff]  ;;  %v272_v21 = vld [vmem:[%s3183_s9 + $0x440] sm:$0xff] }
  0x34   : >> { %243 = vst [vmem:[%s3179_s8 + $0x60] sm:$0xff] %v242_v6  ;;  %v270_v20 = vld [vmem:[%s3183_s9 + $0x438] sm:$0xff]  ;;  %v274_v22 = vld [vmem:[%s3183_s9 + $0x4a4] sm:$0xff]  ;;  %v276_v23 = vld [vmem:[%s3183_s9 + $0x4ac] sm:$0xff] }
  0x35   : >> { %245 = vst [vmem:[%s3179_s8 + $0x68] sm:$0xff] %v244_v7  ;;  %v278_v24 = vld [vmem:[%s3183_s9 + $0x510] sm:$0xff]  ;;  %v280_v25 = vld [vmem:[%s3183_s9 + $0x518] sm:$0xff]  ;;  %v284_v27 = vld [vmem:[%s3183_s9 + $0x584] sm:$0xff] }
  0x36   : >> { %247 = vst [vmem:[%s3179_s8 + $0x80] sm:$0xff] %v246_v8  ;;  %v282_v26 = vld [vmem:[%s3183_s9 + $0x57c] sm:$0xff]  ;;  %v286_v28 = vld [vmem:[%s3183_s9 + $0x5e8] sm:$0xff]  ;;  %v288_v29 = vld [vmem:[%s3183_s9 + $0x5f0] sm:$0xff] }
  0x37   : >> { %249 = vst [vmem:[%s3179_s8 + $0x88] sm:$0xff] %v248_v9  ;;  %v290_v30 = vld [vmem:[%s3183_s9 + $0x654] sm:$0xff]  ;;  %v292_v31 = vld [vmem:[%s3183_s9 + $0x65c] sm:$0xff]  ;;  %v296_v33 = vld [vmem:[%s3183_s9 + $0x6c8] sm:$0xff] }
  0x38   : >> { %251 = vst [vmem:[%s3179_s8 + $0xa0] sm:$0xff] %v250_v10  ;;  %v294_v32 = vld [vmem:[%s3183_s9 + $0x6c0] sm:$0xff]  ;;  %v298_v34 = vld [vmem:[%s3183_s9 + $0x72c] sm:$0xff]  ;;  %v300_v35 = vld [vmem:[%s3183_s9 + $0x734] sm:$0xff] }
  0x39   : >> { %253 = vst [vmem:[%s3179_s8 + $0xa8] sm:$0xff] %v252_v11  ;;  %v302_v36 = vld [vmem:[%s3183_s9 + $0x798] sm:$0xff]  ;;  %v304_v37 = vld [vmem:[%s3183_s9 + $0x7a0] sm:$0xff]  ;;  %v308_v39 = vld [vmem:[%s3183_s9 + $0x80c] sm:$0xff] }
  0x3a   : >> { %255 = vst [vmem:[%s3179_s8 + $0xc0] sm:$0xff] %v254_v12  ;;  %v306_v38 = vld [vmem:[%s3183_s9 + $0x804] sm:$0xff]  ;;  %v310_v40 = vld [vmem:[%s3183_s9 + $0x870] sm:$0xff]  ;;  %v312_v41 = vld [vmem:[%s3183_s9 + $0x878] sm:$0xff] }
  0x3b   : >> { %257 = vst [vmem:[%s3179_s8 + $0xc8] sm:$0xff] %v256_v13  ;;  %v314_v42 = vld [vmem:[%s3183_s9 + $0x8dc] sm:$0xff]  ;;  %v316_v43 = vld [vmem:[%s3183_s9 + $0x8e4] sm:$0xff]  ;;  %v320_v45 = vld [vmem:[%s3183_s9 + $0x950] sm:$0xff] }
  0x3c   : >> { %259 = vst [vmem:[%s3179_s8 + $0xe0] sm:$0xff] %v258_v14  ;;  %v318_v44 = vld [vmem:[%s3183_s9 + $0x948] sm:$0xff]  ;;  %v322_v46 = vld [vmem:[%s3183_s9 + $0x9b4] sm:$0xff]  ;;  %v324_v47 = vld [vmem:[%s3183_s9 + $0x9bc] sm:$0xff] }
  0x3d   : >> { %261 = vst [vmem:[%s3179_s8 + $0xe8] sm:$0xff] %v260_v15  ;;  %v326_v48 = vld [vmem:[%s3183_s9 + $0xa20] sm:$0xff]  ;;  %v328_v49 = vld [vmem:[%s3183_s9 + $0xa28] sm:$0xff]  ;;  %s4688_s9 = smov %s3430_s21 }
  0x3e   : >> { %263 = vst [vmem:[%s3179_s8 + $0x100] sm:$0xff] %v262_v16 }
  0x3f   : >> { %265 = vst [vmem:[%s3179_s8 + $0x108] sm:$0xff] %v264_v17 }
  0x40   : >> { %267 = vst [vmem:[%s3179_s8 + $0x120] sm:$0xff] %v266_v18 }
  0x41   : >> { %269 = vst [vmem:[%s3179_s8 + $0x128] sm:$0xff] %v268_v19 }
  0x42   : >> { %271 = vst [vmem:[%s3179_s8 + $0x140] sm:$0xff] %v270_v20 }
  0x43   : >> { %273 = vst [vmem:[%s3179_s8 + $0x148] sm:$0xff] %v272_v21 }
  0x44   : >> { %275 = vst [vmem:[%s3179_s8 + $0x160] sm:$0xff] %v274_v22 }
  0x45   : >> { %277 = vst [vmem:[%s3179_s8 + $0x168] sm:$0xff] %v276_v23 }
  0x46   : >> { %279 = vst [vmem:[%s3179_s8 + $0x180] sm:$0xff] %v278_v24 }
  0x47   : >> { %281 = vst [vmem:[%s3179_s8 + $0x188] sm:$0xff] %v280_v25 }
  0x48   : >> { %283 = vst [vmem:[%s3179_s8 + $0x1a0] sm:$0xff] %v282_v26 }
  0x49   : >> { %285 = vst [vmem:[%s3179_s8 + $0x1a8] sm:$0xff] %v284_v27 }
  0x4a   : >> { %287 = vst [vmem:[%s3179_s8 + $0x1c0] sm:$0xff] %v286_v28 }
  0x4b   : >> { %289 = vst [vmem:[%s3179_s8 + $0x1c8] sm:$0xff] %v288_v29 }
  0x4c   : >> { %291 = vst [vmem:[%s3179_s8 + $0x1e0] sm:$0xff] %v290_v30 }
  0x4d   : >> { %293 = vst [vmem:[%s3179_s8 + $0x1e8] sm:$0xff] %v292_v31 }
  0x4e   : >> { %295 = vst [vmem:[%s3179_s8 + $0x200] sm:$0xff] %v294_v32 }
  0x4f   : >> { %297 = vst [vmem:[%s3179_s8 + $0x208] sm:$0xff] %v296_v33 }
  0x50   : >> { %299 = vst [vmem:[%s3179_s8 + $0x220] sm:$0xff] %v298_v34 }
  0x51   : >> { %301 = vst [vmem:[%s3179_s8 + $0x228] sm:$0xff] %v300_v35 }
  0x52   : >> { %303 = vst [vmem:[%s3179_s8 + $0x240] sm:$0xff] %v302_v36 }
  0x53   : >> { %305 = vst [vmem:[%s3179_s8 + $0x248] sm:$0xff] %v304_v37 }
  0x54   : >> { %307 = vst [vmem:[%s3179_s8 + $0x260] sm:$0xff] %v306_v38 }
  0x55   : >> { %309 = vst [vmem:[%s3179_s8 + $0x268] sm:$0xff] %v308_v39 }
  0x56   : >> { %311 = vst [vmem:[%s3179_s8 + $0x280] sm:$0xff] %v310_v40 }
  0x57   : >> { %313 = vst [vmem:[%s3179_s8 + $0x288] sm:$0xff] %v312_v41 }
  0x58   : >> { %315 = vst [vmem:[%s3179_s8 + $0x2a0] sm:$0xff] %v314_v42 }
  0x59   : >> { %317 = vst [vmem:[%s3179_s8 + $0x2a8] sm:$0xff] %v316_v43 }
  0x5a   : >> { %319 = vst [vmem:[%s3179_s8 + $0x2c0] sm:$0xff] %v318_v44 }
  0x5b   : >> { %321 = vst [vmem:[%s3179_s8 + $0x2c8] sm:$0xff] %v320_v45  ;;  %226 = sbr.rel (!%p223_p0) target bundleno = 45 (0x2d), region = 235 }
  0x5c   : >> { %323 = vst [vmem:[%s3179_s8 + $0x2e0] sm:$0xff] %v322_v46 }
  0x5d   : >> { %325 = vst [vmem:[%s3179_s8 + $0x2e8] sm:$0xff] %v324_v47 }
  0x5e   : >> { %327 = vst [vmem:[%s3179_s8 + $0x300] sm:$0xff] %v326_v48 }
  0x5f   : >> { %329 = vst [vmem:[%s3179_s8 + $0x308] sm:$0xff] %v328_v49  ;;  %s4687_s8 = smov %s3433_s22 }
  0x60 PF: > { %s3535_s23 = sand.u32 1, %s219_s6   ;;  %s2630_s24 = sshll.u32 %s3387_s7, 4 }
  0x61   : > { %s3539_s25 = scalar_lea.vmem %s3372_s28, %s2630_s24   ;;  %s3542_s26 = scalar_lea.vmem %s3376_s4, %s2630_s24 [#allocation2]  }
  0x62   : > { %p2181_p1 = scmp.le.s32.totalorder %s3535_s23, 0 }
  0x63   : > { %s4690_s27 = smov (!%p2181_p1), %s3542_s26  ;;  %s4691_s29 = smov (!%p2181_p1), %s3539_s25 }
  0x64   : > { %2052 = sbr.rel (%p2181_p1) target bundleno = 131 (0x83), region = 240  ;;  %s3551_s8 = smov (!%p2181_p1), 0  }
  0x65   : > { %s3553_s9 = smov (!%p2181_p1), 0  }
  0x69 LB: >> { %v353_v50 = vld [vmem:[%s3199_s29] sm:$0xff]  ;;  %v355_v51 = vld [vmem:[%s3199_s29 + $0x6c] sm:$0xff]  ;;  %v357_v52 = vld [vmem:[%s3199_s29 + $0xd8] sm:$0xff]  ;;  %s403_s6 = sadd.s32 1, %s3203_s8  ;;  %s347_s9 = sadd.s32 1, %s3207_s9   ;;  %s3207_s9 = sphi %s3553_s9, %s347_s9   ;;  %s3203_s8 = sphi %s3551_s8, %s4694_s8   ;;  %s3199_s29 = sphi %s4691_s29, %s4693_s29   ;;  %s3195_s27 = sphi %s4690_s27, %s4692_s27  }
  0x6a   : >> { %354 = vst [vmem:[%s3195_s27] sm:$0xff] %v353_v50  ;;  %v359_v53 = vld [vmem:[%s3199_s29 + $0x144] sm:$0xff]  ;;  %p404_p2 = scmp.ge.s32.totalorder %s403_s6, %s3535_s23  ;;  %v361_v54 = vld [vmem:[%s3199_s29 + $0x1b0] sm:$0xff]  ;;  %v363_v55 = vld [vmem:[%s3199_s29 + $0x21c] sm:$0xff]  ;;  %p346_p3 = scmp.ge.s32.totalorder %s347_s9, %s3535_s23 }
  0x6b   : >> { %356 = vst [vmem:[%s3195_s27 + $0x20] sm:$0xff] %v355_v51  ;;  %v365_v56 = vld [vmem:[%s3199_s29 + $0x288] sm:$0xff]  ;;  %v367_v57 = vld [vmem:[%s3199_s29 + $0x2f4] sm:$0xff]  ;;  %v369_v58 = vld [vmem:[%s3199_s29 + $0x360] sm:$0xff] }
  0x6c   : >> { %358 = vst [vmem:[%s3195_s27 + $0x40] sm:$0xff] %v357_v52  ;;  %s4723_s6 = smov (%p404_p2, %s403_s6), 0  ;;  %v371_v59 = vld [vmem:[%s3199_s29 + $0x3cc] sm:$0xff]  ;;  %v373_v60 = vld [vmem:[%s3199_s29 + $0x438] sm:$0xff]  ;;  %v375_v61 = vld [vmem:[%s3199_s29 + $0x4a4] sm:$0xff] }
  0x6d   : >> { %360 = vst [vmem:[%s3195_s27 + $0x60] sm:$0xff] %v359_v53  ;;  %s2182_s7 = sshll.u32 %s4723_s6, 3  ;;  %v377_v62 = vld [vmem:[%s3199_s29 + $0x510] sm:$0xff]  ;;  %v379_v63 = vld [vmem:[%s3199_s29 + $0x57c] sm:$0xff]  ;;  %v381_v0 = vld [vmem:[%s3199_s29 + $0x5e8] sm:$0xff]  ;;  %s4694_s8 = smov %s4723_s6 }
  0x6e   : >> { %362 = vst [vmem:[%s3195_s27 + $0x80] sm:$0xff] %v361_v54  ;;  %s3585_s10 = scalar_lea.vmem %s3539_s25, %s2182_s7   ;;  %s3588_s11 = scalar_lea.vmem %s3542_s26, %s2182_s7 [#allocation2]   ;;  %v383_v1 = vld [vmem:[%s3199_s29 + $0x654] sm:$0xff]  ;;  %v385_v2 = vld [vmem:[%s3199_s29 + $0x6c0] sm:$0xff]  ;;  %v387_v3 = vld [vmem:[%s3199_s29 + $0x72c] sm:$0xff] }
  0x6f   : >> { %364 = vst [vmem:[%s3195_s27 + $0xa0] sm:$0xff] %v363_v55  ;;  %v389_v4 = vld [vmem:[%s3199_s29 + $0x798] sm:$0xff]  ;;  %v391_v5 = vld [vmem:[%s3199_s29 + $0x804] sm:$0xff]  ;;  %v393_v6 = vld [vmem:[%s3199_s29 + $0x870] sm:$0xff] }
  0x70   : >> { %366 = vst [vmem:[%s3195_s27 + $0xc0] sm:$0xff] %v365_v56  ;;  %v395_v7 = vld [vmem:[%s3199_s29 + $0x8dc] sm:$0xff]  ;;  %v397_v8 = vld [vmem:[%s3199_s29 + $0x948] sm:$0xff]  ;;  %v399_v9 = vld [vmem:[%s3199_s29 + $0x9b4] sm:$0xff] }
  0x71   : >> { %368 = vst [vmem:[%s3195_s27 + $0xe0] sm:$0xff] %v367_v57  ;;  %v401_v10 = vld [vmem:[%s3199_s29 + $0xa20] sm:$0xff]  ;;  %s4693_s29 = smov %s3585_s10 }
  0x72   : >> { %370 = vst [vmem:[%s3195_s27 + $0x100] sm:$0xff] %v369_v58 }
  0x73   : >> { %372 = vst [vmem:[%s3195_s27 + $0x120] sm:$0xff] %v371_v59 }
  0x74   : >> { %374 = vst [vmem:[%s3195_s27 + $0x140] sm:$0xff] %v373_v60 }
  0x75   : >> { %376 = vst [vmem:[%s3195_s27 + $0x160] sm:$0xff] %v375_v61 }
  0x76   : >> { %378 = vst [vmem:[%s3195_s27 + $0x180] sm:$0xff] %v377_v62 }
  0x77   : >> { %380 = vst [vmem:[%s3195_s27 + $0x1a0] sm:$0xff] %v379_v63 }
  0x78   : >> { %382 = vst [vmem:[%s3195_s27 + $0x1c0] sm:$0xff] %v381_v0 }
  0x79   : >> { %384 = vst [vmem:[%s3195_s27 + $0x1e0] sm:$0xff] %v383_v1 }
  0x7a   : >> { %386 = vst [vmem:[%s3195_s27 + $0x200] sm:$0xff] %v385_v2 }
  0x7b   : >> { %388 = vst [vmem:[%s3195_s27 + $0x220] sm:$0xff] %v387_v3 }
  0x7c   : >> { %390 = vst [vmem:[%s3195_s27 + $0x240] sm:$0xff] %v389_v4 }
  0x7d   : >> { %392 = vst [vmem:[%s3195_s27 + $0x260] sm:$0xff] %v391_v5 }
  0x7e   : >> { %394 = vst [vmem:[%s3195_s27 + $0x280] sm:$0xff] %v393_v6  ;;  %349 = sbr.rel (!%p346_p3) target bundleno = 105 (0x69), region = 246 }
  0x7f   : >> { %396 = vst [vmem:[%s3195_s27 + $0x2a0] sm:$0xff] %v395_v7 }
  0x80   : >> { %398 = vst [vmem:[%s3195_s27 + $0x2c0] sm:$0xff] %v397_v8 }
  0x81   : >> { %400 = vst [vmem:[%s3195_s27 + $0x2e0] sm:$0xff] %v399_v9 }
  0x82   : >> { %402 = vst [vmem:[%s3195_s27 + $0x300] sm:$0xff] %v401_v10  ;;  %s4692_s27 = smov %s3588_s11 }
  0x83 PF: > { %412 = sbr.rel (%p215_p10) target bundleno = 256 (0x100), region = 69  ;;  %s414_s17 = ssub.s32 (!%p215_p10), %s3374_s30, %s3380_s5 }
  0x84   : > { %s418_s18 = sshrl.u32 (!%p215_p10), %s3374_s30, 3  ;;  %s3644_s21 = scalar_lea.vmem (!%p215_p10), %s3372_s28, %s414_s17 }
  0x85   : > { %s3647_s22 = scalar_lea.vmem (!%p215_p10), %s3376_s4, %s414_s17 [#allocation2]  ;;  %s3651_s24 = sshrl.u32 (!%p215_p10), %s418_s18, 1 }
  0x86   : > { %p2184_p4 = scmp.le.s32.totalorder (!%p215_p10), %s3651_s24, 0 }
  0x88   : > { %2066 = sbr.rel (%p2184_p4) target bundleno = 192 (0xc0), region = 251  ;;  %s4695_s23 = smov (!%p2184_p4), %s3376_s4 }
  0x89   : > { %s4696_s25 = smov (!%p2184_p4), %s3372_s28  ;;  %s3660_s26 = smov (!%p2184_p4), 0  }
  0x8a   : > { %s3662_s27 = smov (!%p2184_p4), 0  }
  0x8d LB: >> { %v429_v11 = vld [vmem:[%s3215_s25] sm:$0xff]  ;;  %v431_v12 = vld [vmem:[%s3215_s25 + $0x8] sm:$0xff]  ;;  %s529_s29 = sadd.s32 1, %s3219_s26  ;;  %v435_v14 = vld [vmem:[%s3215_s25 + $0x74] sm:$0xff]  ;;  %s423_s27 = sadd.s32 1, %s3223_s27   ;;  %s3223_s27 = sphi %s3662_s27, %s423_s27   ;;  %s3219_s26 = sphi %s3660_s26, %s4699_s26   ;;  %s3215_s25 = sphi %s4696_s25, %s4698_s25   ;;  %s3211_s23 = sphi %s4695_s23, %s4697_s23  }
  0x8e   : >> { %v433_v13 = vld [vmem:[%s3215_s25 + $0x6c] sm:$0xff]  ;;  %430 = vst [vmem:[%s3211_s23] sm:$0xff] %v429_v11  ;;  %p530_p6 = scmp.ge.s32.totalorder %s529_s29, %s3651_s24  ;;  %v437_v15 = vld [vmem:[%s3215_s25 + $0xd8] sm:$0xff]  ;;  %v439_v16 = vld [vmem:[%s3215_s25 + $0xe0] sm:$0xff]  ;;  %p422_p7 = scmp.ge.s32.totalorder %s423_s27, %s3651_s24 }
  0x8f   : >> { %432 = vst [vmem:[%s3211_s23 + $0x8] sm:$0xff] %v431_v12  ;;  %v441_v17 = vld [vmem:[%s3215_s25 + $0x144] sm:$0xff]  ;;  %v443_v18 = vld [vmem:[%s3215_s25 + $0x14c] sm:$0xff]  ;;  %v447_v20 = vld [vmem:[%s3215_s25 + $0x1b8] sm:$0xff] }
  0x90   : >> { %434 = vst [vmem:[%s3211_s23 + $0x20] sm:$0xff] %v433_v13  ;;  %s4725_s29 = smov (%p530_p6, %s529_s29), 0  ;;  %v445_v19 = vld [vmem:[%s3215_s25 + $0x1b0] sm:$0xff]  ;;  %v449_v21 = vld [vmem:[%s3215_s25 + $0x21c] sm:$0xff]  ;;  %v451_v22 = vld [vmem:[%s3215_s25 + $0x224] sm:$0xff] }
  0x91   : >> { %436 = vst [vmem:[%s3211_s23 + $0x28] sm:$0xff] %v435_v14  ;;  %s2185_s8 = sshll.u32 %s4725_s29, 4  ;;  %v453_v23 = vld [vmem:[%s3215_s25 + $0x288] sm:$0xff]  ;;  %v455_v24 = vld [vmem:[%s3215_s25 + $0x290] sm:$0xff]  ;;  %v459_v26 = vld [vmem:[%s3215_s25 + $0x2fc] sm:$0xff]  ;;  %s4699_s26 = smov %s4725_s29 }
  0x92   : >> { %438 = vst [vmem:[%s3211_s23 + $0x40] sm:$0xff] %v437_v15  ;;  %s3694_s9 = scalar_lea.vmem %s3372_s28, %s2185_s8   ;;  %s3697_s6 = scalar_lea.vmem %s3376_s4, %s2185_s8 [#allocation2]   ;;  %v457_v25 = vld [vmem:[%s3215_s25 + $0x2f4] sm:$0xff]  ;;  %v461_v27 = vld [vmem:[%s3215_s25 + $0x360] sm:$0xff]  ;;  %v463_v28 = vld [vmem:[%s3215_s25 + $0x368] sm:$0xff] }
  0x93   : >> { %440 = vst [vmem:[%s3211_s23 + $0x48] sm:$0xff] %v439_v16  ;;  %v465_v29 = vld [vmem:[%s3215_s25 + $0x3cc] sm:$0xff]  ;;  %v467_v30 = vld [vmem:[%s3215_s25 + $0x3d4] sm:$0xff]  ;;  %v471_v32 = vld [vmem:[%s3215_s25 + $0x440] sm:$0xff] }
  0x94   : >> { %442 = vst [vmem:[%s3211_s23 + $0x60] sm:$0xff] %v441_v17  ;;  %v469_v31 = vld [vmem:[%s3215_s25 + $0x438] sm:$0xff]  ;;  %v473_v33 = vld [vmem:[%s3215_s25 + $0x4a4] sm:$0xff]  ;;  %v475_v34 = vld [vmem:[%s3215_s25 + $0x4ac] sm:$0xff] }
  0x95   : >> { %444 = vst [vmem:[%s3211_s23 + $0x68] sm:$0xff] %v443_v18  ;;  %v477_v35 = vld [vmem:[%s3215_s25 + $0x510] sm:$0xff]  ;;  %v479_v36 = vld [vmem:[%s3215_s25 + $0x518] sm:$0xff]  ;;  %v483_v38 = vld [vmem:[%s3215_s25 + $0x584] sm:$0xff] }
  0x96   : >> { %446 = vst [vmem:[%s3211_s23 + $0x80] sm:$0xff] %v445_v19  ;;  %v481_v37 = vld [vmem:[%s3215_s25 + $0x57c] sm:$0xff]  ;;  %v485_v39 = vld [vmem:[%s3215_s25 + $0x5e8] sm:$0xff]  ;;  %v487_v40 = vld [vmem:[%s3215_s25 + $0x5f0] sm:$0xff] }
  0x97   : >> { %448 = vst [vmem:[%s3211_s23 + $0x88] sm:$0xff] %v447_v20  ;;  %v489_v41 = vld [vmem:[%s3215_s25 + $0x654] sm:$0xff]  ;;  %v491_v42 = vld [vmem:[%s3215_s25 + $0x65c] sm:$0xff]  ;;  %v495_v44 = vld [vmem:[%s3215_s25 + $0x6c8] sm:$0xff] }
  0x98   : >> { %450 = vst [vmem:[%s3211_s23 + $0xa0] sm:$0xff] %v449_v21  ;;  %v493_v43 = vld [vmem:[%s3215_s25 + $0x6c0] sm:$0xff]  ;;  %v497_v45 = vld [vmem:[%s3215_s25 + $0x72c] sm:$0xff]  ;;  %v499_v46 = vld [vmem:[%s3215_s25 + $0x734] sm:$0xff] }
  0x99   : >> { %452 = vst [vmem:[%s3211_s23 + $0xa8] sm:$0xff] %v451_v22  ;;  %v501_v47 = vld [vmem:[%s3215_s25 + $0x798] sm:$0xff]  ;;  %v503_v48 = vld [vmem:[%s3215_s25 + $0x7a0] sm:$0xff]  ;;  %v507_v50 = vld [vmem:[%s3215_s25 + $0x80c] sm:$0xff] }
  0x9a   : >> { %454 = vst [vmem:[%s3211_s23 + $0xc0] sm:$0xff] %v453_v23  ;;  %v505_v49 = vld [vmem:[%s3215_s25 + $0x804] sm:$0xff]  ;;  %v509_v51 = vld [vmem:[%s3215_s25 + $0x870] sm:$0xff]  ;;  %v511_v52 = vld [vmem:[%s3215_s25 + $0x878] sm:$0xff] }
  0x9b   : >> { %456 = vst [vmem:[%s3211_s23 + $0xc8] sm:$0xff] %v455_v24  ;;  %v513_v53 = vld [vmem:[%s3215_s25 + $0x8dc] sm:$0xff]  ;;  %v515_v54 = vld [vmem:[%s3215_s25 + $0x8e4] sm:$0xff]  ;;  %v519_v56 = vld [vmem:[%s3215_s25 + $0x950] sm:$0xff] }
  0x9c   : >> { %458 = vst [vmem:[%s3211_s23 + $0xe0] sm:$0xff] %v457_v25  ;;  %v517_v55 = vld [vmem:[%s3215_s25 + $0x948] sm:$0xff]  ;;  %v521_v57 = vld [vmem:[%s3215_s25 + $0x9b4] sm:$0xff]  ;;  %v523_v58 = vld [vmem:[%s3215_s25 + $0x9bc] sm:$0xff] }
  0x9d   : >> { %460 = vst [vmem:[%s3211_s23 + $0xe8] sm:$0xff] %v459_v26  ;;  %v525_v59 = vld [vmem:[%s3215_s25 + $0xa20] sm:$0xff]  ;;  %v527_v60 = vld [vmem:[%s3215_s25 + $0xa28] sm:$0xff]  ;;  %s4698_s25 = smov %s3694_s9 }
  0x9e   : >> { %462 = vst [vmem:[%s3211_s23 + $0x100] sm:$0xff] %v461_v27 }
  0x9f   : >> { %464 = vst [vmem:[%s3211_s23 + $0x108] sm:$0xff] %v463_v28 }
  0xa0   : >> { %466 = vst [vmem:[%s3211_s23 + $0x120] sm:$0xff] %v465_v29 }
  0xa1   : >> { %468 = vst [vmem:[%s3211_s23 + $0x128] sm:$0xff] %v467_v30 }
  0xa2   : >> { %470 = vst [vmem:[%s3211_s23 + $0x140] sm:$0xff] %v469_v31 }
  0xa3   : >> { %472 = vst [vmem:[%s3211_s23 + $0x148] sm:$0xff] %v471_v32 }
  0xa4   : >> { %474 = vst [vmem:[%s3211_s23 + $0x160] sm:$0xff] %v473_v33 }
  0xa5   : >> { %476 = vst [vmem:[%s3211_s23 + $0x168] sm:$0xff] %v475_v34 }
  0xa6   : >> { %478 = vst [vmem:[%s3211_s23 + $0x180] sm:$0xff] %v477_v35 }
  0xa7   : >> { %480 = vst [vmem:[%s3211_s23 + $0x188] sm:$0xff] %v479_v36 }
  0xa8   : >> { %482 = vst [vmem:[%s3211_s23 + $0x1a0] sm:$0xff] %v481_v37 }
  0xa9   : >> { %484 = vst [vmem:[%s3211_s23 + $0x1a8] sm:$0xff] %v483_v38 }
  0xaa   : >> { %486 = vst [vmem:[%s3211_s23 + $0x1c0] sm:$0xff] %v485_v39 }
  0xab   : >> { %488 = vst [vmem:[%s3211_s23 + $0x1c8] sm:$0xff] %v487_v40 }
  0xac   : >> { %490 = vst [vmem:[%s3211_s23 + $0x1e0] sm:$0xff] %v489_v41 }
  0xad   : >> { %492 = vst [vmem:[%s3211_s23 + $0x1e8] sm:$0xff] %v491_v42 }
  0xae   : >> { %494 = vst [vmem:[%s3211_s23 + $0x200] sm:$0xff] %v493_v43 }
  0xaf   : >> { %496 = vst [vmem:[%s3211_s23 + $0x208] sm:$0xff] %v495_v44 }
  0xb0   : >> { %498 = vst [vmem:[%s3211_s23 + $0x220] sm:$0xff] %v497_v45 }
  0xb1   : >> { %500 = vst [vmem:[%s3211_s23 + $0x228] sm:$0xff] %v499_v46 }
  0xb2   : >> { %502 = vst [vmem:[%s3211_s23 + $0x240] sm:$0xff] %v501_v47 }
  0xb3   : >> { %504 = vst [vmem:[%s3211_s23 + $0x248] sm:$0xff] %v503_v48 }
  0xb4   : >> { %506 = vst [vmem:[%s3211_s23 + $0x260] sm:$0xff] %v505_v49 }
  0xb5   : >> { %508 = vst [vmem:[%s3211_s23 + $0x268] sm:$0xff] %v507_v50 }
  0xb6   : >> { %510 = vst [vmem:[%s3211_s23 + $0x280] sm:$0xff] %v509_v51 }
  0xb7   : >> { %512 = vst [vmem:[%s3211_s23 + $0x288] sm:$0xff] %v511_v52 }
  0xb8   : >> { %514 = vst [vmem:[%s3211_s23 + $0x2a0] sm:$0xff] %v513_v53 }
  0xb9   : >> { %516 = vst [vmem:[%s3211_s23 + $0x2a8] sm:$0xff] %v515_v54 }
  0xba   : >> { %518 = vst [vmem:[%s3211_s23 + $0x2c0] sm:$0xff] %v517_v55 }
  0xbb   : >> { %520 = vst [vmem:[%s3211_s23 + $0x2c8] sm:$0xff] %v519_v56  ;;  %425 = sbr.rel (!%p422_p7) target bundleno = 141 (0x8d), region = 257 }
  0xbc   : >> { %522 = vst [vmem:[%s3211_s23 + $0x2e0] sm:$0xff] %v521_v57 }
  0xbd   : >> { %524 = vst [vmem:[%s3211_s23 + $0x2e8] sm:$0xff] %v523_v58 }
  0xbe   : >> { %526 = vst [vmem:[%s3211_s23 + $0x300] sm:$0xff] %v525_v59 }
  0xbf   : >> { %528 = vst [vmem:[%s3211_s23 + $0x308] sm:$0xff] %v527_v60  ;;  %s4697_s23 = smov %s3697_s6 }
  0xc0 PF: > { %s3799_s7 = sand.u32 1, %s418_s18   ;;  %s2632_s10 = sshll.u32 %s3651_s24, 4 }
  0xc1   : > { %s3803_s11 = scalar_lea.vmem %s3372_s28, %s2632_s10   ;;  %s3806_s17 = scalar_lea.vmem %s3376_s4, %s2632_s10 [#allocation2]  }
  0xc2   : > { %p2190_p8 = scmp.le.s32.totalorder %s3799_s7, 0 }
  0xc3   : > { %s4700_s27 = smov (!%p2190_p8), %s3806_s17  ;;  %s4701_s23 = smov (!%p2190_p8), %s3803_s11 }
  0xc4   : > { %2080 = sbr.rel (%p2190_p8) target bundleno = 227 (0xe3), region = 262  ;;  %s3815_s25 = smov (!%p2190_p8), 0  }
  0xc5   : > { %s3817_s26 = smov (!%p2190_p8), 0  }
  0xc9 LB: >> { %v552_v61 = vld [vmem:[%s3231_s23] sm:$0xff]  ;;  %v554_v62 = vld [vmem:[%s3231_s23 + $0x6c] sm:$0xff]  ;;  %v556_v63 = vld [vmem:[%s3231_s23 + $0xd8] sm:$0xff]  ;;  %s602_s18 = sadd.s32 1, %s3235_s25  ;;  %s546_s26 = sadd.s32 1, %s3239_s26   ;;  %s3239_s26 = sphi %s3817_s26, %s546_s26   ;;  %s3235_s25 = sphi %s3815_s25, %s4704_s25   ;;  %s3231_s23 = sphi %s4701_s23, %s4703_s23   ;;  %s3227_s27 = sphi %s4700_s27, %s4702_s27  }
  0xca   : >> { %553 = vst [vmem:[%s3227_s27] sm:$0xff] %v552_v61  ;;  %v558_v0 = vld [vmem:[%s3231_s23 + $0x144] sm:$0xff]  ;;  %p603_p9 = scmp.ge.s32.totalorder %s602_s18, %s3799_s7  ;;  %v560_v1 = vld [vmem:[%s3231_s23 + $0x1b0] sm:$0xff]  ;;  %v562_v2 = vld [vmem:[%s3231_s23 + $0x21c] sm:$0xff]  ;;  %p545_p10 = scmp.ge.s32.totalorder %s546_s26, %s3799_s7 }
  0xcb   : >> { %555 = vst [vmem:[%s3227_s27 + $0x20] sm:$0xff] %v554_v62  ;;  %v564_v3 = vld [vmem:[%s3231_s23 + $0x288] sm:$0xff]  ;;  %v566_v4 = vld [vmem:[%s3231_s23 + $0x2f4] sm:$0xff]  ;;  %v568_v5 = vld [vmem:[%s3231_s23 + $0x360] sm:$0xff] }
  0xcc   : >> { %557 = vst [vmem:[%s3227_s27 + $0x40] sm:$0xff] %v556_v63  ;;  %s4727_s18 = smov (%p603_p9, %s602_s18), 0  ;;  %v570_v6 = vld [vmem:[%s3231_s23 + $0x3cc] sm:$0xff]  ;;  %v572_v7 = vld [vmem:[%s3231_s23 + $0x438] sm:$0xff]  ;;  %v574_v8 = vld [vmem:[%s3231_s23 + $0x4a4] sm:$0xff] }
  0xcd   : >> { %559 = vst [vmem:[%s3227_s27 + $0x60] sm:$0xff] %v558_v0  ;;  %s2191_s24 = sshll.u32 %s4727_s18, 3  ;;  %v576_v9 = vld [vmem:[%s3231_s23 + $0x510] sm:$0xff]  ;;  %v578_v10 = vld [vmem:[%s3231_s23 + $0x57c] sm:$0xff]  ;;  %v580_v11 = vld [vmem:[%s3231_s23 + $0x5e8] sm:$0xff]  ;;  %s4704_s25 = smov %s4727_s18 }
  0xce   : >> { %561 = vst [vmem:[%s3227_s27 + $0x80] sm:$0xff] %v560_v1  ;;  %s3849_s29 = scalar_lea.vmem %s3803_s11, %s2191_s24   ;;  %s3852_s8 = scalar_lea.vmem %s3806_s17, %s2191_s24 [#allocation2]   ;;  %v582_v12 = vld [vmem:[%s3231_s23 + $0x654] sm:$0xff]  ;;  %v584_v13 = vld [vmem:[%s3231_s23 + $0x6c0] sm:$0xff]  ;;  %v586_v14 = vld [vmem:[%s3231_s23 + $0x72c] sm:$0xff] }
  0xcf   : >> { %563 = vst [vmem:[%s3227_s27 + $0xa0] sm:$0xff] %v562_v2  ;;  %v588_v15 = vld [vmem:[%s3231_s23 + $0x798] sm:$0xff]  ;;  %v590_v16 = vld [vmem:[%s3231_s23 + $0x804] sm:$0xff]  ;;  %v592_v17 = vld [vmem:[%s3231_s23 + $0x870] sm:$0xff] }
  0xd0   : >> { %565 = vst [vmem:[%s3227_s27 + $0xc0] sm:$0xff] %v564_v3  ;;  %v594_v18 = vld [vmem:[%s3231_s23 + $0x8dc] sm:$0xff]  ;;  %v596_v19 = vld [vmem:[%s3231_s23 + $0x948] sm:$0xff]  ;;  %v598_v20 = vld [vmem:[%s3231_s23 + $0x9b4] sm:$0xff] }
  0xd1   : >> { %567 = vst [vmem:[%s3227_s27 + $0xe0] sm:$0xff] %v566_v4  ;;  %v600_v21 = vld [vmem:[%s3231_s23 + $0xa20] sm:$0xff]  ;;  %s4703_s23 = smov %s3849_s29 }
  0xd2   : >> { %569 = vst [vmem:[%s3227_s27 + $0x100] sm:$0xff] %v568_v5 }
  0xd3   : >> { %571 = vst [vmem:[%s3227_s27 + $0x120] sm:$0xff] %v570_v6 }
  0xd4   : >> { %573 = vst [vmem:[%s3227_s27 + $0x140] sm:$0xff] %v572_v7 }
  0xd5   : >> { %575 = vst [vmem:[%s3227_s27 + $0x160] sm:$0xff] %v574_v8 }
  0xd6   : >> { %577 = vst [vmem:[%s3227_s27 + $0x180] sm:$0xff] %v576_v9 }
  0xd7   : >> { %579 = vst [vmem:[%s3227_s27 + $0x1a0] sm:$0xff] %v578_v10 }
  0xd8   : >> { %581 = vst [vmem:[%s3227_s27 + $0x1c0] sm:$0xff] %v580_v11 }
  0xd9   : >> { %583 = vst [vmem:[%s3227_s27 + $0x1e0] sm:$0xff] %v582_v12 }
  0xda   : >> { %585 = vst [vmem:[%s3227_s27 + $0x200] sm:$0xff] %v584_v13 }
  0xdb   : >> { %587 = vst [vmem:[%s3227_s27 + $0x220] sm:$0xff] %v586_v14 }
  0xdc   : >> { %589 = vst [vmem:[%s3227_s27 + $0x240] sm:$0xff] %v588_v15 }
  0xdd   : >> { %591 = vst [vmem:[%s3227_s27 + $0x260] sm:$0xff] %v590_v16 }
  0xde   : >> { %593 = vst [vmem:[%s3227_s27 + $0x280] sm:$0xff] %v592_v17  ;;  %548 = sbr.rel (!%p545_p10) target bundleno = 201 (0xc9), region = 268 }
  0xdf   : >> { %595 = vst [vmem:[%s3227_s27 + $0x2a0] sm:$0xff] %v594_v18 }
  0xe0   : >> { %597 = vst [vmem:[%s3227_s27 + $0x2c0] sm:$0xff] %v596_v19 }
  0xe1   : >> { %599 = vst [vmem:[%s3227_s27 + $0x2e0] sm:$0xff] %v598_v20 }
  0xe2   : >> { %601 = vst [vmem:[%s3227_s27 + $0x300] sm:$0xff] %v600_v21  ;;  %s4702_s27 = smov %s3852_s8 }
  0xe3 PF: > { %s3305_s9 = smov 1  }
  0xe4   : > { %s609_s6 = sshll.u32 %s3305_s9, %s3380_s5 }
  0xe5   : > { %s3903_s10 = sadd.s32 4294967295, %s609_s6 }
  0xe6   : > { %v619_v22 = vld [vmem:[%s3644_s21] sm:%s3903_s10]  ;;  %v621_v23 = vld [vmem:[%s3644_s21 + $0x6c] sm:%s3903_s10] }
  0xe7   : > { %620 = vst [vmem:[%s3647_s22] sm:%s3903_s10] %v619_v22  ;;  %v623_v24 = vld [vmem:[%s3644_s21 + $0xd8] sm:%s3903_s10] }
  0xe8   : > { %622 = vst [vmem:[%s3647_s22 + $0x20] sm:%s3903_s10] %v621_v23  ;;  %v625_v25 = vld [vmem:[%s3644_s21 + $0x144] sm:%s3903_s10] }
  0xe9   : > { %624 = vst [vmem:[%s3647_s22 + $0x40] sm:%s3903_s10] %v623_v24  ;;  %v627_v26 = vld [vmem:[%s3644_s21 + $0x1b0] sm:%s3903_s10] }
  0xea   : > { %626 = vst [vmem:[%s3647_s22 + $0x60] sm:%s3903_s10] %v625_v25  ;;  %v629_v27 = vld [vmem:[%s3644_s21 + $0x21c] sm:%s3903_s10] }
  0xeb   : > { %628 = vst [vmem:[%s3647_s22 + $0x80] sm:%s3903_s10] %v627_v26  ;;  %v631_v28 = vld [vmem:[%s3644_s21 + $0x288] sm:%s3903_s10] }
  0xec   : > { %630 = vst [vmem:[%s3647_s22 + $0xa0] sm:%s3903_s10] %v629_v27  ;;  %v633_v29 = vld [vmem:[%s3644_s21 + $0x2f4] sm:%s3903_s10] }
  0xed   : > { %632 = vst [vmem:[%s3647_s22 + $0xc0] sm:%s3903_s10] %v631_v28  ;;  %v635_v30 = vld [vmem:[%s3644_s21 + $0x360] sm:%s3903_s10] }
  0xee   : > { %634 = vst [vmem:[%s3647_s22 + $0xe0] sm:%s3903_s10] %v633_v29  ;;  %v637_v31 = vld [vmem:[%s3644_s21 + $0x3cc] sm:%s3903_s10] }
  0xef   : > { %636 = vst [vmem:[%s3647_s22 + $0x100] sm:%s3903_s10] %v635_v30  ;;  %v639_v32 = vld [vmem:[%s3644_s21 + $0x438] sm:%s3903_s10] }
  0xf0   : > { %638 = vst [vmem:[%s3647_s22 + $0x120] sm:%s3903_s10] %v637_v31  ;;  %v641_v33 = vld [vmem:[%s3644_s21 + $0x4a4] sm:%s3903_s10] }
  0xf1   : > { %640 = vst [vmem:[%s3647_s22 + $0x140] sm:%s3903_s10] %v639_v32  ;;  %v643_v34 = vld [vmem:[%s3644_s21 + $0x510] sm:%s3903_s10] }
  0xf2   : > { %642 = vst [vmem:[%s3647_s22 + $0x160] sm:%s3903_s10] %v641_v33  ;;  %v645_v35 = vld [vmem:[%s3644_s21 + $0x57c] sm:%s3903_s10] }
  0xf3   : > { %644 = vst [vmem:[%s3647_s22 + $0x180] sm:%s3903_s10] %v643_v34  ;;  %v647_v36 = vld [vmem:[%s3644_s21 + $0x5e8] sm:%s3903_s10] }
  0xf4   : > { %646 = vst [vmem:[%s3647_s22 + $0x1a0] sm:%s3903_s10] %v645_v35  ;;  %v649_v37 = vld [vmem:[%s3644_s21 + $0x654] sm:%s3903_s10] }
  0xf5   : > { %648 = vst [vmem:[%s3647_s22 + $0x1c0] sm:%s3903_s10] %v647_v36  ;;  %v651_v38 = vld [vmem:[%s3644_s21 + $0x6c0] sm:%s3903_s10] }
  0xf6   : > { %650 = vst [vmem:[%s3647_s22 + $0x1e0] sm:%s3903_s10] %v649_v37  ;;  %v653_v39 = vld [vmem:[%s3644_s21 + $0x72c] sm:%s3903_s10] }
  0xf7   : > { %652 = vst [vmem:[%s3647_s22 + $0x200] sm:%s3903_s10] %v651_v38  ;;  %v655_v40 = vld [vmem:[%s3644_s21 + $0x798] sm:%s3903_s10] }
  0xf8   : > { %654 = vst [vmem:[%s3647_s22 + $0x220] sm:%s3903_s10] %v653_v39  ;;  %v657_v41 = vld [vmem:[%s3644_s21 + $0x804] sm:%s3903_s10] }
  0xf9   : > { %656 = vst [vmem:[%s3647_s22 + $0x240] sm:%s3903_s10] %v655_v40  ;;  %v659_v42 = vld [vmem:[%s3644_s21 + $0x870] sm:%s3903_s10] }
  0xfa   : > { %658 = vst [vmem:[%s3647_s22 + $0x260] sm:%s3903_s10] %v657_v41  ;;  %v661_v43 = vld [vmem:[%s3644_s21 + $0x8dc] sm:%s3903_s10] }
  0xfb   : > { %660 = vst [vmem:[%s3647_s22 + $0x280] sm:%s3903_s10] %v659_v42  ;;  %v663_v44 = vld [vmem:[%s3644_s21 + $0x948] sm:%s3903_s10] }
  0xfc   : > { %662 = vst [vmem:[%s3647_s22 + $0x2a0] sm:%s3903_s10] %v661_v43  ;;  %v665_v45 = vld [vmem:[%s3644_s21 + $0x9b4] sm:%s3903_s10] }
  0xfd   : > { %664 = vst [vmem:[%s3647_s22 + $0x2c0] sm:%s3903_s10] %v663_v44  ;;  %v667_v46 = vld [vmem:[%s3644_s21 + $0xa20] sm:%s3903_s10] }
  0xfe   : > { %666 = vst [vmem:[%s3647_s22 + $0x2e0] sm:%s3903_s10] %v665_v45 }
  0xff   : > { %668 = vst [vmem:[%s3647_s22 + $0x300] sm:%s3903_s10] %v667_v46 }
 0x100 PF: > { %p2194_p11 = scmp.ge.u32.totalorder %s3374_s30, 8 }
 0x101   : > { %s3306_s5 = smov (!%p2194_p11), 1  }
 0x102   : > { %153 = sbr.rel (%p2194_p11) target bundleno = 289 (0x121), region = 40  ;;  %s154_s21 = sshll.u32 (!%p2194_p11), %s3306_s5, %s3374_s30 }
 0x103   : > { %s4007_s22 = sadd.s32 (!%p2194_p11), 4294967295, %s154_s21 }
 0x107   : > { %v164_v47 = vld [vmem:[%s3372_s28] sm:%s4007_s22]  ;;  %v166_v48 = vld [vmem:[%s3372_s28 + $0x6c] sm:%s4007_s22] }
 0x108   : > { %165 = vst [vmem:[%s3376_s4] sm:%s4007_s22] %v164_v47  ;;  %v168_v49 = vld [vmem:[%s3372_s28 + $0xd8] sm:%s4007_s22] }
 0x109   : > { %167 = vst [vmem:[%s3376_s4 + $0x20] sm:%s4007_s22] %v166_v48  ;;  %v170_v50 = vld [vmem:[%s3372_s28 + $0x144] sm:%s4007_s22] }
 0x10a   : > { %169 = vst [vmem:[%s3376_s4 + $0x40] sm:%s4007_s22] %v168_v49  ;;  %v172_v51 = vld [vmem:[%s3372_s28 + $0x1b0] sm:%s4007_s22] }
 0x10b   : > { %171 = vst [vmem:[%s3376_s4 + $0x60] sm:%s4007_s22] %v170_v50  ;;  %v174_v52 = vld [vmem:[%s3372_s28 + $0x21c] sm:%s4007_s22] }
 0x10c   : > { %173 = vst [vmem:[%s3376_s4 + $0x80] sm:%s4007_s22] %v172_v51  ;;  %v176_v53 = vld [vmem:[%s3372_s28 + $0x288] sm:%s4007_s22] }
 0x10d   : > { %175 = vst [vmem:[%s3376_s4 + $0xa0] sm:%s4007_s22] %v174_v52  ;;  %v178_v54 = vld [vmem:[%s3372_s28 + $0x2f4] sm:%s4007_s22] }
 0x10e   : > { %177 = vst [vmem:[%s3376_s4 + $0xc0] sm:%s4007_s22] %v176_v53  ;;  %v180_v55 = vld [vmem:[%s3372_s28 + $0x360] sm:%s4007_s22] }
 0x10f   : > { %179 = vst [vmem:[%s3376_s4 + $0xe0] sm:%s4007_s22] %v178_v54  ;;  %v182_v56 = vld [vmem:[%s3372_s28 + $0x3cc] sm:%s4007_s22] }
 0x110   : > { %181 = vst [vmem:[%s3376_s4 + $0x100] sm:%s4007_s22] %v180_v55  ;;  %v184_v57 = vld [vmem:[%s3372_s28 + $0x438] sm:%s4007_s22] }
 0x111   : > { %183 = vst [vmem:[%s3376_s4 + $0x120] sm:%s4007_s22] %v182_v56  ;;  %v186_v58 = vld [vmem:[%s3372_s28 + $0x4a4] sm:%s4007_s22] }
 0x112   : > { %185 = vst [vmem:[%s3376_s4 + $0x140] sm:%s4007_s22] %v184_v57  ;;  %v188_v59 = vld [vmem:[%s3372_s28 + $0x510] sm:%s4007_s22] }
 0x113   : > { %187 = vst [vmem:[%s3376_s4 + $0x160] sm:%s4007_s22] %v186_v58  ;;  %v190_v60 = vld [vmem:[%s3372_s28 + $0x57c] sm:%s4007_s22] }
 0x114   : > { %189 = vst [vmem:[%s3376_s4 + $0x180] sm:%s4007_s22] %v188_v59  ;;  %v192_v61 = vld [vmem:[%s3372_s28 + $0x5e8] sm:%s4007_s22] }
 0x115   : > { %191 = vst [vmem:[%s3376_s4 + $0x1a0] sm:%s4007_s22] %v190_v60  ;;  %v194_v62 = vld [vmem:[%s3372_s28 + $0x654] sm:%s4007_s22] }
 0x116   : > { %193 = vst [vmem:[%s3376_s4 + $0x1c0] sm:%s4007_s22] %v192_v61  ;;  %v196_v63 = vld [vmem:[%s3372_s28 + $0x6c0] sm:%s4007_s22] }
 0x117   : > { %195 = vst [vmem:[%s3376_s4 + $0x1e0] sm:%s4007_s22] %v194_v62  ;;  %v198_v0 = vld [vmem:[%s3372_s28 + $0x72c] sm:%s4007_s22] }
 0x118   : > { %197 = vst [vmem:[%s3376_s4 + $0x200] sm:%s4007_s22] %v196_v63  ;;  %v200_v1 = vld [vmem:[%s3372_s28 + $0x798] sm:%s4007_s22] }
 0x119   : > { %199 = vst [vmem:[%s3376_s4 + $0x220] sm:%s4007_s22] %v198_v0  ;;  %v202_v2 = vld [vmem:[%s3372_s28 + $0x804] sm:%s4007_s22] }
 0x11a   : > { %201 = vst [vmem:[%s3376_s4 + $0x240] sm:%s4007_s22] %v200_v1  ;;  %v204_v3 = vld [vmem:[%s3372_s28 + $0x870] sm:%s4007_s22] }
 0x11b   : > { %203 = vst [vmem:[%s3376_s4 + $0x260] sm:%s4007_s22] %v202_v2  ;;  %v206_v4 = vld [vmem:[%s3372_s28 + $0x8dc] sm:%s4007_s22] }
 0x11c   : > { %205 = vst [vmem:[%s3376_s4 + $0x280] sm:%s4007_s22] %v204_v3  ;;  %v208_v5 = vld [vmem:[%s3372_s28 + $0x948] sm:%s4007_s22] }
 0x11d   : > { %207 = vst [vmem:[%s3376_s4 + $0x2a0] sm:%s4007_s22] %v206_v4  ;;  %v210_v6 = vld [vmem:[%s3372_s28 + $0x9b4] sm:%s4007_s22] }
 0x11e   : > { %209 = vst [vmem:[%s3376_s4 + $0x2c0] sm:%s4007_s22] %v208_v5  ;;  %v212_v7 = vld [vmem:[%s3372_s28 + $0xa20] sm:%s4007_s22] }
 0x11f   : > { %211 = vst [vmem:[%s3376_s4 + $0x2e0] sm:%s4007_s22] %v210_v6 }
 0x120   : > { %213 = vst [vmem:[%s3376_s4 + $0x300] sm:%s4007_s22] %v212_v7 }
 0x121 PF: > { %p2196_p12 = scmp.ge.s32.totalorder %s3175_s14, 1  ;;  %p671_p13 = scmp.lt.s32.totalorder %s3175_s14, 5 }
 0x123   : > { %p672_p0 = pnand %p2196_p12, %p671_p13 }
 0x124   : > { %s678_s30 = sand.u32 (!%p672_p0), 1, %s3167_s12  }
 0x125   : > { %675 = sbr.rel (%p672_p0) target bundleno = 715 (0x2cb), region = 94  ;;  %s2197_s9 = sshll.u32 (!%p672_p0), %s678_s30, 6 }
 0x126   : > { %s2738_s7 = smul.u32 (!%p672_p0), 800, %s678_s30  ;;  %s4380_s6 = scalar_lea.vmem (!%p672_p0), [#allocation3], %s2197_s9  }
 0x128   : > { %s4114_s11 = scalar_lea.vmem (!%p672_p0), [#allocation2], %s2738_s7 }
 0x12a   : > { %v2432_v8 = vld [vmem:[%s4114_s11 + $0x1c0] sm:$0xf]  ;;  %v2692_v10 = vld [vmem:[%s4114_s11 + $0x1c4] sm:$0xf]  ;;  %vm1338_vm0 = vcmask 1041408   ;;  %vm1334_vm1 = vcmask 556032  }
 0x12b   : > { %v2696_v9 = vld [vmem:[%s4114_s11 + $0x1dc] sm:$0xf0]  ;;  %v2434_v12 = vld [vmem:[%s4114_s11 + $0x1e0] sm:$0xf0]  ;;  %v810_v59 = vld [vmem:[%s4114_s11 + $0x308] sm:$0x33] }
 0x12c   : > { %v2433_v11 = vor.u32 %v2696_v9, %v2432_v8  ;;  %v809_v13 = vld [vmem:[%s4114_s11 + $0x300] sm:$0x33]  ;;  %v2437_v15 = vor.u32 %v2692_v10, %v2434_v12  ;;  %v1128_v0 = vunpack.c.l.b16 %v810_v59  ;;  %v2440_v9 = vld [vmem:[%s4114_s11 + $0x1c8] sm:$0xf]  ;;  %s2599_s12 = sshll.u32 (%p3361_p5), %s3346_s15, 3  ;;  %s2732_s10 = sshll.u32 (%p3361_p5), %s3346_s15, 5 }
 0x12d   : > { %v2400_v14 = vld [vmem:[%s4114_s11 + $0x180] sm:$0xf]  ;;  %v1126_v16 = vunpack.c.l.b16 %v809_v13  ;;  %v1127_v17 = vunpack.c.h.b16 %v809_v13  ;;  %v2684_v19 = vld [vmem:[%s4114_s11 + $0x184] sm:$0xf]  ;;  %v2697_v10 = vld [vmem:[%s4114_s11 + $0x1e4] sm:$0xf0]  ;;  %s4409_s30 = scalar_lea.vmem (%p3361_p5), %s4683_s3, %s2732_s10  }
 0x12e   : > { %v2688_v18 = vld [vmem:[%s4114_s11 + $0x19c] sm:$0xf0]  ;;  %v2402_v20 = vld [vmem:[%s4114_s11 + $0x1a0] sm:$0xf0]  ;;  %1363 = vmatpush.bf16.msra.mxu0 %v2433_v11  ;;  %1391 = vmatpush.bf16.msra.mxu2 %v2437_v15  ;;  %v1232_v11 = vpack.c.b16 %v1128_v0, %v1128_v0  ;;  %s1659_s5 = ssub.s32 (%p3361_p5), 27, %s2599_s12 }
 0x12f   : > { %v2560_v21 = vld [vmem:[%s4114_s11 + $0x2c0] sm:$0xf]  ;;  %v1230_v23 = vpack.c.b16 %v1126_v16, %v1126_v16  ;;  %v1231_v24 = vpack.c.b16 %v1127_v17, %v1127_v17  ;;  %v2401_v25 = vor.u32 %v2688_v18, %v2400_v14  ;;  %v2405_v26 = vor.u32 %v2684_v19, %v2402_v20  ;;  %v2724_v27 = vld [vmem:[%s4114_s11 + $0x2c4] sm:$0xf]  ;;  %v2202_v16 = vld [vmem:[%s4681_s1 + $0x8] sm:$0xf0] }
 0x130   : > { %v2728_v22 = vld [vmem:[%s4114_s11 + $0x2dc] sm:$0xf0]  ;;  %v2562_v28 = vld [vmem:[%s4114_s11 + $0x2e0] sm:$0xf0]  ;;  %p1660_p1 = scmp.lt.s32.totalorder (%p3361_p5), %s1659_s5, 8 }
 0x131   : > { %v2368_v29 = vld [vmem:[%s4114_s11 + $0x140] sm:$0xf]  ;;  %v2676_v31 = vld [vmem:[%s4114_s11 + $0x144] sm:$0xf]  ;;  %v1340_v33 = vsel %vm1338_vm0, %v1230_v23, 0  ;;  %v1343_v34 = vsel %vm1338_vm0, %v1231_v24, 0  ;;  %v2561_v35 = vor.u32 %v2728_v22, %v2560_v21  ;;  %v2565_v36 = vor.u32 %v2724_v27, %v2562_v28 }
 0x132   : > { %v2680_v30 = vld [vmem:[%s4114_s11 + $0x15c] sm:$0xf0]  ;;  %v2370_v32 = vld [vmem:[%s4114_s11 + $0x160] sm:$0xf0]  ;;  %1380 = vmatpush.bf16.msra.mxu1 %v1340_v33  ;;  %1408 = vmatpush.bf16.msra.mxu3 %v1343_v34  ;;  %v2441_v22 = vor.u32 %v2697_v10, %v2440_v9  ;;  %v2408_v23 = vld [vmem:[%s4114_s11 + $0x188] sm:$0xf] }
 0x133   : > { %v2528_v37 = vld [vmem:[%s4114_s11 + $0x280] sm:$0xf]  ;;  %1364 = vmatpush.bf16.msra.mxu0 %v2401_v25  ;;  %1392 = vmatpush.bf16.msra.mxu2 %v2405_v26  ;;  %v2369_v39 = vor.u32 %v2680_v30, %v2368_v29  ;;  %v2373_v40 = vor.u32 %v2676_v31, %v2370_v32  ;;  %v2716_v41 = vld [vmem:[%s4114_s11 + $0x284] sm:$0xf]  ;;  %v2689_v24 = vld [vmem:[%s4114_s11 + $0x1a4] sm:$0xf0]  ;;  %v1129_v25 = vunpack.c.h.b16 %v810_v59 }
 0x134   : > { %v2720_v38 = vld [vmem:[%s4114_s11 + $0x29c] sm:$0xf0]  ;;  %v2530_v42 = vld [vmem:[%s4114_s11 + $0x2a0] sm:$0xf0]  ;;  %v1346_v26 = vsel %vm1338_vm0, %v1232_v11, 0  ;;  %v3307_v30 = vmov 0  }
 0x135   : > { %v2336_v43 = vld [vmem:[%s4114_s11 + $0x100] sm:$0xf]  ;;  %v2668_v45 = vld [vmem:[%s4114_s11 + $0x104] sm:$0xf]  ;;  %v2529_v47 = vor.u32 %v2720_v38, %v2528_v37  ;;  %v2533_v48 = vor.u32 %v2716_v41, %v2530_v42  ;;  %v2568_v27 = vld [vmem:[%s4114_s11 + $0x2c8] sm:$0xf]  ;;  %3024 = vset.pattern.permute.xlu0 %v3307_v30 }
 0x136   : > { %v2672_v44 = vld [vmem:[%s4114_s11 + $0x11c] sm:$0xf0]  ;;  %v2338_v46 = vld [vmem:[%s4114_s11 + $0x120] sm:$0xf0]  ;;  %1381 = vmatpush.bf16.msra.mxu1 %v2561_v35  ;;  %1409 = vmatpush.bf16.msra.mxu3 %v2565_v36  ;;  %v2729_v28 = vld [vmem:[%s4114_s11 + $0x2e4] sm:$0xf0]  ;;  %v2409_v35 = vor.u32 %v2689_v24, %v2408_v23 }
 0x137   : > { %v2496_v49 = vld [vmem:[%s4114_s11 + $0x240] sm:$0xf]  ;;  %1365 = vmatpush.bf16.msra.mxu0 %v2369_v39  ;;  %1393 = vmatpush.bf16.msra.mxu2 %v2373_v40  ;;  %v2337_v51 = vor.u32 %v2672_v44, %v2336_v43  ;;  %v2341_v52 = vor.u32 %v2668_v45, %v2338_v46  ;;  %v2708_v53 = vld [vmem:[%s4114_s11 + $0x244] sm:$0xf]  ;;  %v2569_v36 = vor.u32 %v2729_v28, %v2568_v27  ;;  %v2376_v39 = vld [vmem:[%s4114_s11 + $0x148] sm:$0xf] }
 0x138   : > { %v2712_v50 = vld [vmem:[%s4114_s11 + $0x25c] sm:$0xf0]  ;;  %v2498_v54 = vld [vmem:[%s4114_s11 + $0x260] sm:$0xf0]  ;;  %v1233_v40 = vpack.c.b16 %v1129_v25, %v1129_v25  ;;  %v2681_v41 = vld [vmem:[%s4114_s11 + $0x164] sm:$0xf0] }
 0x139   : > { %v2304_v55 = vld [vmem:[%s4114_s11 + $0xc0] sm:$0xf]  ;;  %v2660_v57 = vld [vmem:[%s4114_s11 + $0xc4] sm:$0xf]  ;;  %v2497_v60 = vor.u32 %v2712_v50, %v2496_v49  ;;  %v2501_v61 = vor.u32 %v2708_v53, %v2498_v54  ;;  %v2536_v42 = vld [vmem:[%s4114_s11 + $0x288] sm:$0xf]  ;;  %v2377_v50 = vor.u32 %v2681_v41, %v2376_v39 }
 0x13a   : > { %v2664_v56 = vld [vmem:[%s4114_s11 + $0xdc] sm:$0xf0]  ;;  %v2306_v58 = vld [vmem:[%s4114_s11 + $0xe0] sm:$0xf0]  ;;  %1382 = vmatpush.bf16.msra.mxu1 %v2529_v47  ;;  %1410 = vmatpush.bf16.msra.mxu3 %v2533_v48  ;;  %v2721_v43 = vld [vmem:[%s4114_s11 + $0x2a4] sm:$0xf0] }
 0x13b   : > { %v2464_v62 = vld [vmem:[%s4114_s11 + $0x200] sm:$0xf]  ;;  %1366 = vmatpush.bf16.msra.mxu0 %v2337_v51  ;;  %1394 = vmatpush.bf16.msra.mxu2 %v2341_v52  ;;  %v2305_v1 = vor.u32 %v2664_v56, %v2304_v55  ;;  %v2309_v2 = vor.u32 %v2660_v57, %v2306_v58  ;;  %v2700_v3 = vld [vmem:[%s4114_s11 + $0x204] sm:$0xf]  ;;  %v2693_v44 = vld [vmem:[%s4114_s11 + $0x1cc] sm:$0xf]  ;;  %v2537_v51 = vor.u32 %v2721_v43, %v2536_v42 }
 0x13c   : > { %v2704_v63 = vld [vmem:[%s4114_s11 + $0x21c] sm:$0xf0]  ;;  %v2466_v4 = vld [vmem:[%s4114_s11 + $0x220] sm:$0xf0]  ;;  %v2442_v45 = vld [vmem:[%s4114_s11 + $0x1e8] sm:$0xf0] }
 0x13d   : > { %v2272_v5 = vld [vmem:[%s4114_s11 + $0x80] sm:$0xf]  ;;  %v2652_v7 = vld [vmem:[%s4114_s11 + $0x84] sm:$0xf]  ;;  %v2465_v12 = vor.u32 %v2704_v63, %v2464_v62  ;;  %v2469_v13 = vor.u32 %v2700_v3, %v2466_v4  ;;  %v2635_v49 = vld [vmem:[%s4681_s1 + $0x4] sm:$0xf0]  ;;  %v2445_v55 = vor.u32 %v2693_v44, %v2442_v45 }
 0x13e   : > { %v2656_v6 = vld [vmem:[%s4114_s11 + $0x9c] sm:$0xf0]  ;;  %v2274_v8 = vld [vmem:[%s4114_s11 + $0xa0] sm:$0xf0]  ;;  %1383 = vmatpush.bf16.msra.mxu1 %v2497_v60  ;;  %1411 = vmatpush.bf16.msra.mxu3 %v2501_v61  ;;  %v1349_v52 = vsel %vm1338_vm0, %v1233_v40, 0 }
 0x13f   : > { %v2240_v14 = vld [vmem:[%s4114_s11 + $0x40] sm:$0xf]  ;;  %v2634_v15 = vld [vmem:[%s4681_s1 + $0x4] sm:$0xf]  ;;  %1367 = vmatpush.bf16.msra.mxu0 %v2305_v1  ;;  %1395 = vmatpush.bf16.msra.mxu2 %v2309_v2  ;;  %v2273_v17 = vor.u32 %v2656_v6, %v2272_v5  ;;  %v2277_v18 = vor.u32 %v2652_v7, %v2274_v8  ;;  %v2344_v53 = vld [vmem:[%s4114_s11 + $0x108] sm:$0xf] }
 0x140   : > { %v2648_v19 = vld [vmem:[%s4114_s11 + $0x5c] sm:$0xf0]  ;;  %v2644_v20 = vld [vmem:[%s4114_s11 + $0x44] sm:$0xf]  ;;  %v4177_v29 = vor.u32 %v2634_v15, %v2202_v16  ;;  %v2673_v54 = vld [vmem:[%s4114_s11 + $0x124] sm:$0xf0] }
 0x141   : > { %v2242_v21 = vld [vmem:[%s4114_s11 + $0x60] sm:$0xf0]  ;;  %v2241_v31 = vor.u32 %v2648_v19, %v2240_v14  ;;  %v2208_v33 = vld [vmem:[%s4114_s11] sm:$0xf]  ;;  %v2504_v56 = vld [vmem:[%s4114_s11 + $0x248] sm:$0xf]  ;;  %v2345_v63 = vor.u32 %v2673_v54, %v2344_v53 }
 0x142   : > { %1384 = vmatpush.bf16.msra.mxu1 %v2465_v12  ;;  %1412 = vmatpush.bf16.msra.mxu3 %v2469_v13  ;;  %v2245_v32 = vor.u32 %v2644_v20, %v2242_v21  ;;  %v2640_v34 = vld [vmem:[%s4114_s11 + $0x1c] sm:$0xf0]  ;;  %v2636_v37 = vld [vmem:[%s4114_s11 + $0x4] sm:$0xf]  ;;  %v2713_v57 = vld [vmem:[%s4114_s11 + $0x264] sm:$0xf0] }
 0x143   : > { %1368 = vmatpush.bf16.msra.mxu0 %v2273_v17  ;;  %1396 = vmatpush.bf16.msra.mxu2 %v2277_v18  ;;  %v2210_v38 = vld [vmem:[%s4114_s11 + $0x20] sm:$0xf0]  ;;  %v2209_v46 = vor.u32 %v2640_v34, %v2208_v33  ;;  %v2200_v48 = vld [vmem:[%s4681_s1] sm:$0xf]  ;;  %v2685_v58 = vld [vmem:[%s4114_s11 + $0x18c] sm:$0xf]  ;;  %v2505_v0 = vor.u32 %v2713_v57, %v2504_v56 }
 0x144   : > { %v2213_v47 = vor.u32 %v2636_v37, %v2210_v38  ;;  %v4205_v59 = vor.u32 %v2635_v49, %v2200_v48  ;;  %v2410_v60 = vld [vmem:[%s4114_s11 + $0x1a8] sm:$0xf0]  ;;  %v2312_v1 = vld [vmem:[%s4114_s11 + $0xc8] sm:$0xf]  ;;  %v813_v8 = vld [vmem:[%s4682_s2] sm:$0xff] }
 0x145   : > { %2591 = vmatmul.msk.bf16.vlgmr.msra.gmra.mxu3 %vm1334_vm1, %v4177_v29  ;;  %2590 = vmatmul.msk.bf16.vlgmr.msra.gmra.mxu1 %vm1334_vm1, %v4177_v29  ;;  %v2725_v61 = vld [vmem:[%s4114_s11 + $0x2cc] sm:$0xf]  ;;  %v2665_v2 = vld [vmem:[%s4114_s11 + $0xe4] sm:$0xf0]  ;;  %v2413_v4 = vor.u32 %v2685_v58, %v2410_v60  ;;  %v2448_v12 = vld [vmem:[%s4114_s11 + $0x1d0] sm:$0xf] }
 0x146   : > { %1419 = vmatpush.bf16.msrb.mxu1 %v2441_v22  ;;  %1436 = vmatpush.bf16.msrb.mxu3 %v1346_v26  ;;  %v2570_v62 = vld [vmem:[%s4114_s11 + $0x2e8] sm:$0xf0]  ;;  %v2472_v3 = vld [vmem:[%s4114_s11 + $0x208] sm:$0xf]  ;;  %v2698_v13 = vld [vmem:[%s4114_s11 + $0x1ec] sm:$0xf0]  ;;  %v2313_v14 = vor.u32 %v2665_v2, %v2312_v1 }
 0x147   : > { %1369 = vmatpush.bf16.msra.mxu0 %v2241_v31  ;;  %1397 = vmatpush.bf16.msra.mxu2 %v2245_v32  ;;  %v2573_v5 = vor.u32 %v2725_v61, %v2570_v62  ;;  %v2705_v6 = vld [vmem:[%s4114_s11 + $0x224] sm:$0xf0]  ;;  %v2677_v7 = vld [vmem:[%s4114_s11 + $0x14c] sm:$0xf]  ;;  %v2449_v21 = vor.u32 %v2698_v13, %v2448_v12  ;;  %v2416_v25 = vld [vmem:[%s4114_s11 + $0x190] sm:$0xf] }
 0x148   : > { %v2378_v9 = vld [vmem:[%s4114_s11 + $0x168] sm:$0xf0]  ;;  %817 = vperm.xlu0 %3024, %v813_v8   ;;  %v2473_v15 = vor.u32 %v2705_v6, %v2472_v3  ;;  %v2280_v18 = vld [vmem:[%s4114_s11 + $0x88] sm:$0xf]  ;;  %v2690_v26 = vld [vmem:[%s4114_s11 + $0x1ac] sm:$0xf0] }
 0x149   : > { %v2717_v10 = vld [vmem:[%s4114_s11 + $0x28c] sm:$0xf]  ;;  %v2381_v16 = vor.u32 %v2677_v7, %v2378_v9  ;;  %v2657_v19 = vld [vmem:[%s4114_s11 + $0xa4] sm:$0xf0]  ;;  %v4234_v27 = vld [vmem:[%s4114_s11 + $0x310] sm:$0x33]  ;;  %v2417_v37 = vor.u32 %v2690_v26, %v2416_v25 }
 0x14a   : > { %1420 = vmatpush.bf16.msrb.mxu1 %v2409_v35  ;;  %1437 = vmatpush.bf16.msrb.mxu3 %v2569_v36  ;;  %v2538_v11 = vld [vmem:[%s4114_s11 + $0x2a8] sm:$0xf0]  ;;  %v2281_v28 = vor.u32 %v2657_v19, %v2280_v18  ;;  %v2248_v30 = vld [vmem:[%s4114_s11 + $0x48] sm:$0xf]  ;;  %v2384_v40 = vld [vmem:[%s4114_s11 + $0x150] sm:$0xf]  ;;  %v1130_v41 = vunpack.c.l.b16 %v4234_v27 }
 0x14b   : > { %1370 = vmatpush.bf16.msra.mxu0 %v2209_v46  ;;  %1398 = vmatpush.bf16.msra.mxu2 %v2213_v47  ;;  %v2541_v17 = vor.u32 %v2717_v10, %v2538_v11  ;;  %v2669_v20 = vld [vmem:[%s4114_s11 + $0x10c] sm:$0xf]  ;;  %v2649_v34 = vld [vmem:[%s4114_s11 + $0x64] sm:$0xf0]  ;;  %v2682_v42 = vld [vmem:[%s4114_s11 + $0x16c] sm:$0xf0] }
 0x14c   : > { %v2346_v22 = vld [vmem:[%s4114_s11 + $0x128] sm:$0xf0]  ;;  %v2694_v43 = vld [vmem:[%s4114_s11 + $0x1d4] sm:$0xf]  ;;  %v2249_v45 = vor.u32 %v2649_v34, %v2248_v30  ;;  %v2216_v48 = vld [vmem:[%s4114_s11 + $0x8] sm:$0xf] }
 0x14d   : > { %v2709_v23 = vld [vmem:[%s4114_s11 + $0x24c] sm:$0xf]  ;;  %v2349_v32 = vor.u32 %v2669_v20, %v2346_v22  ;;  %v2450_v44 = vld [vmem:[%s4114_s11 + $0x1f0] sm:$0xf0]  ;;  %v2641_v49 = vld [vmem:[%s4114_s11 + $0x24] sm:$0xf0] }
 0x14e   : > { %1421 = vmatpush.bf16.msrb.mxu1 %v2377_v50  ;;  %1438 = vmatpush.bf16.msrb.mxu3 %v2537_v51  ;;  %v2506_v24 = vld [vmem:[%s4114_s11 + $0x268] sm:$0xf0]  ;;  %v2385_v50 = vor.u32 %v2682_v42, %v2384_v40  ;;  %v2453_v51 = vor.u32 %v2694_v43, %v2450_v44  ;;  %v2352_v54 = vld [vmem:[%s4114_s11 + $0x110] sm:$0xf]  ;;  %v2686_v57 = vld [vmem:[%s4114_s11 + $0x194] sm:$0xf]  ;;  %v2217_v60 = vor.u32 %v2641_v49, %v2216_v48 }
 0x14f   : > { %1447 = vmatpush.bf16.msrb.mxu0 %v2445_v55  ;;  %1464 = vmatpush.bf16.msrb.mxu2 %v1349_v52  ;;  %v814_v31 = vld [vmem:[%s4682_s2 + $0x8] sm:$0xff]  ;;  %v2509_v33 = vor.u32 %v2709_v23, %v2506_v24  ;;  %v1234_v55 = vpack.c.b16 %v1130_v41, %v1130_v41  ;;  %v2674_v56 = vld [vmem:[%s4114_s11 + $0x12c] sm:$0xf0]  ;;  %v2418_v58 = vld [vmem:[%s4114_s11 + $0x1b0] sm:$0xf0] }
 0x150   : > { %1399 = vmatmul.bf16.vlgmr.msra.gmra.mxu2 %v4205_v59  ;;  %1371 = vmatmul.bf16.vlgmr.msra.gmra.mxu0 %v4205_v59  ;;  %v2661_v35 = vld [vmem:[%s4114_s11 + $0xcc] sm:$0xf]  ;;  %v2353_v1 = vor.u32 %v2674_v56, %v2352_v54  ;;  %v2421_v3 = vor.u32 %v2686_v57, %v2418_v58  ;;  %v2666_v6 = vld [vmem:[%s4114_s11 + $0xec] sm:$0xf0]  ;;  %v2678_v7 = vld [vmem:[%s4114_s11 + $0x154] sm:$0xf] }
 0x151   : > { %v2314_v36 = vld [vmem:[%s4114_s11 + $0xe8] sm:$0xf0]  ;;  %822 = vperm.xlu0 %3024, %v814_v31   ;;  %v1352_v2 = vsel %vm1338_vm0, %v1234_v55, 0  ;;  %v2386_v8 = vld [vmem:[%s4114_s11 + $0x170] sm:$0xf0] }
 0x152   : > { %1422 = vmatpush.bf16.msrb.mxu1 %v2345_v63  ;;  %1439 = vmatpush.bf16.msrb.mxu3 %v2505_v0  ;;  %v2701_v38 = vld [vmem:[%s4114_s11 + $0x20c] sm:$0xf]  ;;  %v2317_v46 = vor.u32 %v2661_v35, %v2314_v36  ;;  %v2320_v0 = vld [vmem:[%s4114_s11 + $0xd0] sm:$0xf]  ;;  %v2670_v19 = vld [vmem:[%s4114_s11 + $0x114] sm:$0xf] }
 0x153   : > { %1448 = vmatpush.bf16.msrb.mxu0 %v2413_v4  ;;  %1465 = vmatpush.bf16.msrb.mxu2 %v2573_v5  ;;  %v2474_v39 = vld [vmem:[%s4114_s11 + $0x228] sm:$0xf0]  ;;  %v2576_v4 = vld [vmem:[%s4114_s11 + $0x2d0] sm:$0xf]  ;;  %v2321_v13 = vor.u32 %v2666_v6, %v2320_v0  ;;  %v2354_v20 = vld [vmem:[%s4114_s11 + $0x130] sm:$0xf0] }
 0x154   : > { %v2477_v47 = vor.u32 %v2701_v38, %v2474_v39  ;;  %v2653_v52 = vld [vmem:[%s4114_s11 + $0x8c] sm:$0xf]  ;;  %v2730_v5 = vld [vmem:[%s4114_s11 + $0x2ec] sm:$0xf0]  ;;  %v2458_v22 = vld [vmem:[%s4114_s11 + $0x1f8] sm:$0xf0]  ;;  %v2357_v26 = vor.u32 %v2670_v19, %v2354_v20 }
 0x155   : > { %v2282_v53 = vld [vmem:[%s4114_s11 + $0xa8] sm:$0xf0]  ;;  %v2577_v10 = vor.u32 %v2730_v5, %v2576_v4  ;;  %v2658_v18 = vld [vmem:[%s4114_s11 + $0xac] sm:$0xf0]  ;;  %v2662_v34 = vld [vmem:[%s4114_s11 + $0xd4] sm:$0xf] }
 0x156   : > { %1423 = vmatpush.bf16.msrb.mxu1 %v2313_v14  ;;  %1440 = vmatpush.bf16.msrb.mxu3 %v2473_v15  ;;  %v2285_v61 = vor.u32 %v2653_v52, %v2282_v53  ;;  %v2645_v62 = vld [vmem:[%s4114_s11 + $0x4c] sm:$0xf]  ;;  %v2389_v14 = vor.u32 %v2678_v7, %v2386_v8  ;;  %v2288_v15 = vld [vmem:[%s4114_s11 + $0x90] sm:$0xf]  ;;  %v2322_v35 = vld [vmem:[%s4114_s11 + $0xf0] sm:$0xf0] }
 0x157   : > { %1449 = vmatpush.bf16.msrb.mxu0 %v2381_v16  ;;  %1466 = vmatpush.bf16.msrb.mxu2 %v2541_v17  ;;  %v2250_v63 = vld [vmem:[%s4114_s11 + $0x68] sm:$0xf0]  ;;  %v2544_v16 = vld [vmem:[%s4114_s11 + $0x290] sm:$0xf]  ;;  %v2289_v25 = vor.u32 %v2658_v18, %v2288_v15  ;;  %v2426_v38 = vld [vmem:[%s4114_s11 + $0x1b8] sm:$0xf0] }
 0x158   : > { %v2253_v9 = vor.u32 %v2645_v62, %v2250_v63  ;;  %v2637_v11 = vld [vmem:[%s4114_s11 + $0xc] sm:$0xf]  ;;  %v2722_v17 = vld [vmem:[%s4114_s11 + $0x2ac] sm:$0xf0]  ;;  %v2456_v49 = vld [vmem:[%s4114_s11 + $0x1d8] sm:$0xf] }
 0x159   : > { %2592 = vmatmul.msk.bf16.vlgmr.msrb.gmra.mxu3 %vm1334_vm1, %v4177_v29  ;;  %v2218_v12 = vld [vmem:[%s4114_s11 + $0x28] sm:$0xf0]  ;;  %v2545_v24 = vor.u32 %v2722_v17, %v2544_v16  ;;  %v2512_v30 = vld [vmem:[%s4114_s11 + $0x250] sm:$0xf]  ;;  %v2679_v52 = vld [vmem:[%s4114_s11 + $0x15c] sm:$0xf] }
 0x15a   : > { %1475 = vmatpush.bf16.msra.mxu3 %v2449_v21  ;;  %1424 = vmatpush.bf16.msrb.mxu1 %v2281_v28  ;;  %v2695_v21 = vld [vmem:[%s4114_s11 + $0x1dc] sm:$0xf]  ;;  %v2221_v23 = vor.u32 %v2637_v11, %v2218_v12  ;;  %v2256_v28 = vld [vmem:[%s4114_s11 + $0x50] sm:$0xf]  ;;  %v2726_v62 = vld [vmem:[%s4114_s11 + $0x2d4] sm:$0xf] }
 0x15b   : > { %1450 = vmatpush.bf16.msrb.mxu0 %v2349_v32  ;;  %1467 = vmatpush.bf16.msrb.mxu2 %v2509_v33  ;;  %v2714_v31 = vld [vmem:[%s4114_s11 + $0x26c] sm:$0xf0]  ;;  %v1131_v32 = vunpack.c.h.b16 %v4234_v27  ;;  %v2461_v36 = vor.u32 %v2695_v21, %v2458_v22  ;;  %v2325_v27 = vor.u32 %v2662_v34, %v2322_v35  ;;  %v2394_v53 = vld [vmem:[%s4114_s11 + $0x178] sm:$0xf0]  ;;  %v2578_v63 = vld [vmem:[%s4114_s11 + $0x2f0] sm:$0xf0] }
 0x15c   : > { %v2650_v33 = vld [vmem:[%s4114_s11 + $0x6c] sm:$0xf0]  ;;  %v2513_v39 = vor.u32 %v2714_v31, %v2512_v30  ;;  %v812_v57 = vld [vmem:[%s4114_s11 + $0x318] sm:$0x33]  ;;  %v2581_v7 = vor.u32 %v2726_v62, %v2578_v63  ;;  %v2718_v11 = vld [vmem:[%s4114_s11 + $0x294] sm:$0xf] }
 0x15d   : > { %v2257_v40 = vor.u32 %v2650_v33, %v2256_v28  ;;  %v2224_v41 = vld [vmem:[%s4114_s11 + $0x10] sm:$0xf]  ;;  %v1235_v44 = vpack.c.b16 %v1131_v32, %v1131_v32  ;;  %v2424_v0 = vld [vmem:[%s4114_s11 + $0x198] sm:$0xf]  ;;  %v2671_v4 = vld [vmem:[%s4114_s11 + $0x11c] sm:$0xf] }
 0x15e   : > { %1476 = vmatpush.bf16.msra.mxu3 %v2417_v37  ;;  %1425 = vmatpush.bf16.msrb.mxu1 %v2249_v45  ;;  %v2687_v37 = vld [vmem:[%s4114_s11 + $0x19c] sm:$0xf]  ;;  %v2480_v42 = vld [vmem:[%s4114_s11 + $0x210] sm:$0xf]  ;;  %v2546_v12 = vld [vmem:[%s4114_s11 + $0x2b0] sm:$0xf0] }
 0x15f   : > { %1451 = vmatpush.bf16.msrb.mxu0 %v2317_v46  ;;  %1468 = vmatpush.bf16.msrb.mxu2 %v2477_v47  ;;  %v2706_v43 = vld [vmem:[%s4114_s11 + $0x22c] sm:$0xf0]  ;;  %v2654_v46 = vld [vmem:[%s4114_s11 + $0x94] sm:$0xf]  ;;  %v2429_v48 = vor.u32 %v2687_v37, %v2426_v38  ;;  %v1355_v56 = vsel %vm1338_vm0, %v1235_v44, 0  ;;  %v2549_v20 = vor.u32 %v2718_v11, %v2546_v12 }
 0x160   : > { %v2642_v45 = vld [vmem:[%s4114_s11 + $0x2c] sm:$0xf0]  ;;  %v2290_v47 = vld [vmem:[%s4114_s11 + $0xb0] sm:$0xf0]  ;;  %v2362_v5 = vld [vmem:[%s4114_s11 + $0x138] sm:$0xf0] }
 0x161   : > { %v2225_v54 = vor.u32 %v2642_v45, %v2224_v41  ;;  %v2293_v55 = vor.u32 %v2654_v46, %v2290_v47  ;;  %v2365_v15 = vor.u32 %v2671_v4, %v2362_v5  ;;  %v2663_v17 = vld [vmem:[%s4114_s11 + $0xdc] sm:$0xf]  ;;  %v2710_v22 = vld [vmem:[%s4114_s11 + $0x254] sm:$0xf]  ;;  %v2667_v41 = vld [vmem:[%s4114_s11 + $0xf4] sm:$0xf0] }
 0x162   : > { %1477 = vmatpush.bf16.msra.mxu3 %v2385_v50  ;;  %1426 = vmatpush.bf16.msrb.mxu1 %v2217_v60  ;;  %v2699_v50 = vld [vmem:[%s4114_s11 + $0x1f4] sm:$0xf0]  ;;  %v2646_v60 = vld [vmem:[%s4114_s11 + $0x54] sm:$0xf]  ;;  %v2330_v18 = vld [vmem:[%s4114_s11 + $0xf8] sm:$0xf0] }
 0x163   : > { %1503 = vmatpush.bf16.msra.mxu2 %v2453_v51  ;;  %1452 = vmatpush.bf16.msrb.mxu0 %v2285_v61  ;;  %v2481_v51 = vor.u32 %v2706_v43, %v2480_v42  ;;  %v2457_v58 = vor.u32 %v2699_v50, %v2456_v49  ;;  %v2258_v61 = vld [vmem:[%s4114_s11 + $0x70] sm:$0xf0]  ;;  %v2727_v28 = vld [vmem:[%s4114_s11 + $0x2dc] sm:$0xf]  ;;  %v2333_v31 = vor.u32 %v2663_v17, %v2330_v18  ;;  %v2643_v11 = vld [vmem:[%s4114_s11 + $0x34] sm:$0xf0] }
 0x164   : > { %2593 = vmatmul.msk.bf16.vlgmr.msrb.gmra.mxu2 %vm1334_vm1, %v4177_v29  ;;  %v2261_v6 = vor.u32 %v2646_v60, %v2258_v61  ;;  %v2586_v30 = vld [vmem:[%s4114_s11 + $0x2f8] sm:$0xf0]  ;;  %v2702_v37 = vld [vmem:[%s4114_s11 + $0x214] sm:$0xf]  ;;  %v2520_v12 = vld [vmem:[%s4114_s11 + $0x258] sm:$0xf] }
 0x165   : > { %1427 = vmatmul.bf16.vlgmr.msrb.gmra.mxu1 %v4205_v59  ;;  %v2655_v33 = vld [vmem:[%s4114_s11 + $0x9c] sm:$0xf]  ;;  %v2707_v17 = vld [vmem:[%s4114_s11 + $0x234] sm:$0xf0] }
 0x166   : > { %1492 = vmatpush.bf16.msra.mxu1 %v1352_v2  ;;  %1478 = vmatpush.bf16.msra.mxu3 %v2353_v1  ;;  %v2691_v1 = vld [vmem:[%s4114_s11 + $0x1b4] sm:$0xf0]  ;;  %v2397_v2 = vor.u32 %v2679_v52, %v2394_v53  ;;  %v2298_v34 = vld [vmem:[%s4114_s11 + $0xb8] sm:$0xf0] }
 0x167   : > { %1504 = vmatpush.bf16.msra.mxu2 %v2421_v3  ;;  %1453 = vmatpush.bf16.msrb.mxu0 %v2253_v9  ;;  %v1133_v3 = vunpack.c.h.b16 %v812_v57  ;;  %v2425_v8 = vor.u32 %v2691_v1, %v2424_v0  ;;  %v2638_v9 = vld [vmem:[%s4114_s11 + $0x14] sm:$0xf]  ;;  %v2301_v42 = vor.u32 %v2655_v33, %v2298_v34  ;;  %v2719_v43 = vld [vmem:[%s4114_s11 + $0x29c] sm:$0xf]  ;;  %v2659_v52 = vld [vmem:[%s4114_s11 + $0xb4] sm:$0xf0] }
 0x168   : > { %v2554_v44 = vld [vmem:[%s4114_s11 + $0x2b8] sm:$0xf0]  ;;  %v2584_v53 = vld [vmem:[%s4114_s11 + $0x2d8] sm:$0xf] }
 0x169   : > { %v1237_v16 = vpack.c.b16 %v1133_v3, %v1133_v3  ;;  %v2647_v45 = vld [vmem:[%s4114_s11 + $0x5c] sm:$0xf]  ;;  %v2557_v50 = vor.u32 %v2719_v43, %v2554_v44  ;;  %v2264_v0 = vld [vmem:[%s4114_s11 + $0x58] sm:$0xf] }
 0x16a   : > { %1493 = vmatpush.bf16.msra.mxu1 %v2577_v10  ;;  %1479 = vmatpush.bf16.msra.mxu3 %v2321_v13  ;;  %v2226_v10 = vld [vmem:[%s4114_s11 + $0x30] sm:$0xf0]  ;;  %v2392_v13 = vld [vmem:[%s4114_s11 + $0x158] sm:$0xf]  ;;  %v2266_v46 = vld [vmem:[%s4114_s11 + $0x78] sm:$0xf0] }
 0x16b   : > { %1505 = vmatpush.bf16.msra.mxu2 %v2389_v14  ;;  %1454 = vmatpush.bf16.msrb.mxu0 %v2221_v23  ;;  %v2683_v14 = vld [vmem:[%s4114_s11 + $0x174] sm:$0xf0]  ;;  %v2229_v19 = vor.u32 %v2638_v9, %v2226_v10  ;;  %v2514_v23 = vld [vmem:[%s4114_s11 + $0x270] sm:$0xf0]  ;;  %v1361_v32 = vsel %vm1338_vm0, %v1237_v16, 0 }
 0x16c   : > { %v2393_v21 = vor.u32 %v2683_v14, %v2392_v13  ;;  %v2517_v35 = vor.u32 %v2710_v22, %v2514_v23  ;;  %v2234_v60 = vld [vmem:[%s4114_s11 + $0x38] sm:$0xf0]  ;;  %v2651_v1 = vld [vmem:[%s4114_s11 + $0x74] sm:$0xf0] }
 0x16d   : > { %v2723_v3 = vld [vmem:[%s4114_s11 + $0x2b4] sm:$0xf0]  ;;  %v2703_v4 = vld [vmem:[%s4114_s11 + $0x21c] sm:$0xf] }
 0x16e   : > { %1494 = vmatpush.bf16.msra.mxu1 %v2545_v24  ;;  %1480 = vmatpush.bf16.msra.mxu3 %v2289_v25  ;;  %v2360_v24 = vld [vmem:[%s4114_s11 + $0x118] sm:$0xf]  ;;  %v1132_v25 = vunpack.c.l.b16 %v812_v57  ;;  %v2269_v57 = vor.u32 %v2647_v45, %v2266_v46  ;;  %v2490_v5 = vld [vmem:[%s4114_s11 + $0x238] sm:$0xf0] }
 0x16f   : > { %1506 = vmatpush.bf16.msra.mxu2 %v2357_v26  ;;  %1559 = vmatpush.bf16.msra.mxu0 %v2461_v36  ;;  %v2675_v26 = vld [vmem:[%s4114_s11 + $0x134] sm:$0xf0]  ;;  %v2493_v9 = vor.u32 %v2703_v4, %v2490_v5 }
 0x170   : > { %1455 = vmatmul.bf16.vlgmr.msrb.gmra.mxu0 %v4205_v59  ;;  %v2361_v36 = vor.u32 %v2675_v26, %v2360_v24  ;;  %v1236_v38 = vpack.c.b16 %v1132_v25, %v1132_v25  ;;  %v2232_v10 = vld [vmem:[%s4114_s11 + $0x18] sm:$0xf] }
 0x171   : > { %v2715_v13 = vld [vmem:[%s4114_s11 + $0x274] sm:$0xf0]  ;;  %v2233_v14 = vor.u32 %v2643_v11, %v2232_v10 }
 0x172   : > { %1495 = vmatpush.bf16.msra.mxu1 %v2513_v39  ;;  %1481 = vmatpush.bf16.msra.mxu3 %v2257_v40  ;;  %v2589_v39 = vor.u32 %v2727_v28, %v2586_v30  ;;  %v2482_v40 = vld [vmem:[%s4114_s11 + $0x230] sm:$0xf0]  ;;  %v1358_v49 = vsel %vm1338_vm0, %v1236_v38, 0  ;;  %v2488_v16 = vld [vmem:[%s4114_s11 + $0x218] sm:$0xf] }
 0x173   : > { %1507 = vmatpush.bf16.msra.mxu2 %v2325_v27  ;;  %1560 = vmatpush.bf16.msra.mxu0 %v2429_v48  ;;  %v2328_v27 = vld [vmem:[%s4114_s11 + $0xd8] sm:$0xf]  ;;  %v2485_v47 = vor.u32 %v2702_v37, %v2482_v40  ;;  %v2489_v18 = vor.u32 %v2707_v17, %v2488_v16 }
 0x174   : > { %v2329_v48 = vor.u32 %v2667_v41, %v2328_v27 }
 0x176   : > { %1496 = vmatpush.bf16.msra.mxu1 %v2481_v51  ;;  %1482 = vmatpush.bf16.msra.mxu3 %v2225_v54  ;;  %v2296_v51 = vld [vmem:[%s4114_s11 + $0x98] sm:$0xf] }
 0x177   : > { %1508 = vmatpush.bf16.msra.mxu2 %v2293_v55  ;;  %1561 = vmatpush.bf16.msra.mxu0 %v2397_v2  ;;  %v2731_v54 = vld [vmem:[%s4114_s11 + $0x2f4] sm:$0xf0]  ;;  %v2711_v55 = vld [vmem:[%s4114_s11 + $0x25c] sm:$0xf]  ;;  %v2297_v61 = vor.u32 %v2659_v52, %v2296_v51 }
 0x178   : > { %v2585_v62 = vor.u32 %v2731_v54, %v2584_v53  ;;  %v2552_v2 = vld [vmem:[%s4114_s11 + $0x298] sm:$0xf] }
 0x179   : > { %2594 = vmatmul.msk.bf16.vlgmr.msra.gmra.mxu1 %vm1334_vm1, %v4177_v29  ;;  %1483 = vmatmul.bf16.vlgmr.msra.gmra.mxu3 %v4205_v59 }
 0x17a   : > { %1520 = vmatpush.bf16.msrb.mxu3 %v1355_v56  ;;  %1531 = vmatpush.bf16.msrb.mxu1 %v2457_v58  ;;  %v2522_v56 = vld [vmem:[%s4114_s11 + $0x278] sm:$0xf0] }
 0x17b   : > { %1509 = vmatpush.bf16.msra.mxu2 %v2261_v6  ;;  %1562 = vmatpush.bf16.msra.mxu0 %v2365_v15  ;;  %v2639_v58 = vld [vmem:[%s4114_s11 + $0x1c] sm:$0xf]  ;;  %v2525_v63 = vor.u32 %v2711_v55, %v2522_v56  ;;  %v2521_v15 = vor.u32 %v2715_v13, %v2520_v12 }
 0x17c   : > { %v2237_v6 = vor.u32 %v2639_v58, %v2234_v60 }
 0x17e   : > { %1521 = vmatpush.bf16.msrb.mxu3 %v2581_v7  ;;  %1532 = vmatpush.bf16.msrb.mxu1 %v2425_v8  ;;  %v2265_v7 = vor.u32 %v2651_v1, %v2264_v0  ;;  %v2553_v8 = vor.u32 %v2723_v3, %v2552_v2 }
 0x17f   : > { %1510 = vmatpush.bf16.msra.mxu2 %v2229_v19  ;;  %1563 = vmatpush.bf16.msra.mxu0 %v2333_v31 }
 0x182   : > { %1522 = vmatpush.bf16.msrb.mxu3 %v2549_v20  ;;  %1533 = vmatpush.bf16.msrb.mxu1 %v2393_v21 }
 0x183   : > { %1576 = vmatpush.bf16.msrb.mxu2 %v1361_v32  ;;  %1564 = vmatpush.bf16.msra.mxu0 %v2301_v42 }
 0x184   : > { %1511 = vmatmul.bf16.vlgmr.msra.gmra.mxu2 %v4205_v59 }
 0x186   : > { %1523 = vmatpush.bf16.msrb.mxu3 %v2517_v35  ;;  %1534 = vmatpush.bf16.msrb.mxu1 %v2361_v36 }
 0x187   : > { %1577 = vmatpush.bf16.msrb.mxu2 %v2589_v39  ;;  %1565 = vmatpush.bf16.msra.mxu0 %v2269_v57 }
 0x18a   : > { %1524 = vmatpush.bf16.msrb.mxu3 %v2485_v47  ;;  %1535 = vmatpush.bf16.msrb.mxu1 %v2329_v48 }
 0x18b   : > { %1578 = vmatpush.bf16.msrb.mxu2 %v2557_v50  ;;  %1566 = vmatpush.bf16.msra.mxu0 %v2237_v6 }
 0x18d   : > { %2595 = vmatmul.msk.bf16.vlgmr.msrb.gmra.mxu3 %vm1334_vm1, %v4177_v29 }
 0x18e   : > { %1548 = vmatpush.bf16.msra.mxu3 %v1358_v49  ;;  %1536 = vmatpush.bf16.msrb.mxu1 %v2297_v61 }
 0x18f   : > { %1579 = vmatpush.bf16.msrb.mxu2 %v2525_v63  ;;  %1567 = vmatmul.bf16.vlgmr.msra.gmra.mxu0 %v4205_v59 }
 0x192   : > { %1549 = vmatpush.bf16.msra.mxu3 %v2585_v62  ;;  %1537 = vmatpush.bf16.msrb.mxu1 %v2265_v7 }
 0x193   : > { %1580 = vmatpush.bf16.msrb.mxu2 %v2493_v9 }
 0x196   : > { %1550 = vmatpush.bf16.msra.mxu3 %v2553_v8  ;;  %2597 = vmatmul.msk.bf16.vlgmr.msrb.gmra.mxu2 %vm1334_vm1, %v4177_v29 }
 0x197   : > { %1538 = vmatpush.bf16.msrb.mxu1 %v2233_v14 }
 0x19a   : > { %1551 = vmatpush.bf16.msra.mxu3 %v2521_v15  ;;  %1539 = vmatmul.bf16.vlgmr.msrb.gmra.mxu1 %v4205_v59 }
 0x19e   : > { %1552 = vmatpush.bf16.msra.mxu3 %v2489_v18 }
 0x1a1   : > { %2596 = vmatmul.msk.bf16.vlgmr.msra.gmra.mxu3 %vm1334_vm1, %v4177_v29 }
 0x1ba   : > { %v4370_v19 = vpop.permute.xlu0 %817 }
 0x1c2   : > { %v1386_v20 = vpop.f32.mrf.mxu1 }
 0x1c3   : > { %v4373_v26 = vpop.permute.xlu0 %822 }
 0x1c8   : > { %v1414_v24 = vpop.f32.mrf.mxu3 }
 0x1ca   : > { %v1388_v29 = vpop.f32.mrf.mxu1 }
 0x1cd   : > { %v1372_v21 = vpop.f32.mrf.mxu0 }
 0x1ce   : > { %v1373_v22 = vadd.f32 %v1372_v21, %v4370_v19 }
 0x1d0   : > { %v1387_v23 = vadd.f32 %v1386_v20, %v1373_v22  ;;  %v1416_v38 = vpop.f32.mrf.mxu3 }
 0x1d2   : > { %v1603_v28 = vmul.f32 0.01, %v1387_v23  ;;  %vm1587_vm2 = vcmp.gt.f32.partialorder %v1387_v23, 0.0 }
 0x1d3   : > { %v1400_v25 = vpop.f32.mrf.mxu2 }
 0x1d4   : > { %v1401_v30 = vadd.f32 %v1400_v25, %v4370_v19  ;;  %v1619_v33 = vsel %vm1587_vm2, %v1387_v23, %v1603_v28 }
 0x1d5   : > { %v1374_v59 = vpop.f32.mrf.mxu0 }
 0x1d6   : > { %v1415_v31 = vadd.f32 %v1414_v24, %v1401_v30  ;;  %v1375_v32 = vadd.f32 %v1374_v59, %v4373_v26 }
 0x1d8   : > { %vm1588_vm3 = vcmp.gt.f32.partialorder %v1415_v31, 0.0  ;;  %v1604_v34 = vmul.f32 0.01, %v1415_v31  ;;  %v1389_v35 = vadd.f32 %v1388_v29, %v1375_v32 }
 0x1da   : > { %v1620_v36 = vsel %vm1588_vm3, %v1415_v31, %v1604_v34  ;;  %v1611_v40 = vmul.f32 0.01, %v1389_v35  ;;  %vm1595_vm4 = vcmp.gt.f32.partialorder %v1389_v35, 0.0 }
 0x1db   : > { %v1635_v37 = vpack.c.bf16 %v1620_v36, %v1619_v33  ;;  %v1402_v39 = vpop.f32.mrf.mxu2 }
 0x1dc   : > { %v1403_v27 = vadd.f32 %v1402_v39, %v4373_v26  ;;  %v1627_v42 = vsel %vm1595_vm4, %v1389_v35, %v1611_v40  ;;  %v1442_v47 = vpop.f32.mrf.mxu3 }
 0x1dd   : > { %1643 = vst [vmem:[%s4380_s6] sm:$0xff] %v1635_v37 }
 0x1de   : > { %v1417_v41 = vadd.f32 %v1416_v38, %v1403_v27 }
 0x1e0   : > { %vm1596_vm5 = vcmp.gt.f32.partialorder %v1417_v41, 0.0  ;;  %v1612_v43 = vmul.f32 0.01, %v1417_v41 }
 0x1e2   : > { %v1628_v44 = vsel %vm1596_vm5, %v1417_v41, %v1612_v43  ;;  %v1428_v45 = vpop.f32.mrf.mxu1 }
 0x1e3   : > { %v1639_v46 = vpack.c.bf16 %v1628_v44, %v1627_v42  ;;  %v1429_v48 = vadd.f32 %v1428_v45, %v4370_v19 }
 0x1e4   : > { %v1444_v57 = vpop.f32.mrf.mxu3 }
 0x1e5   : > { %1647 = vst [vmem:[%s4380_s6 + $0x20] sm:$0xff] %v1639_v46  ;;  %v1443_v50 = vadd.f32 %v1442_v47, %v1429_v48 }
 0x1e7   : > { %v1470_v49 = vpop.f32.mrf.mxu2  ;;  %v1605_v54 = vmul.f32 0.01, %v1443_v50  ;;  %vm1589_vm6 = vcmp.gt.f32.partialorder %v1443_v50, 0.0 }
 0x1e9   : > { %v1621_v60 = vsel %vm1589_vm6, %v1443_v50, %v1605_v54 }
 0x1ea   : > { %v1430_v51 = vpop.f32.mrf.mxu1 }
 0x1eb   : > { %v1431_v55 = vadd.f32 %v1430_v51, %v4373_v26 }
 0x1ed   : > { %v1456_v52 = vpop.f32.mrf.mxu0  ;;  %v1445_v61 = vadd.f32 %v1444_v57, %v1431_v55 }
 0x1ee   : > { %v1457_v53 = vadd.f32 %v1456_v52, %v4370_v19 }
 0x1ef   : > { %v1472_v1 = vpop.f32.mrf.mxu2  ;;  %v1613_v3 = vmul.f32 0.01, %v1445_v61  ;;  %vm1597_vm8 = vcmp.gt.f32.partialorder %v1445_v61, 0.0 }
 0x1f0   : > { %v1471_v56 = vadd.f32 %v1470_v49, %v1457_v53 }
 0x1f1   : > { %v1629_v6 = vsel %vm1597_vm8, %v1445_v61, %v1613_v3 }
 0x1f2   : > { %vm1590_vm7 = vcmp.gt.f32.partialorder %v1471_v56, 0.0  ;;  %v1606_v58 = vmul.f32 0.01, %v1471_v56 }
 0x1f4   : > { %v1622_v62 = vsel %vm1590_vm7, %v1471_v56, %v1606_v58 }
 0x1f5   : > { %v1636_v63 = vpack.c.bf16 %v1622_v62, %v1621_v60  ;;  %v1458_v0 = vpop.f32.mrf.mxu0 }
 0x1f6   : > { %v1459_v2 = vadd.f32 %v1458_v0, %v4373_v26  ;;  %v1498_v12 = vpop.f32.mrf.mxu1 }
 0x1f7   : > { %1644 = vst [vmem:[%s4380_s6 + $0x8] sm:$0xff] %v1636_v63 }
 0x1f8   : > { %v1473_v4 = vadd.f32 %v1472_v1, %v1459_v2 }
 0x1fa   : > { %vm1598_vm9 = vcmp.gt.f32.partialorder %v1473_v4, 0.0  ;;  %v1614_v5 = vmul.f32 0.01, %v1473_v4 }
 0x1fc   : > { %v1630_v7 = vsel %vm1598_vm9, %v1473_v4, %v1614_v5  ;;  %v1484_v8 = vpop.f32.mrf.mxu3 }
 0x1fd   : > { %v1640_v9 = vpack.c.bf16 %v1630_v7, %v1629_v6  ;;  %v1485_v13 = vadd.f32 %v1484_v8, %v4370_v19 }
 0x1fe   : > { %v1500_v22 = vpop.f32.mrf.mxu1 }
 0x1ff   : > { %1648 = vst [vmem:[%s4380_s6 + $0x28] sm:$0xff] %v1640_v9  ;;  %v1499_v14 = vadd.f32 %v1498_v12, %v1485_v13 }
 0x201   : > { %v1607_v18 = vmul.f32 0.01, %v1499_v14  ;;  %vm1591_vm10 = vcmp.gt.f32.partialorder %v1499_v14, 0.0 }
 0x203   : > { %v1623_v24 = vsel %vm1591_vm10, %v1499_v14, %v1607_v18 }
 0x204   : > { %v1486_v10 = vpop.f32.mrf.mxu3 }
 0x205   : > { %v1487_v20 = vadd.f32 %v1486_v10, %v4373_v26 }
 0x207   : > { %v1512_v11 = vpop.f32.mrf.mxu2  ;;  %v1501_v25 = vadd.f32 %v1500_v22, %v1487_v20 }
 0x208   : > { %v1513_v15 = vadd.f32 %v1512_v11, %v4370_v19 }
 0x209   : > { %v1615_v29 = vmul.f32 0.01, %v1501_v25  ;;  %vm1599_vm12 = vcmp.gt.f32.partialorder %v1501_v25, 0.0 }
 0x20b   : > { %v1631_v38 = vsel %vm1599_vm12, %v1501_v25, %v1615_v29 }
 0x20c   : > { %v1568_v30 = vpop.f32.mrf.mxu0 }
 0x20d   : > { %v1569_v35 = vadd.f32 %v1568_v30, %v4370_v19 }
 0x20f   : > { %v1514_v16 = vpop.f32.mrf.mxu2 }
 0x210   : > { %v1526_v17 = vpop.f32.mrf.mxu3  ;;  %v1515_v31 = vadd.f32 %v1514_v16, %v4373_v26 }
 0x211   : > { %v1527_v21 = vadd.f32 %v1526_v17, %v1513_v15 }
 0x213   : > { %vm1592_vm11 = vcmp.gt.f32.partialorder %v1527_v21, 0.0  ;;  %v1608_v23 = vmul.f32 0.01, %v1527_v21 }
 0x214   : > { %v1570_v42 = vpop.f32.mrf.mxu0 }
 0x215   : > { %v1624_v28 = vsel %vm1592_vm11, %v1527_v21, %v1608_v23  ;;  %v1571_v45 = vadd.f32 %v1570_v42, %v4373_v26 }
 0x216   : > { %v1637_v59 = vpack.c.bf16 %v1624_v28, %v1623_v24 }
 0x217   : > { %v1540_v36 = vpop.f32.mrf.mxu1 }
 0x218   : > { %1645 = vst [vmem:[%s4380_s6 + $0x10] sm:$0xff] %v1637_v59  ;;  %v1528_v32 = vpop.f32.mrf.mxu3  ;;  %v1541_v40 = vadd.f32 %v1540_v36, %v4370_v19 }
 0x219   : > { %v1529_v33 = vadd.f32 %v1528_v32, %v1515_v31  ;;  %v1582_v34 = vpop.f32.mrf.mxu2 }
 0x21a   : > { %v1583_v41 = vadd.f32 %v1582_v34, %v1569_v35 }
 0x21b   : > { %vm1600_vm13 = vcmp.gt.f32.partialorder %v1529_v33, 0.0  ;;  %v1616_v37 = vmul.f32 0.01, %v1529_v33 }
 0x21c   : > { %v1610_v44 = vmul.f32 0.01, %v1583_v41  ;;  %vm1594_vm14 = vcmp.gt.f32.partialorder %v1583_v41, 0.0 }
 0x21d   : > { %v1632_v39 = vsel %vm1600_vm13, %v1529_v33, %v1616_v37 }
 0x21e   : > { %v1641_v27 = vpack.c.bf16 %v1632_v39, %v1631_v38  ;;  %v1626_v50 = vsel %vm1594_vm14, %v1583_v41, %v1610_v44 }
 0x21f   : > { %v1542_v49 = vpop.f32.mrf.mxu1 }
 0x220   : > { %1649 = vst [vmem:[%s4380_s6 + $0x30] sm:$0xff] %v1641_v27  ;;  %v1543_v53 = vadd.f32 %v1542_v49, %v4373_v26 }
 0x221   : > { %v1584_v47 = vpop.f32.mrf.mxu2 }
 0x222   : > { %v1585_v52 = vadd.f32 %v1584_v47, %v1571_v45 }
 0x224   : > { %v1554_v43 = vpop.f32.mrf.mxu3  ;;  %v1618_v55 = vmul.f32 0.01, %v1585_v52  ;;  %vm1602_vm0 = vcmp.gt.f32.partialorder %v1585_v52, 0.0 }
 0x225   : > { %v1555_v46 = vadd.f32 %v1554_v43, %v1541_v40 }
 0x226   : > { %v1634_v58 = vsel %vm1602_vm0, %v1585_v52, %v1618_v55 }
 0x227   : > { %vm1593_vm15 = vcmp.gt.f32.partialorder %v1555_v46, 0.0  ;;  %v1609_v48 = vmul.f32 0.01, %v1555_v46 }
 0x229   : > { %v1625_v51 = vsel %vm1593_vm15, %v1555_v46, %v1609_v48 }
 0x22a   : > { %v1638_v19 = vpack.c.bf16 %v1626_v50, %v1625_v51 }
 0x22c   : > { %1646 = vst [vmem:[%s4380_s6 + $0x18] sm:$0xff] %v1638_v19  ;;  %v1556_v54 = vpop.f32.mrf.mxu3 }
 0x22d   : > { %v1557_v56 = vadd.f32 %v1556_v54, %v1543_v53 }
 0x22f   : > { %vm1601_vm1 = vcmp.gt.f32.partialorder %v1557_v56, 0.0  ;;  %v1617_v57 = vmul.f32 0.01, %v1557_v56 }
 0x230   : > { %1657 = sbr.rel (!%p3361_p5) target bundleno = 715 (0x2cb), region = 102 }
 0x231   : > { %v1633_v60 = vsel %vm1601_vm1, %v1557_v56, %v1617_v57 }
 0x232   : > { %v1642_v61 = vpack.c.bf16 %v1634_v58, %v1633_v60 }
 0x234   : > { %1650 = vst [vmem:[%s4380_s6 + $0x38] sm:$0xff] %v1642_v61 }
 0x235   : > { %s4729_s5 = smov (!%p1660_p1, %s1659_s5), 8 }
 0x236   : > { %s2600_s7 = sshll.u32 %s4729_s5, 3  ;;  %s4411_s11 = sshll.u32 %s4729_s5, 2 }
 0x237   : > { %p2604_p2 = scmp.eq.s32.totalorder %s2600_s7, 0 }
 0x238   : > { %p1670_p3 = scmp.lt.u32.totalorder (!%p2604_p2), %s4411_s11, 8 }
 0x239   : > { %1669 = sbr.rel (%p2604_p2) target bundleno = 715 (0x2cb), region = 106 }
 0x23e   : > { %1673 = sbr.rel (%p1670_p3) target bundleno = 705 (0x2c1), region = 110  ;;  %s4415_s20 = sand.u32 (!%p1670_p3), 7, %s4411_s11  }
 0x23f   : > { %p1692_p5 = scmp.eq.s32.totalorder (!%p1670_p3), %s4415_s20, 0  ;;  %p2605_p4 = scmp.ne.s32.totalorder (!%p1670_p3), %s4415_s20, 0 }
 0x243   : > { %1695 = sbr.rel (%p2605_p4) target bundleno = 639 (0x27f), region = 125  ;;  %s1696_s15 = sshrl.u32 (!%p2605_p4), %s4411_s11, 3 }
 0x244   : > { %s4422_s14 = sshrl.u32 (!%p2605_p4), %s1696_s15, 4 }
 0x245   : > { %p2606_p6 = scmp.le.s32.totalorder (!%p2605_p4), %s4422_s14, 0 }
 0x248   : > { %2094 = sbr.rel (%p2606_p6) target bundleno = 622 (0x26e), region = 273  ;;  %s4705_s28 = smov (!%p2606_p6), %s4409_s30 }
 0x249   : > { %s4706_s4 = smov (!%p2606_p6), %s4380_s6  ;;  %s4431_s17 = smov (!%p2606_p6), 0  }
 0x24a   : > { %s4433_s27 = smov (!%p2606_p6), 0  }
 0x24d LB: >> { %v1733_v26 = vld [vmem:[%s3247_s4 + $0x68] sm:$0xff]  ;;  %v1735_v62 = vld [vmem:[%s3247_s4 + $0x70] sm:$0xff]  ;;  %v1737_v63 = vld [vmem:[%s3247_s4 + $0x78] sm:$0xff]  ;;  %s1771_s23 = sadd.s32 1, %s3251_s17  ;;  %s1701_s27 = sadd.s32 1, %s3255_s27   ;;  %s3255_s27 = sphi %s4433_s27, %s1701_s27   ;;  %s3251_s17 = sphi %s4431_s17, %s4709_s17   ;;  %s3247_s4 = sphi %s4706_s4, %s4708_s4   ;;  %s3243_s28 = sphi %s4705_s28, %s4707_s28  }
 0x24e   : >> { %1734 = vst [vmem:[%s3243_s28 + $0x68] sm:$0xff] %v1733_v26  ;;  %v1707_v0 = vld [vmem:[%s3247_s4] sm:$0xff]  ;;  %v1709_v1 = vld [vmem:[%s3247_s4 + $0x8] sm:$0xff]  ;;  %v1711_v2 = vld [vmem:[%s3247_s4 + $0x10] sm:$0xff]  ;;  %p1772_p7 = scmp.ge.s32.totalorder %s1771_s23, %s4422_s14  ;;  %p1700_p8 = scmp.ge.s32.totalorder %s1701_s27, %s4422_s14 }
 0x24f   : >> { %1736 = vst [vmem:[%s3243_s28 + $0x70] sm:$0xff] %v1735_v62  ;;  %v1713_v3 = vld [vmem:[%s3247_s4 + $0x18] sm:$0xff]  ;;  %v1715_v4 = vld [vmem:[%s3247_s4 + $0x20] sm:$0xff]  ;;  %v1717_v5 = vld [vmem:[%s3247_s4 + $0x28] sm:$0xff] }
 0x250   : >> { %1738 = vst [vmem:[%s3243_s28 + $0x78] sm:$0xff] %v1737_v63  ;;  %s4731_s23 = smov (%p1772_p7, %s1771_s23), 0  ;;  %v1719_v6 = vld [vmem:[%s3247_s4 + $0x30] sm:$0xff]  ;;  %v1721_v7 = vld [vmem:[%s3247_s4 + $0x38] sm:$0xff]  ;;  %v1723_v8 = vld [vmem:[%s3247_s4 + $0x40] sm:$0xff] }
 0x251   : >> { %1708 = vst [vmem:[%s3243_s28] sm:$0xff] %v1707_v0  ;;  %s2607_s25 = sshll.u32 %s4731_s23, 7  ;;  %v1725_v9 = vld [vmem:[%s3247_s4 + $0x48] sm:$0xff]  ;;  %v1727_v10 = vld [vmem:[%s3247_s4 + $0x50] sm:$0xff]  ;;  %v1729_v11 = vld [vmem:[%s3247_s4 + $0x58] sm:$0xff]  ;;  %s4709_s17 = smov %s4731_s23 }
 0x252   : >> { %1710 = vst [vmem:[%s3243_s28 + $0x8] sm:$0xff] %v1709_v1  ;;  %s4469_s26 = scalar_lea.vmem %s4380_s6, %s2607_s25 [#allocation3]   ;;  %s4472_s18 = scalar_lea.vmem %s4409_s30, %s2607_s25   ;;  %v1731_v12 = vld [vmem:[%s3247_s4 + $0x60] sm:$0xff]  ;;  %v1765_v14 = vld [vmem:[%s3247_s4 + $0x88] sm:$0xff]  ;;  %v1767_v15 = vld [vmem:[%s3247_s4 + $0x90] sm:$0xff] }
 0x253   : >> { %1712 = vst [vmem:[%s3243_s28 + $0x10] sm:$0xff] %v1711_v2  ;;  %v1763_v13 = vld [vmem:[%s3247_s4 + $0x80] sm:$0xff]  ;;  %v1769_v16 = vld [vmem:[%s3247_s4 + $0x98] sm:$0xff]  ;;  %s4708_s4 = smov %s4469_s26 }
 0x254   : >> { %1714 = vst [vmem:[%s3243_s28 + $0x18] sm:$0xff] %v1713_v3 }
 0x255   : >> { %1716 = vst [vmem:[%s3243_s28 + $0x20] sm:$0xff] %v1715_v4 }
 0x256   : >> { %1718 = vst [vmem:[%s3243_s28 + $0x28] sm:$0xff] %v1717_v5 }
 0x257   : >> { %1720 = vst [vmem:[%s3243_s28 + $0x30] sm:$0xff] %v1719_v6 }
 0x258   : >> { %1722 = vst [vmem:[%s3243_s28 + $0x38] sm:$0xff] %v1721_v7 }
 0x259   : >> { %1724 = vst [vmem:[%s3243_s28 + $0x40] sm:$0xff] %v1723_v8 }
 0x25a   : >> { %1726 = vst [vmem:[%s3243_s28 + $0x48] sm:$0xff] %v1725_v9 }
 0x25b   : >> { %1728 = vst [vmem:[%s3243_s28 + $0x50] sm:$0xff] %v1727_v10 }
 0x25c   : >> { %1730 = vst [vmem:[%s3243_s28 + $0x58] sm:$0xff] %v1729_v11 }
 0x25d   : >> { %1732 = vst [vmem:[%s3243_s28 + $0x60] sm:$0xff] %v1731_v12 }
 0x25e   : >> { %1740 = vst [vmem:[%s3243_s28 + $0x6c] sm:$0xff] %v1715_v4 }
 0x25f   : >> { %1742 = vst [vmem:[%s3243_s28 + $0x74] sm:$0xff] %v1717_v5 }
 0x260   : >> { %1744 = vst [vmem:[%s3243_s28 + $0x7c] sm:$0xff] %v1719_v6 }
 0x261   : >> { %1746 = vst [vmem:[%s3243_s28 + $0x84] sm:$0xff] %v1721_v7 }
 0x262   : >> { %1748 = vst [vmem:[%s3243_s28 + $0x8c] sm:$0xff] %v1723_v8 }
 0x263   : >> { %1750 = vst [vmem:[%s3243_s28 + $0x94] sm:$0xff] %v1725_v9 }
 0x264   : >> { %1752 = vst [vmem:[%s3243_s28 + $0x9c] sm:$0xff] %v1727_v10 }
 0x265   : >> { %1754 = vst [vmem:[%s3243_s28 + $0xa4] sm:$0xff] %v1729_v11 }
 0x266   : >> { %1756 = vst [vmem:[%s3243_s28 + $0xac] sm:$0xff] %v1731_v12 }
 0x267   : >> { %1758 = vst [vmem:[%s3243_s28 + $0xb4] sm:$0xff] %v1733_v26 }
 0x268   : >> { %1760 = vst [vmem:[%s3243_s28 + $0xbc] sm:$0xff] %v1735_v62 }
 0x269   : >> { %1762 = vst [vmem:[%s3243_s28 + $0xc4] sm:$0xff] %v1737_v63  ;;  %1703 = sbr.rel (!%p1700_p8) target bundleno = 589 (0x24d), region = 279 }
 0x26a   : >> { %1764 = vst [vmem:[%s3243_s28 + $0xcc] sm:$0xff] %v1763_v13 }
 0x26b   : >> { %1766 = vst [vmem:[%s3243_s28 + $0xd4] sm:$0xff] %v1765_v14 }
 0x26c   : >> { %1768 = vst [vmem:[%s3243_s28 + $0xdc] sm:$0xff] %v1767_v15 }
 0x26d   : >> { %1770 = vst [vmem:[%s3243_s28 + $0xe4] sm:$0xff] %v1769_v16  ;;  %s4707_s28 = smov %s4472_s18 }
 0x26e PF: > { %s4522_s24 = sand.u32 15, %s1696_s15   ;;  %s2733_s29 = sshll.u32 %s4422_s14, 7 }
 0x26f   : > { %s4526_s8 = scalar_lea.vmem %s4380_s6, %s2733_s29 [#allocation3]   ;;  %s1784_s9 = scalar_lea.vmem %s4409_s30, %s2733_s29  }
 0x270   : > { %p2612_p9 = scmp.le.s32.totalorder %s4522_s24, 0 }
 0x271   : > { %s3257_s12 = smov (!%p2612_p9), %s1784_s9   ;;  %s3261_s10 = smov (!%p2612_p9), %s4526_s8  }
 0x272   : > { %2108 = sbr.rel (%p2612_p9) target bundleno = 639 (0x27f), region = 284  ;;  %s3265_s5 = smov (!%p2612_p9), 0  }
 0x273   : > { %s3269_s21 = smov (!%p2612_p9), 0  }
 0x277 LB: >> { %v1794_v17 = vld [vmem:[%s3263_s10] sm:$0xff]  ;;  %s1798_s22 = sadd.s32 1, %s3267_s5  ;;  %s1788_s21 = sadd.s32 1, %s3271_s21   ;;  %s3271_s21 = sphi %s3269_s21, %s1788_s21   ;;  %s3267_s5 = sphi %s3265_s5, %s3266_s5   ;;  %s3263_s10 = sphi %s3261_s10, %s1803_s10   ;;  %s3259_s12 = sphi %s3257_s12, %s1804_s12  }
 0x278   : >> { %v1796_v18 = vld [vmem:[%s3263_s10 + $0x20] sm:$0xff]  ;;  %1795 = vst [vmem:[%s3259_s12] sm:$0xff] %v1794_v17  ;;  %p1799_p10 = scmp.ge.s32.totalorder %s1798_s22, %s4522_s24  ;;  %p1787_p11 = scmp.ge.s32.totalorder %s1788_s21, %s4522_s24 }
 0x279   : >> { %1797 = vst [vmem:[%s3259_s12 + $0x6c] sm:$0xff] %v1796_v18 }
 0x27a   : >> { %s4733_s22 = smov (%p1799_p10, %s1798_s22), 0  ;;  %1790 = sbr.rel (!%p1787_p11) target bundleno = 631 (0x277), region = 290 }
 0x27b   : >> { %s2613_s7 = sshll.u32 %s4733_s22, 3  ;;  %s3266_s5 = smov %s4733_s22  }
 0x27c   : >> { %s1803_s10 = scalar_lea.vmem %s4526_s8, %s2613_s7 [#allocation3]   ;;  %s1804_s12 = scalar_lea.vmem %s1784_s9, %s2613_s7  }
 0x27f PF: > { %1807 = sbr.rel (%p1692_p5) target bundleno = 705 (0x2c1), region = 143  ;;  %s1809_s15 = ssub.s32 (!%p1692_p5), %s4411_s11, %s4415_s20 }
 0x280   : > { %s1813_s14 = sshrl.u32 (!%p1692_p5), %s4411_s11, 3  ;;  %s4540_s28 = scalar_lea.vmem (!%p1692_p5), %s4380_s6, %s1809_s15 [#allocation3] }
 0x281   : > { %s4543_s4 = scalar_lea.vmem (!%p1692_p5), %s4409_s30, %s1809_s15  ;;  %s4547_s17 = sshrl.u32 (!%p1692_p5), %s1813_s14, 4 }
 0x282   : > { %p2615_p12 = scmp.le.s32.totalorder (!%p1692_p5), %s4547_s17, 0 }
 0x284   : > { %2122 = sbr.rel (%p2615_p12) target bundleno = 682 (0x2aa), region = 295  ;;  %s4710_s27 = smov (!%p2615_p12), %s4409_s30 }
 0x285   : > { %s4711_s23 = smov (!%p2615_p12), %s4380_s6  ;;  %s4556_s25 = smov (!%p2615_p12), 0  }
 0x286   : > { %s4558_s26 = smov (!%p2615_p12), 0  }
 0x289 LB: >> { %v1850_v20 = vld [vmem:[%s3279_s23 + $0x68] sm:$0xff]  ;;  %v1852_v21 = vld [vmem:[%s3279_s23 + $0x70] sm:$0xff]  ;;  %v1854_v22 = vld [vmem:[%s3279_s23 + $0x78] sm:$0xff]  ;;  %s1888_s18 = sadd.s32 1, %s3283_s25  ;;  %s1818_s26 = sadd.s32 1, %s3287_s26   ;;  %s3287_s26 = sphi %s4558_s26, %s1818_s26   ;;  %s3283_s25 = sphi %s4556_s25, %s4714_s25   ;;  %s3279_s23 = sphi %s4711_s23, %s4713_s23   ;;  %s3275_s27 = sphi %s4710_s27, %s4712_s27  }
 0x28a   : >> { %1851 = vst [vmem:[%s3275_s27 + $0x68] sm:$0xff] %v1850_v20  ;;  %v1824_v23 = vld [vmem:[%s3279_s23] sm:$0xff]  ;;  %v1826_v24 = vld [vmem:[%s3279_s23 + $0x8] sm:$0xff]  ;;  %v1828_v25 = vld [vmem:[%s3279_s23 + $0x10] sm:$0xff]  ;;  %p1889_p13 = scmp.ge.s32.totalorder %s1888_s18, %s4547_s17  ;;  %p1817_p0 = scmp.ge.s32.totalorder %s1818_s26, %s4547_s17 }
 0x28b   : >> { %1853 = vst [vmem:[%s3275_s27 + $0x70] sm:$0xff] %v1852_v21  ;;  %v1830_v28 = vld [vmem:[%s3279_s23 + $0x18] sm:$0xff]  ;;  %v1832_v30 = vld [vmem:[%s3279_s23 + $0x20] sm:$0xff]  ;;  %v1834_v59 = vld [vmem:[%s3279_s23 + $0x28] sm:$0xff] }
 0x28c   : >> { %1855 = vst [vmem:[%s3275_s27 + $0x78] sm:$0xff] %v1854_v22  ;;  %s4735_s18 = smov (%p1889_p13, %s1888_s18), 0  ;;  %v1836_v31 = vld [vmem:[%s3279_s23 + $0x30] sm:$0xff]  ;;  %v1838_v32 = vld [vmem:[%s3279_s23 + $0x38] sm:$0xff]  ;;  %v1840_v29 = vld [vmem:[%s3279_s23 + $0x40] sm:$0xff] }
 0x28d   : >> { %1825 = vst [vmem:[%s3275_s27] sm:$0xff] %v1824_v23  ;;  %s2616_s24 = sshll.u32 %s4735_s18, 7  ;;  %v1842_v33 = vld [vmem:[%s3279_s23 + $0x48] sm:$0xff]  ;;  %v1844_v34 = vld [vmem:[%s3279_s23 + $0x50] sm:$0xff]  ;;  %v1846_v35 = vld [vmem:[%s3279_s23 + $0x58] sm:$0xff]  ;;  %s4714_s25 = smov %s4735_s18 }
 0x28e   : >> { %1827 = vst [vmem:[%s3275_s27 + $0x8] sm:$0xff] %v1826_v24  ;;  %s4594_s29 = scalar_lea.vmem %s4380_s6, %s2616_s24 [#allocation3]   ;;  %s4597_s8 = scalar_lea.vmem %s4409_s30, %s2616_s24   ;;  %v1848_v36 = vld [vmem:[%s3279_s23 + $0x60] sm:$0xff]  ;;  %v1882_v38 = vld [vmem:[%s3279_s23 + $0x88] sm:$0xff]  ;;  %v1884_v39 = vld [vmem:[%s3279_s23 + $0x90] sm:$0xff] }
 0x28f   : >> { %1829 = vst [vmem:[%s3275_s27 + $0x10] sm:$0xff] %v1828_v25  ;;  %v1880_v37 = vld [vmem:[%s3279_s23 + $0x80] sm:$0xff]  ;;  %v1886_v40 = vld [vmem:[%s3279_s23 + $0x98] sm:$0xff]  ;;  %s4713_s23 = smov %s4594_s29 }
 0x290   : >> { %1831 = vst [vmem:[%s3275_s27 + $0x18] sm:$0xff] %v1830_v28 }
 0x291   : >> { %1833 = vst [vmem:[%s3275_s27 + $0x20] sm:$0xff] %v1832_v30 }
 0x292   : >> { %1835 = vst [vmem:[%s3275_s27 + $0x28] sm:$0xff] %v1834_v59 }
 0x293   : >> { %1837 = vst [vmem:[%s3275_s27 + $0x30] sm:$0xff] %v1836_v31 }
 0x294   : >> { %1839 = vst [vmem:[%s3275_s27 + $0x38] sm:$0xff] %v1838_v32 }
 0x295   : >> { %1841 = vst [vmem:[%s3275_s27 + $0x40] sm:$0xff] %v1840_v29 }
 0x296   : >> { %1843 = vst [vmem:[%s3275_s27 + $0x48] sm:$0xff] %v1842_v33 }
 0x297   : >> { %1845 = vst [vmem:[%s3275_s27 + $0x50] sm:$0xff] %v1844_v34 }
 0x298   : >> { %1847 = vst [vmem:[%s3275_s27 + $0x58] sm:$0xff] %v1846_v35 }
 0x299   : >> { %1849 = vst [vmem:[%s3275_s27 + $0x60] sm:$0xff] %v1848_v36 }
 0x29a   : >> { %1857 = vst [vmem:[%s3275_s27 + $0x6c] sm:$0xff] %v1832_v30 }
 0x29b   : >> { %1859 = vst [vmem:[%s3275_s27 + $0x74] sm:$0xff] %v1834_v59 }
 0x29c   : >> { %1861 = vst [vmem:[%s3275_s27 + $0x7c] sm:$0xff] %v1836_v31 }
 0x29d   : >> { %1863 = vst [vmem:[%s3275_s27 + $0x84] sm:$0xff] %v1838_v32 }
 0x29e   : >> { %1865 = vst [vmem:[%s3275_s27 + $0x8c] sm:$0xff] %v1840_v29 }
 0x29f   : >> { %1867 = vst [vmem:[%s3275_s27 + $0x94] sm:$0xff] %v1842_v33 }
 0x2a0   : >> { %1869 = vst [vmem:[%s3275_s27 + $0x9c] sm:$0xff] %v1844_v34 }
 0x2a1   : >> { %1871 = vst [vmem:[%s3275_s27 + $0xa4] sm:$0xff] %v1846_v35 }
 0x2a2   : >> { %1873 = vst [vmem:[%s3275_s27 + $0xac] sm:$0xff] %v1848_v36 }
 0x2a3   : >> { %1875 = vst [vmem:[%s3275_s27 + $0xb4] sm:$0xff] %v1850_v20 }
 0x2a4   : >> { %1877 = vst [vmem:[%s3275_s27 + $0xbc] sm:$0xff] %v1852_v21 }
 0x2a5   : >> { %1879 = vst [vmem:[%s3275_s27 + $0xc4] sm:$0xff] %v1854_v22  ;;  %1820 = sbr.rel (!%p1817_p0) target bundleno = 649 (0x289), region = 301 }
 0x2a6   : >> { %1881 = vst [vmem:[%s3275_s27 + $0xcc] sm:$0xff] %v1880_v37 }
 0x2a7   : >> { %1883 = vst [vmem:[%s3275_s27 + $0xd4] sm:$0xff] %v1882_v38 }
 0x2a8   : >> { %1885 = vst [vmem:[%s3275_s27 + $0xdc] sm:$0xff] %v1884_v39 }
 0x2a9   : >> { %1887 = vst [vmem:[%s3275_s27 + $0xe4] sm:$0xff] %v1886_v40  ;;  %s4712_s27 = smov %s4597_s8 }
 0x2aa PF: > { %s4647_s9 = sand.u32 15, %s1813_s14   ;;  %s2735_s12 = sshll.u32 %s4547_s17, 7 }
 0x2ab   : > { %s4651_s10 = scalar_lea.vmem %s4380_s6, %s2735_s12 [#allocation3]   ;;  %s1901_s5 = scalar_lea.vmem %s4409_s30, %s2735_s12  }
 0x2ac   : > { %p2621_p1 = scmp.le.s32.totalorder %s4647_s9, 0 }
 0x2ad   : > { %s3289_s21 = smov (!%p2621_p1), %s1901_s5   ;;  %s3293_s22 = smov (!%p2621_p1), %s4651_s10  }
 0x2ae   : > { %2136 = sbr.rel (%p2621_p1) target bundleno = 699 (0x2bb), region = 306  ;;  %s3297_s7 = smov (!%p2621_p1), 0  }
 0x2af   : > { %s3301_s15 = smov (!%p2621_p1), 0  }
 0x2b3 LB: >> { %v1911_v27 = vld [vmem:[%s3295_s22] sm:$0xff]  ;;  %s1915_s14 = sadd.s32 1, %s3299_s7  ;;  %s1905_s15 = sadd.s32 1, %s3303_s15   ;;  %s3303_s15 = sphi %s3301_s15, %s1905_s15   ;;  %s3299_s7 = sphi %s3297_s7, %s3298_s7   ;;  %s3295_s22 = sphi %s3293_s22, %s1920_s22   ;;  %s3291_s21 = sphi %s3289_s21, %s1921_s21  }
 0x2b4   : >> { %v1913_v41 = vld [vmem:[%s3295_s22 + $0x20] sm:$0xff]  ;;  %1912 = vst [vmem:[%s3291_s21] sm:$0xff] %v1911_v27  ;;  %p1916_p2 = scmp.ge.s32.totalorder %s1915_s14, %s4647_s9  ;;  %p1904_p3 = scmp.ge.s32.totalorder %s1905_s15, %s4647_s9 }
 0x2b5   : >> { %1914 = vst [vmem:[%s3291_s21 + $0x6c] sm:$0xff] %v1913_v41 }
 0x2b6   : >> { %s4737_s14 = smov (%p1916_p2, %s1915_s14), 0  ;;  %1907 = sbr.rel (!%p1904_p3) target bundleno = 691 (0x2b3), region = 312 }
 0x2b7   : >> { %s2622_s17 = sshll.u32 %s4737_s14, 3  ;;  %s3298_s7 = smov %s4737_s14  }
 0x2b8   : >> { %s1920_s22 = scalar_lea.vmem %s4651_s10, %s2622_s17 [#allocation3]   ;;  %s1921_s21 = scalar_lea.vmem %s1901_s5, %s2622_s17  }
 0x2bb PF: > { %s3308_s27 = smov 1  }
 0x2bc   : > { %s1922_s23 = sshll.u32 %s3308_s27, %s4415_s20 }
 0x2bd   : > { %s2624_s25 = sadd.s32 4294967295, %s1922_s23 }
 0x2be   : > { %v1932_v42 = vld [vmem:[%s4540_s28] sm:%s2624_s25] }
 0x2bf   : > { %v1934_v43 = vld [vmem:[%s4540_s28 + $0x20] sm:%s2624_s25]  ;;  %1933 = vst [vmem:[%s4543_s4] sm:%s2624_s25] %v1932_v42 }
 0x2c0   : > { %1935 = vst [vmem:[%s4543_s4 + $0x6c] sm:%s2624_s25] %v1934_v43 }
 0x2c1 PF: > { %p2625_p5 = scmp.ge.u32.totalorder %s4411_s11, 8 }
 0x2c2   : > { %s3309_s26 = smov (!%p2625_p5), 1  }
 0x2c3   : > { %1676 = sbr.rel (%p2625_p5) target bundleno = 715 (0x2cb), region = 114  ;;  %s1677_s18 = sshll.u32 (!%p2625_p5), %s3309_s26, %s4411_s11 }
 0x2c4   : > { %s2626_s24 = sadd.s32 (!%p2625_p5), 4294967295, %s1677_s18 }
 0x2c8   : > { %v1687_v44 = vld [vmem:[%s4380_s6] sm:%s2626_s24] }
 0x2c9   : > { %v1689_v45 = vld [vmem:[%s4380_s6 + $0x20] sm:%s2626_s24]  ;;  %1688 = vst [vmem:[%s4409_s30] sm:%s2626_s24] %v1687_v44 }
 0x2ca   : > { %1690 = vst [vmem:[%s4409_s30 + $0x6c] sm:%s2626_s24] %v1689_v45 }
 0x2cb PF: > { %p10_p4 = scmp.ge.s32.totalorder %s3349_s16, 6   ;;  %s4715_s12 = smov %s3171_s13 }
 0x2cc   : > { %s4716_s13 = smov %s3359_s19  ;;  %s4717_s14 = smov %s3349_s16 }
 0x2cd   :  { %12 = sbr.rel (!%p10_p4) target bundleno = 2 (0x2), region = 323 }

// kernel: net_forward.6
= control target key start
LH: loop header
LB: loop body
LE: loop exit
PB: predicated region body
PF: predicated region fallthrough
CT: control target
= control target key end

     0   :  { %vm850_vm0 = vcmask 130048   ;;  %vm1172_vm10 = vcmask 756736   ;;  %s2699_s0 = inlined_call_operand.vmem [shape: bf16[400,605], index: 0, kind: input, shape index: {}]   ;;  %s2700_s1 = inlined_call_operand.vmem [shape: bf16[16,400], index: 1, kind: input, shape index: {}]   ;;  %s2701_s2 = inlined_call_operand.vmem [shape: f32[16,1], index: 2, kind: input, shape index: {}]   ;;  %s2702_s3 = inlined_call_operand.vmem [shape: bf16[16,605], index: 3, kind: output, shape index: {}]  }
   0x1   :  { %v1339_v0 = vld [vmem:[%s2699_s0 + $0x118] sm:$0xf]  ;;  %v1743_v1 = vld [vmem:[%s2699_s0 + $0x128] sm:$0xf0]  ;;  %v1679_v9 = vld [vmem:[%s2699_s0 + $0x3c0] sm:$0xf] }
   0x2   :  { %v1499_v2 = vld [vmem:[%s2699_s0 + $0x258] sm:$0xf]  ;;  %v1340_v3 = vor.u32 %v1743_v1, %v1339_v0  ;;  %v1783_v4 = vld [vmem:[%s2699_s0 + $0x268] sm:$0xf0]  ;;  %v1828_v10 = vld [vmem:[%s2699_s0 + $0x3d0] sm:$0xf0] }
   0x3   :  { %v1659_v5 = vld [vmem:[%s2699_s0 + $0x398] sm:$0xf]  ;;  %v1823_v6 = vld [vmem:[%s2699_s0 + $0x3a8] sm:$0xf0]  ;;  %v1500_v7 = vor.u32 %v1783_v4, %v1499_v2  ;;  %v1741_v11 = vld [vmem:[%s2699_s0 + $0x11c] sm:$0xf]  ;;  %v1680_v12 = vor.u32 %v1828_v10, %v1679_v9 }
   0x4   :  { %v1660_v8 = vor.u32 %v1823_v6, %v1659_v5  ;;  %854 = vmatpush.bf16.msra.mxu0 %v1340_v3  ;;  %v1341_v13 = vld [vmem:[%s2699_s0 + $0x12c] sm:$0xf0]  ;;  %v1738_v15 = vld [vmem:[%s2699_s0 + $0x100] sm:$0xf0]  ;;  %v1736_v23 = vld [vmem:[%s2699_s0 + $0xf4] sm:$0xf] }
   0x5   :  { %v1319_v14 = vld [vmem:[%s2699_s0 + $0xf0] sm:$0xf]  ;;  %868 = vmatpush.bf16.msra.mxu1 %v1500_v7  ;;  %v1344_v16 = vor.u32 %v1741_v11, %v1341_v13  ;;  %v1778_v19 = vld [vmem:[%s2699_s0 + $0x240] sm:$0xf0]  ;;  %903 = vmatpush.bf16.msra.mxu3 %v1680_v12  ;;  %v1321_v24 = vld [vmem:[%s2699_s0 + $0x104] sm:$0xf0] }
   0x6   :  { %882 = vmatpush.bf16.msra.mxu2 %v1660_v8  ;;  %v1320_v17 = vor.u32 %v1738_v15, %v1319_v14  ;;  %v1479_v18 = vld [vmem:[%s2699_s0 + $0x230] sm:$0xf]  ;;  %v1818_v22 = vld [vmem:[%s2699_s0 + $0x380] sm:$0xf0]  ;;  %v1324_v26 = vor.u32 %v1736_v23, %v1321_v24  ;;  %v1299_v27 = vld [vmem:[%s2699_s0 + $0xc8] sm:$0xf] }
   0x7   :  { %v1639_v20 = vld [vmem:[%s2699_s0 + $0x370] sm:$0xf]  ;;  %v1480_v21 = vor.u32 %v1778_v19, %v1479_v18  ;;  %v1733_v28 = vld [vmem:[%s2699_s0 + $0xd8] sm:$0xf0]  ;;  %v1459_v29 = vld [vmem:[%s2699_s0 + $0x208] sm:$0xf] }
   0x8   :  { %v1640_v25 = vor.u32 %v1818_v22, %v1639_v20  ;;  %855 = vmatpush.bf16.msra.mxu0 %v1320_v17  ;;  %v1300_v30 = vor.u32 %v1733_v28, %v1299_v27  ;;  %v1773_v31 = vld [vmem:[%s2699_s0 + $0x218] sm:$0xf0]  ;;  %v1619_v32 = vld [vmem:[%s2699_s0 + $0x348] sm:$0xf]  ;;  %v1731_v36 = vld [vmem:[%s2699_s0 + $0xcc] sm:$0xf] }
   0x9   :  { %910 = vmatpush.bf16.msrb.mxu3 %v1344_v16  ;;  %v1813_v33 = vld [vmem:[%s2699_s0 + $0x358] sm:$0xf0]  ;;  %869 = vmatpush.bf16.msra.mxu1 %v1480_v21  ;;  %v1460_v34 = vor.u32 %v1773_v31, %v1459_v29  ;;  %v1301_v37 = vld [vmem:[%s2699_s0 + $0xdc] sm:$0xf0]  ;;  %v1728_v39 = vld [vmem:[%s2699_s0 + $0xb0] sm:$0xf0] }
   0xa   :  { %883 = vmatpush.bf16.msra.mxu2 %v1640_v25  ;;  %v1620_v35 = vor.u32 %v1813_v33, %v1619_v32  ;;  %v1279_v38 = vld [vmem:[%s2699_s0 + $0xa0] sm:$0xf]  ;;  %v1768_v41 = vld [vmem:[%s2699_s0 + $0x1f0] sm:$0xf0]  ;;  %v1304_v42 = vor.u32 %v1731_v36, %v1301_v37  ;;  %v1726_v46 = vld [vmem:[%s2699_s0 + $0xa4] sm:$0xf] }
   0xb   :  { %v1439_v40 = vld [vmem:[%s2699_s0 + $0x1e0] sm:$0xf]  ;;  %v1808_v44 = vld [vmem:[%s2699_s0 + $0x330] sm:$0xf0]  ;;  %v1280_v45 = vor.u32 %v1728_v39, %v1279_v38  ;;  %v1281_v47 = vld [vmem:[%s2699_s0 + $0xb4] sm:$0xf0] }
   0xc   :  { %v1599_v43 = vld [vmem:[%s2699_s0 + $0x320] sm:$0xf]  ;;  %856 = vmatpush.bf16.msra.mxu0 %v1300_v30  ;;  %v1440_v48 = vor.u32 %v1768_v41, %v1439_v40  ;;  %v1259_v50 = vld [vmem:[%s2699_s0 + $0x78] sm:$0xf]  ;;  %v1723_v51 = vld [vmem:[%s2699_s0 + $0x88] sm:$0xf0]  ;;  %v1284_v56 = vor.u32 %v1726_v46, %v1281_v47 }
   0xd   :  { %911 = vmatpush.bf16.msrb.mxu3 %v1324_v26  ;;  %870 = vmatpush.bf16.msra.mxu1 %v1460_v34  ;;  %v1600_v49 = vor.u32 %v1808_v44, %v1599_v43  ;;  %v1419_v52 = vld [vmem:[%s2699_s0 + $0x1b8] sm:$0xf]  ;;  %v1763_v53 = vld [vmem:[%s2699_s0 + $0x1c8] sm:$0xf0]  ;;  %v1721_v57 = vld [vmem:[%s2699_s0 + $0x7c] sm:$0xf]  ;;  %v1260_v58 = vor.u32 %v1723_v51, %v1259_v50 }
   0xe   :  { %884 = vmatpush.bf16.msra.mxu2 %v1620_v35  ;;  %v1579_v54 = vld [vmem:[%s2699_s0 + $0x2f8] sm:$0xf]  ;;  %v1803_v55 = vld [vmem:[%s2699_s0 + $0x308] sm:$0xf0]  ;;  %v1261_v59 = vld [vmem:[%s2699_s0 + $0x8c] sm:$0xf0]  ;;  %v1420_v62 = vor.u32 %v1763_v53, %v1419_v52 }
   0xf   :  { %v1239_v60 = vld [vmem:[%s2699_s0 + $0x50] sm:$0xf]  ;;  %v1718_v61 = vld [vmem:[%s2699_s0 + $0x60] sm:$0xf0]  ;;  %v1580_v63 = vor.u32 %v1803_v55, %v1579_v54  ;;  %v1703_v2 = vld [vmem:[%s2700_s1 + $0xc] sm:$0xf]  ;;  %v1264_v6 = vor.u32 %v1721_v57, %v1261_v59 }
  0x10   :  { %857 = vmatpush.bf16.msra.mxu0 %v1280_v45  ;;  %v1399_v0 = vld [vmem:[%s2699_s0 + $0x190] sm:$0xf]  ;;  %v1758_v1 = vld [vmem:[%s2699_s0 + $0x1a0] sm:$0xf0]  ;;  %v1193_v5 = vld [vmem:[%s2700_s1 + $0x18] sm:$0xf0]  ;;  %v1240_v8 = vor.u32 %v1718_v61, %v1239_v60 }
  0x11   :  { %912 = vmatpush.bf16.msrb.mxu3 %v1304_v42  ;;  %871 = vmatpush.bf16.msra.mxu1 %v1440_v48  ;;  %v1559_v3 = vld [vmem:[%s2699_s0 + $0x2d0] sm:$0xf]  ;;  %v1798_v4 = vld [vmem:[%s2699_s0 + $0x2e0] sm:$0xf0]  ;;  %v2004_v7 = vor.u32 %v1703_v2, %v1193_v5  ;;  %v1716_v9 = vld [vmem:[%s2699_s0 + $0x54] sm:$0xf]  ;;  %v1400_v11 = vor.u32 %v1758_v1, %v1399_v0 }
  0x12   :  { %885 = vmatpush.bf16.msra.mxu2 %v1600_v49  ;;  %v1241_v10 = vld [vmem:[%s2699_s0 + $0x64] sm:$0xf0]  ;;  %v1560_v12 = vor.u32 %v1798_v4, %v1559_v3  ;;  %v1713_v14 = vld [vmem:[%s2699_s0 + $0x38] sm:$0xf0]  ;;  %v1711_v20 = vld [vmem:[%s2699_s0 + $0x2c] sm:$0xf] }
  0x13   :  { %v1219_v13 = vld [vmem:[%s2699_s0 + $0x28] sm:$0xf]  ;;  %1697 = vmatmul.msk.bf16.vlgmr.msra.gmra.mxu3 %vm850_vm0, %v2004_v7  ;;  %v1753_v16 = vld [vmem:[%s2699_s0 + $0x178] sm:$0xf0]  ;;  %v1244_v19 = vor.u32 %v1716_v9, %v1241_v10  ;;  %v1221_v21 = vld [vmem:[%s2699_s0 + $0x3c] sm:$0xf0] }
  0x14   :  { %858 = vmatpush.bf16.msra.mxu0 %v1260_v58  ;;  %v1379_v15 = vld [vmem:[%s2699_s0 + $0x168] sm:$0xf]  ;;  %v1793_v18 = vld [vmem:[%s2699_s0 + $0x2b8] sm:$0xf0]  ;;  %v1220_v22 = vor.u32 %v1713_v14, %v1219_v13  ;;  %v1199_v23 = vld [vmem:[%s2699_s0] sm:$0xf]  ;;  %v1224_v36 = vor.u32 %v1711_v20, %v1221_v21 }
  0x15   :  { %913 = vmatpush.bf16.msrb.mxu3 %v1284_v56  ;;  %872 = vmatpush.bf16.msra.mxu1 %v1420_v62  ;;  %v1539_v17 = vld [vmem:[%s2699_s0 + $0x2a8] sm:$0xf]  ;;  %v1708_v24 = vld [vmem:[%s2699_s0 + $0x10] sm:$0xf0]  ;;  %v1359_v25 = vld [vmem:[%s2699_s0 + $0x140] sm:$0xf]  ;;  %v1380_v26 = vor.u32 %v1753_v16, %v1379_v15 }
  0x16   :  { %886 = vmatpush.bf16.msra.mxu2 %v1580_v63  ;;  %v1540_v27 = vor.u32 %v1793_v18, %v1539_v17  ;;  %v1748_v28 = vld [vmem:[%s2699_s0 + $0x150] sm:$0xf0]  ;;  %v1519_v29 = vld [vmem:[%s2699_s0 + $0x280] sm:$0xf]  ;;  %v1706_v31 = vld [vmem:[%s2699_s0 + $0x4] sm:$0xf]  ;;  %v1200_v40 = vor.u32 %v1708_v24, %v1199_v23 }
  0x17   :  { %v1788_v30 = vld [vmem:[%s2699_s0 + $0x290] sm:$0xf0]  ;;  %v1201_v32 = vld [vmem:[%s2699_s0 + $0x14] sm:$0xf0]  ;;  %v1781_v33 = vld [vmem:[%s2699_s0 + $0x25c] sm:$0xf]  ;;  %v1360_v44 = vor.u32 %v1748_v28, %v1359_v25 }
  0x18   :  { %859 = vmatpush.bf16.msra.mxu0 %v1240_v8  ;;  %v1501_v34 = vld [vmem:[%s2699_s0 + $0x26c] sm:$0xf0]  ;;  %v1821_v35 = vld [vmem:[%s2699_s0 + $0x39c] sm:$0xf]  ;;  %v1347_v38 = vld [vmem:[%s2699_s0 + $0x120] sm:$0xf]  ;;  %v1520_v45 = vor.u32 %v1788_v30, %v1519_v29  ;;  %v1204_v54 = vor.u32 %v1706_v31, %v1201_v32 }
  0x19   :  { %914 = vmatpush.bf16.msrb.mxu3 %v1264_v6  ;;  %873 = vmatpush.bf16.msra.mxu1 %v1400_v11  ;;  %v1661_v37 = vld [vmem:[%s2699_s0 + $0x3ac] sm:$0xf0]  ;;  %v1744_v39 = vld [vmem:[%s2699_s0 + $0x130] sm:$0xf0]  ;;  %v1191_v41 = vld [vmem:[%s2700_s1 + $0x8] sm:$0xf]  ;;  %v1504_v49 = vor.u32 %v1781_v33, %v1501_v34 }
  0x1a   :  { %887 = vmatpush.bf16.msra.mxu2 %v1560_v12  ;;  %v1183_v42 = vld [vmem:[%s2700_s1] sm:$0xf]  ;;  %v1704_v43 = vld [vmem:[%s2700_s1 + $0xc] sm:$0xf0]  ;;  %v1705_v46 = vld [vmem:[%s2700_s1 + $0x14] sm:$0xf0]  ;;  %v1664_v50 = vor.u32 %v1821_v35, %v1661_v37  ;;  %v1348_v59 = vor.u32 %v1744_v39, %v1347_v38 }
  0x1b   :  { %v1776_v47 = vld [vmem:[%s2699_s0 + $0x234] sm:$0xf]  ;;  %v1702_v48 = vld [vmem:[%s2700_s1 + $0x4] sm:$0xf]  ;;  %v1681_v53 = vld [vmem:[%s2699_s0 + $0x3d4] sm:$0xf0]  ;;  %v2107_v55 = vor.u32 %v1704_v43, %v1183_v42  ;;  %v2118_v60 = vor.u32 %v1705_v46, %v1191_v41 }
  0x1c   :  { %860 = vmatpush.bf16.msra.mxu0 %v1220_v22  ;;  %v1185_v51 = vld [vmem:[%s2700_s1 + $0x10] sm:$0xf0]  ;;  %v1826_v52 = vld [vmem:[%s2699_s0 + $0x3c4] sm:$0xf]  ;;  %v1481_v56 = vld [vmem:[%s2699_s0 + $0x244] sm:$0xf0] }
  0x1d   :  { %915 = vmatpush.bf16.msrb.mxu3 %v1244_v19  ;;  %874 = vmatpush.bf16.msra.mxu1 %v1380_v26  ;;  %v1816_v57 = vld [vmem:[%s2699_s0 + $0x374] sm:$0xf]  ;;  %v1641_v58 = vld [vmem:[%s2699_s0 + $0x384] sm:$0xf0]  ;;  %v1507_v61 = vld [vmem:[%s2699_s0 + $0x260] sm:$0xf]  ;;  %v2132_v1 = vor.u32 %v1702_v48, %v1185_v51  ;;  %v1684_v2 = vor.u32 %v1826_v52, %v1681_v53  ;;  %v1484_v3 = vor.u32 %v1776_v47, %v1481_v56 }
  0x1e   :  { %888 = vmatpush.bf16.msra.mxu2 %v1540_v27  ;;  %v1784_v62 = vld [vmem:[%s2699_s0 + $0x270] sm:$0xf0]  ;;  %v1327_v63 = vld [vmem:[%s2699_s0 + $0xf8] sm:$0xf]  ;;  %v1739_v0 = vld [vmem:[%s2699_s0 + $0x108] sm:$0xf0]  ;;  %v1644_v4 = vor.u32 %v1816_v57, %v1641_v58 }
  0x1f   :  { %v1771_v5 = vld [vmem:[%s2699_s0 + $0x20c] sm:$0xf]  ;;  %v1461_v6 = vld [vmem:[%s2699_s0 + $0x21c] sm:$0xf0]  ;;  %v1508_v10 = vor.u32 %v1784_v62, %v1507_v61  ;;  %v1328_v11 = vor.u32 %v1739_v0, %v1327_v63  ;;  %v1487_v12 = vld [vmem:[%s2699_s0 + $0x238] sm:$0xf] }
  0x20   :  { %861 = vmatpush.bf16.msra.mxu0 %v1200_v40  ;;  %v1811_v8 = vld [vmem:[%s2699_s0 + $0x34c] sm:$0xf]  ;;  %v1621_v9 = vld [vmem:[%s2699_s0 + $0x35c] sm:$0xf0]  ;;  %v1307_v14 = vld [vmem:[%s2699_s0 + $0xd0] sm:$0xf]  ;;  %v1464_v17 = vor.u32 %v1771_v5, %v1461_v6 }
  0x21   :  { %916 = vmatpush.bf16.msrb.mxu3 %v1224_v36  ;;  %875 = vmatpush.bf16.msra.mxu1 %v1360_v44  ;;  %v1779_v13 = vld [vmem:[%s2699_s0 + $0x248] sm:$0xf0]  ;;  %v1734_v15 = vld [vmem:[%s2699_s0 + $0xe0] sm:$0xf0]  ;;  %v1624_v18 = vor.u32 %v1811_v8, %v1621_v9  ;;  %v1441_v20 = vld [vmem:[%s2699_s0 + $0x1f4] sm:$0xf0] }
  0x22   :  { %889 = vmatpush.bf16.msra.mxu2 %v1520_v45  ;;  %v169_v16 = vld [vmem:[%s2701_s2] sm:$0xff]  ;;  %v1601_v22 = vld [vmem:[%s2699_s0 + $0x334] sm:$0xf0]  ;;  %v1488_v23 = vor.u32 %v1779_v13, %v1487_v12  ;;  %v1833_v24 = vmov 0   ;;  %v1308_v25 = vor.u32 %v1734_v15, %v1307_v14  ;;  %v1467_v26 = vld [vmem:[%s2699_s0 + $0x210] sm:$0xf] }
  0x23   :  { %862 = vmatmul.bf16.vlgmr.msra.gmra.mxu0 %v2107_v55  ;;  %v1766_v19 = vld [vmem:[%s2699_s0 + $0x1e4] sm:$0xf]  ;;  %1832 = vset.pattern.permute.xlu0 %v1833_v24  ;;  %v1287_v28 = vld [vmem:[%s2699_s0 + $0xa8] sm:$0xf]  ;;  %v1729_v29 = vld [vmem:[%s2699_s0 + $0xb8] sm:$0xf0] }
  0x24   :  { %924 = vmatpush.bf16.msrb.mxu0 %v1504_v49  ;;  %876 = vmatmul.bf16.vlgmr.msra.gmra.mxu1 %v2132_v1  ;;  %v1806_v21 = vld [vmem:[%s2699_s0 + $0x324] sm:$0xf]  ;;  %v1444_v30 = vor.u32 %v1766_v19, %v1441_v20  ;;  %v1761_v32 = vld [vmem:[%s2699_s0 + $0x1bc] sm:$0xf]  ;;  %v1421_v33 = vld [vmem:[%s2699_s0 + $0x1cc] sm:$0xf0]  ;;  %v1288_v37 = vor.u32 %v1729_v29, %v1287_v28 }
  0x25   :  { %938 = vmatpush.bf16.msrb.mxu1 %v1664_v50  ;;  %917 = vmatpush.bf16.msrb.mxu3 %v1204_v54  ;;  %v1774_v27 = vld [vmem:[%s2699_s0 + $0x220] sm:$0xf0]  ;;  %v1604_v31 = vor.u32 %v1806_v21, %v1601_v22  ;;  %v1801_v34 = vld [vmem:[%s2699_s0 + $0x2fc] sm:$0xf]  ;;  %v1581_v35 = vld [vmem:[%s2699_s0 + $0x30c] sm:$0xf0]  ;;  %v1424_v43 = vor.u32 %v1761_v32, %v1421_v33 }
  0x26   :  { %890 = vmatmul.bf16.vlgmr.msra.gmra.mxu2 %v2118_v60  ;;  %173 = vperm.xlu0 %1832, %v169_v16   ;;  %v1468_v36 = vor.u32 %v1774_v27, %v1467_v26  ;;  %v1447_v38 = vld [vmem:[%s2699_s0 + $0x1e8] sm:$0xf]  ;;  %v1769_v39 = vld [vmem:[%s2699_s0 + $0x1f8] sm:$0xf0]  ;;  %v1267_v40 = vld [vmem:[%s2699_s0 + $0x80] sm:$0xf]  ;;  %v1584_v44 = vor.u32 %v1801_v34, %v1581_v35 }
  0x27   :  { %959 = vmatpush.bf16.msrb.mxu2 %v1684_v2  ;;  %v1724_v41 = vld [vmem:[%s2699_s0 + $0x90] sm:$0xf0]  ;;  %v170_v42 = vld [vmem:[%s2701_s2 + $0x8] sm:$0xff]  ;;  %v1448_v49 = vor.u32 %v1769_v39, %v1447_v38  ;;  %v1427_v51 = vld [vmem:[%s2699_s0 + $0x1c0] sm:$0xf] }
  0x28   :  { %925 = vmatpush.bf16.msrb.mxu0 %v1484_v3  ;;  %918 = vmatmul.bf16.vlgmr.msrb.gmra.mxu3 %v2107_v55  ;;  %v1756_v45 = vld [vmem:[%s2699_s0 + $0x194] sm:$0xf]  ;;  %v1401_v46 = vld [vmem:[%s2699_s0 + $0x1a4] sm:$0xf0]  ;;  %v1268_v50 = vor.u32 %v1724_v41, %v1267_v40  ;;  %v1247_v53 = vld [vmem:[%s2699_s0 + $0x58] sm:$0xf] }
  0x29   :  { %966 = vmatpush.bf16.msra.mxu3 %v1348_v59  ;;  %939 = vmatpush.bf16.msrb.mxu1 %v1644_v4  ;;  %v1796_v47 = vld [vmem:[%s2699_s0 + $0x2d4] sm:$0xf]  ;;  %v1561_v48 = vld [vmem:[%s2699_s0 + $0x2e4] sm:$0xf0]  ;;  %v1719_v54 = vld [vmem:[%s2699_s0 + $0x68] sm:$0xf0]  ;;  %v1404_v56 = vor.u32 %v1756_v45, %v1401_v46 }
  0x2a   :  { %v1764_v52 = vld [vmem:[%s2699_s0 + $0x1d0] sm:$0xf0]  ;;  %v1564_v57 = vor.u32 %v1796_v47, %v1561_v48  ;;  %v1751_v58 = vld [vmem:[%s2699_s0 + $0x16c] sm:$0xf]  ;;  %v1381_v59 = vld [vmem:[%s2699_s0 + $0x17c] sm:$0xf0]  ;;  %v1248_v0 = vor.u32 %v1719_v54, %v1247_v53 }
  0x2b   :  { %980 = vmatpush.bf16.msra.mxu2 %v1508_v10  ;;  %v1791_v61 = vld [vmem:[%s2699_s0 + $0x2ac] sm:$0xf]  ;;  %v1541_v62 = vld [vmem:[%s2699_s0 + $0x2bc] sm:$0xf0]  ;;  %v1428_v63 = vor.u32 %v1764_v52, %v1427_v51  ;;  %v1407_v2 = vld [vmem:[%s2699_s0 + $0x198] sm:$0xf]  ;;  %v1384_v6 = vor.u32 %v1751_v58, %v1381_v59 }
  0x2c   :  { %926 = vmatpush.bf16.msrb.mxu0 %v1464_v17  ;;  %v1759_v3 = vld [vmem:[%s2699_s0 + $0x1a8] sm:$0xf0]  ;;  %v1227_v4 = vld [vmem:[%s2699_s0 + $0x30] sm:$0xf]  ;;  %v1714_v5 = vld [vmem:[%s2699_s0 + $0x40] sm:$0xf0]  ;;  %v1544_v8 = vor.u32 %v1791_v61, %v1541_v62 }
  0x2d   :  { %967 = vmatpush.bf16.msra.mxu3 %v1328_v11  ;;  %940 = vmatpush.bf16.msrb.mxu1 %v1624_v18  ;;  %v1746_v9 = vld [vmem:[%s2699_s0 + $0x144] sm:$0xf]  ;;  %v1361_v10 = vld [vmem:[%s2699_s0 + $0x154] sm:$0xf0]  ;;  %v1408_v13 = vor.u32 %v1759_v3, %v1407_v2  ;;  %v1207_v14 = vld [vmem:[%s2699_s0 + $0x8] sm:$0xf]  ;;  %v1228_v16 = vor.u32 %v1714_v5, %v1227_v4 }
  0x2e   :  { %178 = vperm.xlu0 %1832, %v170_v42   ;;  %v1786_v11 = vld [vmem:[%s2699_s0 + $0x284] sm:$0xf]  ;;  %v1521_v12 = vld [vmem:[%s2699_s0 + $0x294] sm:$0xf0]  ;;  %v1667_v15 = vld [vmem:[%s2699_s0 + $0x3a0] sm:$0xf] }
  0x2f   :  { %981 = vmatpush.bf16.msra.mxu2 %v1488_v23  ;;  %v1824_v17 = vld [vmem:[%s2699_s0 + $0x3b0] sm:$0xf0]  ;;  %v1687_v18 = vld [vmem:[%s2699_s0 + $0x3c8] sm:$0xf]  ;;  %v1829_v19 = vld [vmem:[%s2699_s0 + $0x3d8] sm:$0xf0]  ;;  %v1364_v23 = vor.u32 %v1746_v9, %v1361_v10  ;;  %v1524_v24 = vor.u32 %v1786_v11, %v1521_v12 }
  0x30   :  { %927 = vmatpush.bf16.msrb.mxu0 %v1444_v30  ;;  %v1709_v20 = vld [vmem:[%s2699_s0 + $0x18] sm:$0xf0]  ;;  %v1387_v21 = vld [vmem:[%s2699_s0 + $0x170] sm:$0xf]  ;;  %v1754_v22 = vld [vmem:[%s2699_s0 + $0x180] sm:$0xf0]  ;;  %v1668_v27 = vor.u32 %v1824_v17, %v1667_v15  ;;  %v1688_v28 = vor.u32 %v1829_v19, %v1687_v18 }
  0x31   :  { %968 = vmatpush.bf16.msra.mxu3 %v1308_v25  ;;  %941 = vmatpush.bf16.msrb.mxu1 %v1604_v31  ;;  %v1742_v25 = vld [vmem:[%s2699_s0 + $0x124] sm:$0xf]  ;;  %v1349_v26 = vld [vmem:[%s2699_s0 + $0x134] sm:$0xf0]  ;;  %v1208_v30 = vor.u32 %v1709_v20, %v1207_v14  ;;  %v1388_v31 = vor.u32 %v1754_v22, %v1387_v21  ;;  %v1819_v34 = vld [vmem:[%s2699_s0 + $0x388] sm:$0xf0] }
  0x32   :  { %v1782_v29 = vld [vmem:[%s2699_s0 + $0x264] sm:$0xf]  ;;  %v1509_v32 = vld [vmem:[%s2699_s0 + $0x274] sm:$0xf0]  ;;  %v1352_v35 = vor.u32 %v1742_v25, %v1349_v26  ;;  %v1749_v38 = vld [vmem:[%s2699_s0 + $0x158] sm:$0xf0] }
  0x33   :  { %982 = vmatpush.bf16.msra.mxu2 %v1468_v36  ;;  %v1647_v33 = vld [vmem:[%s2699_s0 + $0x378] sm:$0xf]  ;;  %v1737_v36 = vld [vmem:[%s2699_s0 + $0xfc] sm:$0xf]  ;;  %v1329_v39 = vld [vmem:[%s2699_s0 + $0x10c] sm:$0xf0]  ;;  %v1512_v42 = vor.u32 %v1782_v29, %v1509_v32 }
  0x34   :  { %928 = vmatpush.bf16.msrb.mxu0 %v1424_v43  ;;  %v1822_v40 = vld [vmem:[%s2699_s0 + $0x3a4] sm:$0xf]  ;;  %v1669_v41 = vld [vmem:[%s2699_s0 + $0x3b4] sm:$0xf0]  ;;  %v1648_v43 = vor.u32 %v1819_v34, %v1647_v33  ;;  %v1489_v46 = vld [vmem:[%s2699_s0 + $0x24c] sm:$0xf0] }
  0x35   :  { %969 = vmatpush.bf16.msra.mxu3 %v1288_v37  ;;  %942 = vmatpush.bf16.msrb.mxu1 %v1584_v44  ;;  %v1367_v37 = vld [vmem:[%s2699_s0 + $0x148] sm:$0xf]  ;;  %v1777_v44 = vld [vmem:[%s2699_s0 + $0x23c] sm:$0xf]  ;;  %v1627_v47 = vld [vmem:[%s2699_s0 + $0x350] sm:$0xf] }
  0x36   :  { %1698 = vmatmul.msk.bf16.vlgmr.msrb.gmra.mxu2 %vm850_vm0, %v2004_v7  ;;  %v1368_v45 = vor.u32 %v1749_v38, %v1367_v37  ;;  %v1814_v48 = vld [vmem:[%s2699_s0 + $0x360] sm:$0xf0]  ;;  %v1732_v51 = vld [vmem:[%s2699_s0 + $0xd4] sm:$0xf]  ;;  %v1309_v52 = vld [vmem:[%s2699_s0 + $0xe4] sm:$0xf0] }
  0x37   :  { %983 = vmatpush.bf16.msra.mxu2 %v1448_v49  ;;  %v1332_v49 = vor.u32 %v1737_v36, %v1329_v39  ;;  %v1817_v53 = vld [vmem:[%s2699_s0 + $0x37c] sm:$0xf]  ;;  %v1649_v54 = vld [vmem:[%s2699_s0 + $0x38c] sm:$0xf0]  ;;  %v1772_v58 = vld [vmem:[%s2699_s0 + $0x214] sm:$0xf] }
  0x38   :  { %929 = vmatpush.bf16.msrb.mxu0 %v1404_v56  ;;  %v1492_v56 = vor.u32 %v1777_v44, %v1489_v46  ;;  %v1469_v59 = vld [vmem:[%s2699_s0 + $0x224] sm:$0xf0]  ;;  %v1809_v62 = vld [vmem:[%s2699_s0 + $0x338] sm:$0xf0]  ;;  %v1727_v2 = vld [vmem:[%s2699_s0 + $0xac] sm:$0xf] }
  0x39   :  { %970 = vmatpush.bf16.msra.mxu3 %v1268_v50  ;;  %943 = vmatpush.bf16.msrb.mxu1 %v1564_v57  ;;  %v1672_v50 = vor.u32 %v1822_v40, %v1669_v41  ;;  %v1628_v57 = vor.u32 %v1814_v48, %v1627_v47  ;;  %v1607_v61 = vld [vmem:[%s2699_s0 + $0x328] sm:$0xf]  ;;  %v1289_v3 = vld [vmem:[%s2699_s0 + $0xbc] sm:$0xf0]  ;;  %v1812_v4 = vld [vmem:[%s2699_s0 + $0x354] sm:$0xf] }
  0x3a   :  { %v1629_v5 = vld [vmem:[%s2699_s0 + $0x364] sm:$0xf0]  ;;  %v1767_v9 = vld [vmem:[%s2699_s0 + $0x1ec] sm:$0xf]  ;;  %v1449_v10 = vld [vmem:[%s2699_s0 + $0x1fc] sm:$0xf0] }
  0x3b   :  { %984 = vmatpush.bf16.msra.mxu2 %v1428_v63  ;;  %v1312_v63 = vor.u32 %v1732_v51, %v1309_v52  ;;  %v1587_v11 = vld [vmem:[%s2699_s0 + $0x300] sm:$0xf]  ;;  %v1804_v12 = vld [vmem:[%s2699_s0 + $0x310] sm:$0xf0]  ;;  %v1632_v14 = vor.u32 %v1812_v4, %v1629_v5  ;;  %v1722_v15 = vld [vmem:[%s2699_s0 + $0x84] sm:$0xf]  ;;  %v1452_v19 = vor.u32 %v1767_v9, %v1449_v10 }
  0x3c   :  { %930 = vmatpush.bf16.msrb.mxu0 %v1384_v6  ;;  %v1472_v6 = vor.u32 %v1772_v58, %v1469_v59  ;;  %v1807_v17 = vld [vmem:[%s2699_s0 + $0x32c] sm:$0xf]  ;;  %v1609_v18 = vld [vmem:[%s2699_s0 + $0x33c] sm:$0xf0]  ;;  %v1588_v20 = vor.u32 %v1804_v12, %v1587_v11  ;;  %v1762_v21 = vld [vmem:[%s2699_s0 + $0x1c4] sm:$0xf] }
  0x3d   :  { %971 = vmatpush.bf16.msra.mxu3 %v1248_v0  ;;  %944 = vmatpush.bf16.msrb.mxu1 %v1544_v8  ;;  %v1652_v0 = vor.u32 %v1817_v53, %v1649_v54  ;;  %v1608_v8 = vor.u32 %v1809_v62, %v1607_v61  ;;  %v1429_v22 = vld [vmem:[%s2699_s0 + $0x1d4] sm:$0xf0]  ;;  %v1612_v26 = vor.u32 %v1807_v17, %v1609_v18  ;;  %v1802_v29 = vld [vmem:[%s2699_s0 + $0x304] sm:$0xf]  ;;  %v1757_v33 = vld [vmem:[%s2699_s0 + $0x19c] sm:$0xf] }
  0x3e   :  { %v1409_v34 = vld [vmem:[%s2699_s0 + $0x1ac] sm:$0xf0]  ;;  %v1794_v36 = vld [vmem:[%s2699_s0 + $0x2c0] sm:$0xf0]  ;;  %v1712_v39 = vld [vmem:[%s2699_s0 + $0x34] sm:$0xf] }
  0x3f   :  { %985 = vmatpush.bf16.msra.mxu2 %v1408_v13  ;;  %v1292_v13 = vor.u32 %v1727_v2, %v1289_v3  ;;  %v1229_v40 = vld [vmem:[%s2699_s0 + $0x44] sm:$0xf0]  ;;  %v1797_v41 = vld [vmem:[%s2699_s0 + $0x2dc] sm:$0xf]  ;;  %v1707_v51 = vld [vmem:[%s2699_s0 + $0xc] sm:$0xf] }
  0x40   :  { %931 = vmatpush.bf16.msrb.mxu0 %v1364_v23  ;;  %v1567_v23 = vld [vmem:[%s2699_s0 + $0x2d8] sm:$0xf]  ;;  %v1389_v46 = vld [vmem:[%s2699_s0 + $0x184] sm:$0xf0]  ;;  %v1789_v48 = vld [vmem:[%s2699_s0 + $0x298] sm:$0xf0] }
  0x41   :  { %972 = vmatpush.bf16.msra.mxu3 %v1228_v16  ;;  %945 = vmatpush.bf16.msrb.mxu1 %v1524_v24  ;;  %v1269_v16 = vld [vmem:[%s2699_s0 + $0x94] sm:$0xf0]  ;;  %v1799_v24 = vld [vmem:[%s2699_s0 + $0x2e8] sm:$0xf0]  ;;  %v1527_v47 = vld [vmem:[%s2699_s0 + $0x288] sm:$0xf] }
  0x42   :  { %v1272_v25 = vor.u32 %v1722_v15, %v1269_v16  ;;  %v1568_v32 = vor.u32 %v1799_v24, %v1567_v23  ;;  %v1827_v52 = vld [vmem:[%s2699_s0 + $0x3cc] sm:$0xf]  ;;  %v1689_v53 = vld [vmem:[%s2699_s0 + $0x3dc] sm:$0xf0]  ;;  %v1528_v59 = vor.u32 %v1789_v48, %v1527_v47  ;;  %v1355_v61 = vld [vmem:[%s2699_s0 + $0x128] sm:$0xf] }
  0x43   :  { %986 = vmatpush.bf16.msra.mxu2 %v1388_v31  ;;  %932 = vmatmul.bf16.vlgmr.msrb.gmra.mxu0 %v2132_v1  ;;  %v1432_v31 = vor.u32 %v1762_v21, %v1429_v22  ;;  %v1209_v54 = vld [vmem:[%s2699_s0 + $0x1c] sm:$0xf0]  ;;  %v1745_v62 = vld [vmem:[%s2699_s0 + $0x138] sm:$0xf0]  ;;  %v1692_v2 = vor.u32 %v1827_v52, %v1689_v53  ;;  %v1515_v3 = vld [vmem:[%s2699_s0 + $0x268] sm:$0xf] }
  0x44   :  { %994 = vmatpush.bf16.msra.mxu0 %v1668_v27  ;;  %946 = vmatmul.bf16.vlgmr.msrb.gmra.mxu1 %v2118_v60  ;;  %v1717_v27 = vld [vmem:[%s2699_s0 + $0x5c] sm:$0xf]  ;;  %v1212_v5 = vor.u32 %v1707_v51, %v1209_v54  ;;  %v1356_v10 = vor.u32 %v1745_v62, %v1355_v61  ;;  %v1787_v11 = vld [vmem:[%s2699_s0 + $0x28c] sm:$0xf]  ;;  %v1529_v12 = vld [vmem:[%s2699_s0 + $0x29c] sm:$0xf0] }
  0x45   :  { %1015 = vmatpush.bf16.msra.mxu1 %v1688_v28  ;;  %973 = vmatpush.bf16.msra.mxu3 %v1208_v30  ;;  %v1249_v28 = vld [vmem:[%s2699_s0 + $0x6c] sm:$0xf0]  ;;  %v1589_v30 = vld [vmem:[%s2699_s0 + $0x314] sm:$0xf0]  ;;  %v1785_v4 = vld [vmem:[%s2699_s0 + $0x278] sm:$0xf0]  ;;  %v1532_v22 = vor.u32 %v1787_v11, %v1529_v12 }
  0x46   :  { %v1252_v37 = vor.u32 %v1717_v27, %v1249_v28  ;;  %v1592_v38 = vor.u32 %v1802_v29, %v1589_v30  ;;  %v1825_v9 = vld [vmem:[%s2699_s0 + $0x3b8] sm:$0xf0]  ;;  %v1335_v15 = vld [vmem:[%s2699_s0 + $0x100] sm:$0xf]  ;;  %v1740_v16 = vld [vmem:[%s2699_s0 + $0x110] sm:$0xf0] }
  0x47   :  { %987 = vmatpush.bf16.msra.mxu2 %v1368_v45  ;;  %v1752_v45 = vld [vmem:[%s2699_s0 + $0x174] sm:$0xf]  ;;  %v1495_v17 = vld [vmem:[%s2699_s0 + $0x240] sm:$0xf]  ;;  %v1830_v21 = vld [vmem:[%s2699_s0 + $0x3e0] sm:$0xf0] }
  0x48   :  { %995 = vmatpush.bf16.msra.mxu0 %v1648_v43  ;;  %974 = vmatmul.bf16.vlgmr.msra.gmra.mxu3 %v2107_v55  ;;  %v1412_v43 = vor.u32 %v1757_v33, %v1409_v34  ;;  %v1392_v58 = vor.u32 %v1752_v45, %v1389_v46  ;;  %v1655_v23 = vld [vmem:[%s2699_s0 + $0x380] sm:$0xf]  ;;  %v1820_v24 = vld [vmem:[%s2699_s0 + $0x390] sm:$0xf0]  ;;  %v1315_v27 = vld [vmem:[%s2699_s0 + $0xd8] sm:$0xf] }
  0x49   :  { %1022 = vmatpush.bf16.msrb.mxu3 %v1352_v35  ;;  %1036 = vmatpush.bf16.msrb.mxu1 %v1512_v42  ;;  %v1547_v35 = vld [vmem:[%s2699_s0 + $0x2b0] sm:$0xf]  ;;  %v1735_v28 = vld [vmem:[%s2699_s0 + $0xe8] sm:$0xf0]  ;;  %v1656_v30 = vor.u32 %v1820_v24, %v1655_v23  ;;  %v1635_v33 = vld [vmem:[%s2699_s0 + $0x358] sm:$0xf] }
  0x4a   :  { %988 = vmatmul.bf16.vlgmr.msra.gmra.mxu2 %v2132_v1  ;;  %v1569_v42 = vld [vmem:[%s2699_s0 + $0x2ec] sm:$0xf0]  ;;  %v1548_v44 = vor.u32 %v1794_v36, %v1547_v35  ;;  %v1815_v34 = vld [vmem:[%s2699_s0 + $0x368] sm:$0xf0]  ;;  %v1316_v35 = vor.u32 %v1735_v28, %v1315_v27  ;;  %v1275_v46 = vld [vmem:[%s2699_s0 + $0x88] sm:$0xf] }
  0x4b   :  { %1050 = vmatpush.bf16.msrb.mxu2 %v1672_v50  ;;  %v1572_v50 = vor.u32 %v1797_v41, %v1569_v42  ;;  %v1770_v41 = vld [vmem:[%s2699_s0 + $0x200] sm:$0xf0]  ;;  %v1615_v42 = vld [vmem:[%s2699_s0 + $0x330] sm:$0xf]  ;;  %v1725_v47 = vld [vmem:[%s2699_s0 + $0x98] sm:$0xf0] }
  0x4c   :  { %996 = vmatpush.bf16.msra.mxu0 %v1628_v57  ;;  %v1549_v57 = vld [vmem:[%s2699_s0 + $0x2c4] sm:$0xf0]  ;;  %v1805_v52 = vld [vmem:[%s2699_s0 + $0x318] sm:$0xf0]  ;;  %v1276_v53 = vor.u32 %v1725_v47, %v1275_v46  ;;  %v1760_v61 = vld [vmem:[%s2699_s0 + $0x1b0] sm:$0xf0] }
  0x4d   :  { %1023 = vmatpush.bf16.msrb.mxu3 %v1332_v49  ;;  %1037 = vmatpush.bf16.msrb.mxu1 %v1492_v56  ;;  %v1232_v49 = vor.u32 %v1712_v39, %v1229_v40  ;;  %v1792_v56 = vld [vmem:[%s2699_s0 + $0x2b4] sm:$0xf]  ;;  %v1636_v39 = vor.u32 %v1815_v34, %v1635_v33  ;;  %v1455_v40 = vld [vmem:[%s2699_s0 + $0x1f0] sm:$0xf]  ;;  %v1595_v51 = vld [vmem:[%s2699_s0 + $0x308] sm:$0xf] }
  0x4e   :  { %v1456_v45 = vor.u32 %v1770_v41, %v1455_v40  ;;  %v1575_v62 = vld [vmem:[%s2699_s0 + $0x2e0] sm:$0xf] }
  0x4f   :  { %1051 = vmatpush.bf16.msrb.mxu2 %v1652_v0  ;;  %v1369_v0 = vld [vmem:[%s2699_s0 + $0x15c] sm:$0xf0] }
  0x50   :  { %997 = vmatpush.bf16.msra.mxu0 %v1608_v8  ;;  %v1675_v8 = vld [vmem:[%s2699_s0 + $0x3a8] sm:$0xf] }
  0x51   :  { %1024 = vmatpush.bf16.msrb.mxu3 %v1312_v63  ;;  %1038 = vmatpush.bf16.msrb.mxu1 %v1472_v6  ;;  %v1747_v63 = vld [vmem:[%s2699_s0 + $0x14c] sm:$0xf]  ;;  %v1552_v6 = vor.u32 %v1792_v56, %v1549_v57  ;;  %v1676_v18 = vor.u32 %v1825_v9, %v1675_v8  ;;  %v1255_v56 = vld [vmem:[%s2699_s0 + $0x60] sm:$0xf]  ;;  %v1720_v57 = vld [vmem:[%s2699_s0 + $0x70] sm:$0xf0] }
  0x52   :  { %v1755_v8 = vld [vmem:[%s2699_s0 + $0x188] sm:$0xf0]  ;;  %v1555_v9 = vld [vmem:[%s2699_s0 + $0x2b8] sm:$0xf] }
  0x53   :  { %1052 = vmatpush.bf16.msrb.mxu2 %v1632_v14  ;;  %v1516_v14 = vor.u32 %v1785_v4, %v1515_v3  ;;  %v1235_v3 = vld [vmem:[%s2699_s0 + $0x38] sm:$0xf]  ;;  %v1715_v4 = vld [vmem:[%s2699_s0 + $0x48] sm:$0xf0] }
  0x54   :  { %998 = vmatpush.bf16.msra.mxu0 %v1588_v20  ;;  %1699 = vmatmul.msk.bf16.vlgmr.msra.gmra.mxu1 %vm850_vm0, %v2004_v7  ;;  %v1695_v20 = vld [vmem:[%s2699_s0 + $0x3d0] sm:$0xf]  ;;  %v1236_v11 = vor.u32 %v1715_v4, %v1235_v3 }
  0x55   :  { %1025 = vmatpush.bf16.msrb.mxu3 %v1292_v13  ;;  %1039 = vmatpush.bf16.msrb.mxu1 %v1452_v19  ;;  %v1372_v13 = vor.u32 %v1747_v63, %v1369_v0  ;;  %v1780_v19 = vld [vmem:[%s2699_s0 + $0x250] sm:$0xf0]  ;;  %v1696_v29 = vor.u32 %v1830_v21, %v1695_v20  ;;  %v1256_v0 = vor.u32 %v1720_v57, %v1255_v56 }
  0x56   :  { %v1800_v63 = vld [vmem:[%s2699_s0 + $0x2f0] sm:$0xf0] }
  0x57   :  { %1053 = vmatpush.bf16.msrb.mxu2 %v1612_v26  ;;  %v1496_v26 = vor.u32 %v1780_v19, %v1495_v17  ;;  %v1750_v17 = vld [vmem:[%s2699_s0 + $0x160] sm:$0xf0] }
  0x58   :  { %999 = vmatpush.bf16.msra.mxu0 %v1568_v32  ;;  %v1775_v32 = vld [vmem:[%s2699_s0 + $0x228] sm:$0xf0]  ;;  %v1790_v19 = vld [vmem:[%s2699_s0 + $0x2a0] sm:$0xf0] }
  0x59   :  { %1026 = vmatpush.bf16.msrb.mxu3 %v1272_v25  ;;  %1040 = vmatpush.bf16.msrb.mxu1 %v1432_v31  ;;  %v1336_v25 = vor.u32 %v1740_v16, %v1335_v15  ;;  %v1475_v31 = vld [vmem:[%s2699_s0 + $0x218] sm:$0xf]  ;;  %v1375_v16 = vld [vmem:[%s2699_s0 + $0x150] sm:$0xf] }
  0x5a   :  { %v1476_v36 = vor.u32 %v1775_v32, %v1475_v31 }
  0x5b   :  { %1054 = vmatpush.bf16.msrb.mxu2 %v1592_v38  ;;  %v1730_v38 = vld [vmem:[%s2699_s0 + $0xc0] sm:$0xf0] }
  0x5c   :  { %1000 = vmatpush.bf16.msra.mxu0 %v1548_v44 }
  0x5d   :  { %1027 = vmatpush.bf16.msrb.mxu3 %v1252_v37  ;;  %1041 = vmatpush.bf16.msrb.mxu1 %v1412_v43  ;;  %v1295_v37 = vld [vmem:[%s2699_s0 + $0xb0] sm:$0xf]  ;;  %v1810_v43 = vld [vmem:[%s2699_s0 + $0x340] sm:$0xf0] }
  0x5e   :  { %v1296_v44 = vor.u32 %v1730_v38, %v1295_v37  ;;  %v1616_v48 = vor.u32 %v1810_v43, %v1615_v42 }
  0x5f   :  { %1055 = vmatpush.bf16.msrb.mxu2 %v1572_v50  ;;  %v1765_v50 = vld [vmem:[%s2699_s0 + $0x1d8] sm:$0xf0] }
  0x60   :  { %1001 = vmatpush.bf16.msra.mxu0 %v1528_v59  ;;  %v1415_v59 = vld [vmem:[%s2699_s0 + $0x1a0] sm:$0xf] }
  0x61   :  { %1028 = vmatpush.bf16.msrb.mxu3 %v1232_v49  ;;  %1042 = vmatpush.bf16.msrb.mxu1 %v1392_v58  ;;  %v1435_v49 = vld [vmem:[%s2699_s0 + $0x1c8] sm:$0xf]  ;;  %v1596_v58 = vor.u32 %v1805_v52, %v1595_v51 }
  0x62   :  { %v1436_v54 = vor.u32 %v1765_v50, %v1435_v49 }
  0x63   :  { %1056 = vmatpush.bf16.msrb.mxu2 %v1552_v6  ;;  %1002 = vmatmul.bf16.vlgmr.msra.gmra.mxu0 %v2118_v60  ;;  %v1395_v6 = vld [vmem:[%s2699_s0 + $0x178] sm:$0xf] }
  0x64   :  { %1071 = vmatpush.bf16.msrb.mxu0 %v1692_v2  ;;  %v1416_v2 = vor.u32 %v1760_v61, %v1415_v59  ;;  %v1396_v12 = vor.u32 %v1755_v8, %v1395_v6 }
  0x65   :  { %1029 = vmatpush.bf16.msrb.mxu3 %v1212_v5  ;;  %1043 = vmatpush.bf16.msrb.mxu1 %v1372_v13  ;;  %v1576_v5 = vor.u32 %v1800_v63, %v1575_v62  ;;  %v1215_v13 = vld [vmem:[%s2699_s0 + $0x10] sm:$0xf] }
  0x67   :  { %1057 = vmatpush.bf16.msrb.mxu2 %v1532_v22 }
  0x68   :  { %1092 = vmatpush.bf16.msra.mxu0 %v1516_v14  ;;  %1030 = vmatmul.bf16.vlgmr.msrb.gmra.mxu3 %v2107_v55  ;;  %v1710_v14 = vld [vmem:[%s2699_s0 + $0x20] sm:$0xf0] }
  0x69   :  { %1078 = vmatpush.bf16.msra.mxu3 %v1356_v10  ;;  %1106 = vmatpush.bf16.msra.mxu1 %v1676_v18  ;;  %v1795_v10 = vld [vmem:[%s2699_s0 + $0x2c8] sm:$0xf0]  ;;  %v1535_v18 = vld [vmem:[%s2699_s0 + $0x290] sm:$0xf]  ;;  %v1216_v20 = vor.u32 %v1710_v14, %v1215_v13 }
  0x6a   :  { %1044 = vmatmul.bf16.vlgmr.msrb.gmra.mxu1 %v2132_v1  ;;  %1058 = vmatmul.bf16.vlgmr.msrb.gmra.mxu2 %v2118_v60  ;;  %v1556_v15 = vor.u32 %v1795_v10, %v1555_v9  ;;  %v1536_v21 = vor.u32 %v1790_v19, %v1535_v18 }
  0x6b   :  { %1127 = vmatpush.bf16.msra.mxu2 %v1696_v29 }
  0x6c   :  { %1093 = vmatpush.bf16.msra.mxu0 %v1496_v26 }
  0x6d   :  { %1079 = vmatpush.bf16.msra.mxu3 %v1336_v25  ;;  %1107 = vmatpush.bf16.msra.mxu1 %v1656_v30 }
  0x70   :  { %1094 = vmatpush.bf16.msra.mxu0 %v1476_v36 }
  0x71   :  { %1080 = vmatpush.bf16.msra.mxu3 %v1316_v35  ;;  %1108 = vmatpush.bf16.msra.mxu1 %v1636_v39 }
  0x73   :  { %1700 = vmatmul.msk.bf16.vlgmr.msrb.gmra.mxu0 %vm850_vm0, %v2004_v7 }
  0x74   :  { %1095 = vmatpush.bf16.msra.mxu0 %v1456_v45 }
  0x75   :  { %1081 = vmatpush.bf16.msra.mxu3 %v1296_v44  ;;  %1109 = vmatpush.bf16.msra.mxu1 %v1616_v48 }
  0x78   :  { %1096 = vmatpush.bf16.msra.mxu0 %v1436_v54 }
  0x79   :  { %1082 = vmatpush.bf16.msra.mxu3 %v1276_v53  ;;  %1110 = vmatpush.bf16.msra.mxu1 %v1596_v58 }
  0x7a   :  { %1701 = vmatmul.msk.bf16.vlgmr.msra.gmra.mxu2 %vm850_vm0, %v2004_v7  ;;  %v1376_v7 = vor.u32 %v1750_v17, %v1375_v16 }
  0x7c   :  { %1097 = vmatpush.bf16.msra.mxu0 %v1416_v2 }
  0x7d   :  { %1083 = vmatpush.bf16.msra.mxu3 %v1256_v0  ;;  %1111 = vmatpush.bf16.msra.mxu1 %v1576_v5 }
  0x80   :  { %1098 = vmatpush.bf16.msra.mxu0 %v1396_v12 }
  0x81   :  { %1084 = vmatpush.bf16.msra.mxu3 %v1236_v11  ;;  %1112 = vmatpush.bf16.msra.mxu1 %v1556_v15 }
  0x84   :  { %1099 = vmatpush.bf16.msra.mxu0 %v1376_v7 }
  0x85   :  { %1085 = vmatpush.bf16.msra.mxu3 %v1216_v20  ;;  %1113 = vmatpush.bf16.msra.mxu1 %v1536_v21 }
  0x87   :  { %1100 = vmatmul.bf16.vlgmr.msra.gmra.mxu0 %v2132_v1 }
  0x88   :  { %1086 = vmatmul.bf16.vlgmr.msra.gmra.mxu3 %v2107_v55  ;;  %1114 = vmatmul.bf16.vlgmr.msra.gmra.mxu1 %v2118_v60 }
  0x96   :  { %v905_v22 = vpop.f32.mrf.mxu3 }
  0x98   :  { %v2667_v26 = vpop.permute.xlu0 %173 }
  0x9e   :  { %v907_v27 = vpop.f32.mrf.mxu3 }
  0xa0   :  { %v863_v23 = vpop.f32.mrf.mxu0  ;;  %v2670_v34 = vpop.permute.xlu0 %178 }
  0xa1   :  { %v877_v25 = vpop.f32.mrf.mxu1  ;;  %v864_v28 = vadd.f32 %v863_v23, %v2667_v26 }
  0xa3   :  { %v878_v32 = vadd.f32 %v877_v25, %v864_v28 }
  0xa8   :  { %v865_v29 = vpop.f32.mrf.mxu0 }
  0xa9   :  { %v891_v24 = vpop.f32.mrf.mxu2  ;;  %v879_v33 = vpop.f32.mrf.mxu1  ;;  %v866_v1 = vadd.f32 %v865_v29, %v2670_v34 }
  0xaa   :  { %v892_v55 = vadd.f32 %v891_v24, %v878_v32 }
  0xab   :  { %v919_v31 = vpop.f32.mrf.mxu3  ;;  %v880_v38 = vadd.f32 %v879_v33, %v866_v1 }
  0xac   :  { %v920_v60 = vadd.f32 %v919_v31, %v2667_v26  ;;  %v906_v37 = vadd.f32 %v905_v22, %v892_v55 }
  0xae   :  { %v1144_v43 = vmul.f32 0.01, %v906_v37  ;;  %vm1134_vm1 = vcmp.gt.f32.partialorder %v906_v37, 0.0 }
  0xb0   :  { %v1154_v50 = vsel %vm1134_vm1, %v906_v37, %v1144_v43 }
  0xb1   :  { %v893_v30 = vpop.f32.mrf.mxu2 }
  0xb2   :  { %v894_v44 = vadd.f32 %v893_v30, %v880_v38 }
  0xb3   :  { %v921_v41 = vpop.f32.mrf.mxu3 }
  0xb4   :  { %v922_v46 = vadd.f32 %v921_v41, %v2670_v34  ;;  %v908_v49 = vadd.f32 %v907_v27, %v894_v44 }
  0xb6   :  { %v1149_v58 = vmul.f32 0.01, %v908_v49  ;;  %vm1139_vm3 = vcmp.gt.f32.partialorder %v908_v49, 0.0 }
  0xb8   :  { %v1159_v62 = vsel %vm1139_vm3, %v908_v49, %v1149_v58 }
  0xb9   :  { %v961_v36 = vpop.f32.mrf.mxu2 }
  0xc0   :  { %v933_v35 = vpop.f32.mrf.mxu0 }
  0xc1   :  { %v934_v39 = vadd.f32 %v933_v35, %v920_v60  ;;  %v947_v40 = vpop.f32.mrf.mxu1  ;;  %v963_v56 = vpop.f32.mrf.mxu2 }
  0xc3   :  { %v948_v42 = vadd.f32 %v947_v40, %v934_v39 }
  0xc5   :  { %v962_v45 = vadd.f32 %v961_v36, %v948_v42 }
  0xc7   :  { %vm1135_vm2 = vcmp.gt.f32.partialorder %v962_v45, 0.0  ;;  %v1145_v47 = vmul.f32 0.01, %v962_v45 }
  0xc8   :  { %v935_v48 = vpop.f32.mrf.mxu0 }
  0xc9   :  { %v1155_v51 = vsel %vm1135_vm2, %v962_v45, %v1145_v47  ;;  %v936_v52 = vadd.f32 %v935_v48, %v922_v46  ;;  %v949_v53 = vpop.f32.mrf.mxu1 }
  0xca   :  { %v1164_v54 = vpack.c.bf16 %v1155_v51, %v1154_v50 }
  0xcb   :  { %v950_v57 = vadd.f32 %v949_v53, %v936_v52  ;;  %v975_v0 = vpop.f32.mrf.mxu3 }
  0xcc   :  { %1170 = vst [vmem:[%s2702_s3] sm:$0xff] %v1164_v54  ;;  %v976_v9 = vadd.f32 %v975_v0, %v2667_v26 }
  0xcd   :  { %v964_v59 = vadd.f32 %v963_v56, %v950_v57  ;;  %v989_v4 = vpop.f32.mrf.mxu2 }
  0xce   :  { %v990_v11 = vadd.f32 %v989_v4, %v976_v9 }
  0xcf   :  { %vm1140_vm4 = vcmp.gt.f32.partialorder %v964_v59, 0.0  ;;  %v1150_v61 = vmul.f32 0.01, %v964_v59 }
  0xd1   :  { %v1160_v63 = vsel %vm1140_vm4, %v964_v59, %v1150_v61  ;;  %v1017_v2 = vpop.f32.mrf.mxu1 }
  0xd2   :  { %v1167_v3 = vpack.c.bf16 %v1160_v63, %v1159_v62 }
  0xd3   :  { %v977_v6 = vpop.f32.mrf.mxu3 }
  0xd4   :  { %1174 = vst [vmem:[%s2702_s3 + $0x14] sm:$0xff] %v1167_v3  ;;  %v978_v16 = vadd.f32 %v977_v6, %v2670_v34 }
  0xd5   :  { %v991_v10 = vpop.f32.mrf.mxu2 }
  0xd6   :  { %v992_v7 = vadd.f32 %v991_v10, %v978_v16 }
  0xd9   :  { %v1019_v5 = vpop.f32.mrf.mxu1 }
  0xe0   :  { %v1003_v8 = vpop.f32.mrf.mxu0 }
  0xe1   :  { %v1004_v15 = vadd.f32 %v1003_v8, %v990_v11 }
  0xe3   :  { %v1018_v20 = vadd.f32 %v1017_v2, %v1004_v15 }
  0xe5   :  { %v1146_v25 = vmul.f32 0.01, %v1018_v20  ;;  %vm1136_vm5 = vcmp.gt.f32.partialorder %v1018_v20, 0.0 }
  0xe7   :  { %v1045_v12 = vpop.f32.mrf.mxu1  ;;  %v1156_v55 = vsel %vm1136_vm5, %v1018_v20, %v1146_v25 }
  0xe8   :  { %v1005_v13 = vpop.f32.mrf.mxu0 }
  0xe9   :  { %v1006_v27 = vadd.f32 %v1005_v13, %v992_v7 }
  0xeb   :  { %v1031_v14 = vpop.f32.mrf.mxu3  ;;  %v1020_v33 = vadd.f32 %v1019_v5, %v1006_v27 }
  0xec   :  { %v1032_v17 = vadd.f32 %v1031_v14, %v2667_v26 }
  0xed   :  { %v1059_v19 = vpop.f32.mrf.mxu2  ;;  %v1151_v37 = vmul.f32 0.01, %v1020_v33  ;;  %vm1141_vm7 = vcmp.gt.f32.partialorder %v1020_v33, 0.0 }
  0xee   :  { %v1046_v18 = vadd.f32 %v1045_v12, %v1032_v17 }
  0xef   :  { %v1047_v22 = vpop.f32.mrf.mxu1  ;;  %v1161_v40 = vsel %vm1141_vm7, %v1020_v33, %v1151_v37 }
  0xf0   :  { %v1060_v21 = vadd.f32 %v1059_v19, %v1046_v18  ;;  %v1073_v23 = vpop.f32.mrf.mxu0 }
  0xf2   :  { %v1074_v28 = vadd.f32 %v1073_v23, %v1060_v21 }
  0xf3   :  { %v1033_v24 = vpop.f32.mrf.mxu3 }
  0xf4   :  { %v1034_v29 = vadd.f32 %v1033_v24, %v2670_v34  ;;  %vm1137_vm6 = vcmp.gt.f32.partialorder %v1074_v28, 0.0  ;;  %v1147_v30 = vmul.f32 0.01, %v1074_v28 }
  0xf5   :  { %v1061_v32 = vpop.f32.mrf.mxu2 }
  0xf6   :  { %v1048_v31 = vadd.f32 %v1047_v22, %v1034_v29  ;;  %v1157_v1 = vsel %vm1137_vm6, %v1074_v28, %v1147_v30 }
  0xf7   :  { %v1165_v35 = vpack.c.bf16 %v1157_v1, %v1156_v55 }
  0xf8   :  { %v1062_v60 = vadd.f32 %v1061_v32, %v1048_v31  ;;  %v1075_v36 = vpop.f32.mrf.mxu0 }
  0xf9   :  { %1171 = vst [vmem:[%s2702_s3 + $0x8] sm:$0xff] %v1165_v35 }
  0xfa   :  { %v1076_v38 = vadd.f32 %v1075_v36, %v1062_v60 }
  0xfc   :  { %vm1142_vm8 = vcmp.gt.f32.partialorder %v1076_v38, 0.0  ;;  %v1152_v39 = vmul.f32 0.01, %v1076_v38 }
  0xfd   :  { %v1129_v48 = vpop.f32.mrf.mxu2 }
  0xfe   :  { %v1162_v41 = vsel %vm1142_vm8, %v1076_v38, %v1152_v39 }
  0xff   :  { %v1168_v42 = vpack.c.bf16 %v1162_v41, %v1161_v40 }
 0x101   :  { %1175 = vst [vmem:[%s2702_s3 + $0x1c] sm:$0xff] %v1168_v42 }
 0x104   :  { %v1101_v43 = vpop.f32.mrf.mxu0 }
 0x105   :  { %v1115_v46 = vpop.f32.mrf.mxu1 }
 0x10b   :  { %v1087_v44 = vpop.f32.mrf.mxu3 }
 0x10c   :  { %v1088_v45 = vadd.f32 %v1087_v44, %v2667_v26  ;;  %v1103_v54 = vpop.f32.mrf.mxu0  ;;  %v1131_v26 = vpop.f32.mrf.mxu2 }
 0x10d   :  { %v1117_v59 = vpop.f32.mrf.mxu1 }
 0x10e   :  { %v1102_v47 = vadd.f32 %v1101_v43, %v1088_v45 }
 0x110   :  { %v1116_v49 = vadd.f32 %v1115_v46, %v1102_v47 }
 0x112   :  { %v1130_v50 = vadd.f32 %v1129_v48, %v1116_v49 }
 0x113   :  { %v1089_v51 = vpop.f32.mrf.mxu3 }
 0x114   :  { %vm1138_vm9 = vcmp.gt.f32.partialorder %v1130_v50, 0.0  ;;  %v1148_v52 = vmul.f32 0.01, %v1130_v50  ;;  %v1090_v53 = vadd.f32 %v1089_v51, %v2670_v34 }
 0x116   :  { %v1158_v56 = vsel %vm1138_vm9, %v1130_v50, %v1148_v52  ;;  %v1104_v57 = vadd.f32 %v1103_v54, %v1090_v53 }
 0x117   :  { %v1166_v58 = vpack.c.bf16 %v1158_v56, %v1158_v56 }
 0x118   :  { %v1118_v61 = vadd.f32 %v1117_v59, %v1104_v57 }
 0x119   :  { %1173 = vst.msk [vmem:[%s2702_s3 + $0x10] sm:$0xf] %vm1172_vm10, %v1166_v58 }
 0x11a   :  { %v1132_v62 = vadd.f32 %v1131_v26, %v1118_v61 }
 0x11c   :  { %vm1143_vm11 = vcmp.gt.f32.partialorder %v1132_v62, 0.0  ;;  %v1153_v63 = vmul.f32 0.01, %v1132_v62 }
 0x11e   :  { %v1163_v0 = vsel %vm1143_vm11, %v1132_v62, %v1153_v63 }
 0x11f   :  { %v1169_v2 = vpack.c.bf16 %v1163_v0, %v1163_v0 }
 0x121   :  { %1176 = vst.msk [vmem:[%s2702_s3 + $0x24] sm:$0xf] %vm1172_vm10, %v1169_v2 }

// kernel: net_forward.7
= control target key start
LH: loop header
LB: loop body
LE: loop exit
PB: predicated region body
PF: predicated region fallthrough
CT: control target
= control target key end

     0   :  { %vm254_vm0 = vcmask 130048   ;;  %vm399_vm2 = vcmask 1043456   ;;  %vm400_vm3 = vcmask 171012   ;;  %s890_s0 = inlined_call_operand.vmem [shape: bf16[144,405], index: 0, kind: input, shape index: {}]   ;;  %s891_s1 = inlined_call_operand.vmem [shape: bf16[16,144], index: 1, kind: input, shape index: {}]   ;;  %s892_s2 = inlined_call_operand.vmem [shape: f32[16,1], index: 2, kind: input, shape index: {}]   ;;  %s893_s3 = inlined_call_operand.vmem [shape: bf16[16,405], index: 3, kind: output, shape index: {}]  }
   0x1   :  { %v531_v0 = vld [vmem:[%s890_s0 + $0xe0] sm:$0xf]  ;;  %v597_v1 = vld [vmem:[%s890_s0 + $0xec] sm:$0xf0]  ;;  %v595_v5 = vld [vmem:[%s890_s0 + $0xe4] sm:$0xf] }
   0x2   :  { %v547_v2 = vld [vmem:[%s890_s0 + $0x100] sm:$0xf]  ;;  %v532_v3 = vor.u32 %v597_v1, %v531_v0  ;;  %v601_v4 = vld [vmem:[%s890_s0 + $0x10c] sm:$0xf0]  ;;  %v533_v6 = vld [vmem:[%s890_s0 + $0xf0] sm:$0xf0] }
   0x3   :  { %v548_v7 = vor.u32 %v601_v4, %v547_v2  ;;  %v536_v8 = vor.u32 %v595_v5, %v533_v6  ;;  %v539_v9 = vld [vmem:[%s890_s0 + $0xe8] sm:$0xf]  ;;  %v598_v10 = vld [vmem:[%s890_s0 + $0xf4] sm:$0xf0]  ;;  %v515_v11 = vld [vmem:[%s890_s0 + $0xc0] sm:$0xf] }
   0x4   :  { %258 = vmatpush.bf16.msra.mxu0 %v532_v3  ;;  %v540_v12 = vor.u32 %v598_v10, %v539_v9  ;;  %v593_v13 = vld [vmem:[%s890_s0 + $0xcc] sm:$0xf0]  ;;  %v591_v14 = vld [vmem:[%s890_s0 + $0xc4] sm:$0xf]  ;;  %v517_v15 = vld [vmem:[%s890_s0 + $0xd0] sm:$0xf0] }
   0x5   :  { %279 = vmatpush.bf16.msra.mxu1 %v548_v7  ;;  %286 = vmatpush.bf16.msra.mxu2 %v536_v8  ;;  %v516_v16 = vor.u32 %v593_v13, %v515_v11  ;;  %v520_v17 = vor.u32 %v591_v14, %v517_v15  ;;  %v523_v18 = vld [vmem:[%s890_s0 + $0xc8] sm:$0xf]  ;;  %v594_v19 = vld [vmem:[%s890_s0 + $0xd4] sm:$0xf0]  ;;  %v596_v23 = vld [vmem:[%s890_s0 + $0xec] sm:$0xf] }
   0x6   :  { %v555_v20 = vld [vmem:[%s890_s0 + $0x108] sm:$0xf]  ;;  %v524_v21 = vor.u32 %v594_v19, %v523_v18  ;;  %v602_v22 = vld [vmem:[%s890_s0 + $0x114] sm:$0xf0]  ;;  %v541_v24 = vld [vmem:[%s890_s0 + $0xf8] sm:$0xf0] }
   0x7   :  { %v556_v25 = vor.u32 %v602_v22, %v555_v20  ;;  %v544_v26 = vor.u32 %v596_v23, %v541_v24  ;;  %v499_v27 = vld [vmem:[%s890_s0 + $0xa0] sm:$0xf]  ;;  %v589_v28 = vld [vmem:[%s890_s0 + $0xac] sm:$0xf0]  ;;  %v587_v29 = vld [vmem:[%s890_s0 + $0xa4] sm:$0xf] }
   0x8   :  { %259 = vmatpush.bf16.msra.mxu0 %v516_v16  ;;  %v500_v30 = vor.u32 %v589_v28, %v499_v27  ;;  %v501_v31 = vld [vmem:[%s890_s0 + $0xb0] sm:$0xf0]  ;;  %v507_v32 = vld [vmem:[%s890_s0 + $0xa8] sm:$0xf]  ;;  %v590_v33 = vld [vmem:[%s890_s0 + $0xb4] sm:$0xf0] }
   0x9   :  { %314 = vmatpush.bf16.msrb.mxu1 %v540_v12  ;;  %287 = vmatpush.bf16.msra.mxu2 %v520_v17  ;;  %v504_v34 = vor.u32 %v587_v29, %v501_v31  ;;  %v592_v35 = vld [vmem:[%s890_s0 + $0xcc] sm:$0xf]  ;;  %v525_v36 = vld [vmem:[%s890_s0 + $0xd8] sm:$0xf0]  ;;  %v483_v37 = vld [vmem:[%s890_s0 + $0x80] sm:$0xf]  ;;  %v508_v38 = vor.u32 %v590_v33, %v507_v32 }
   0xa   :  { %335 = vmatpush.bf16.msra.mxu3 %v556_v25  ;;  %v528_v39 = vor.u32 %v592_v35, %v525_v36  ;;  %v585_v40 = vld [vmem:[%s890_s0 + $0x8c] sm:$0xf0]  ;;  %v583_v41 = vld [vmem:[%s890_s0 + $0x84] sm:$0xf]  ;;  %v485_v42 = vld [vmem:[%s890_s0 + $0x90] sm:$0xf0] }
   0xb   :  { %v491_v43 = vld [vmem:[%s890_s0 + $0x88] sm:$0xf]  ;;  %v586_v44 = vld [vmem:[%s890_s0 + $0x94] sm:$0xf0]  ;;  %v588_v45 = vld [vmem:[%s890_s0 + $0xac] sm:$0xf]  ;;  %v484_v46 = vor.u32 %v585_v40, %v483_v37  ;;  %v488_v49 = vor.u32 %v583_v41, %v485_v42 }
   0xc   :  { %260 = vmatpush.bf16.msra.mxu0 %v500_v30  ;;  %v509_v47 = vld [vmem:[%s890_s0 + $0xb8] sm:$0xf0]  ;;  %v467_v48 = vld [vmem:[%s890_s0 + $0x60] sm:$0xf]  ;;  %v581_v50 = vld [vmem:[%s890_s0 + $0x6c] sm:$0xf0]  ;;  %v492_v53 = vor.u32 %v586_v44, %v491_v43 }
   0xd   :  { %315 = vmatpush.bf16.msrb.mxu1 %v524_v21  ;;  %288 = vmatpush.bf16.msra.mxu2 %v504_v34  ;;  %v565_v51 = vld [vmem:[%s891_s1 + $0x4] sm:$0xf]  ;;  %v413_v52 = vld [vmem:[%s891_s1 + $0x8] sm:$0xf0]  ;;  %v512_v54 = vor.u32 %v588_v45, %v509_v47  ;;  %v469_v57 = vld [vmem:[%s890_s0 + $0x70] sm:$0xf0]  ;;  %v468_v62 = vor.u32 %v581_v50, %v467_v48 }
   0xe   :  { %342 = vmatpush.bf16.msrb.mxu3 %v544_v26  ;;  %v740_v55 = vor.u32 %v565_v51, %v413_v52  ;;  %v579_v56 = vld [vmem:[%s890_s0 + $0x64] sm:$0xf]  ;;  %v475_v58 = vld [vmem:[%s890_s0 + $0x68] sm:$0xf]  ;;  %v582_v59 = vld [vmem:[%s890_s0 + $0x74] sm:$0xf0] }
   0xf   :  { %v584_v60 = vld [vmem:[%s890_s0 + $0x8c] sm:$0xf]  ;;  %v493_v61 = vld [vmem:[%s890_s0 + $0x98] sm:$0xf0]  ;;  %v472_v63 = vor.u32 %v579_v56, %v469_v57  ;;  %v451_v0 = vld [vmem:[%s890_s0 + $0x40] sm:$0xf]  ;;  %v476_v2 = vor.u32 %v582_v59, %v475_v58 }
  0x10   :  { %261 = vmatpush.bf16.msra.mxu0 %v484_v46  ;;  %561 = vmatmul.msk.bf16.vlgmr.msra.gmra.mxu1 %vm254_vm0, %v740_v55  ;;  %v577_v1 = vld [vmem:[%s890_s0 + $0x4c] sm:$0xf0]  ;;  %v496_v3 = vor.u32 %v584_v60, %v493_v61  ;;  %v575_v4 = vld [vmem:[%s890_s0 + $0x44] sm:$0xf]  ;;  %v453_v5 = vld [vmem:[%s890_s0 + $0x50] sm:$0xf0] }
  0x11   :  { %316 = vmatpush.bf16.msrb.mxu1 %v508_v38  ;;  %289 = vmatpush.bf16.msra.mxu2 %v488_v49  ;;  %v459_v6 = vld [vmem:[%s890_s0 + $0x48] sm:$0xf]  ;;  %v578_v7 = vld [vmem:[%s890_s0 + $0x54] sm:$0xf0]  ;;  %v580_v8 = vld [vmem:[%s890_s0 + $0x6c] sm:$0xf]  ;;  %v452_v10 = vor.u32 %v577_v1, %v451_v0  ;;  %v456_v11 = vor.u32 %v575_v4, %v453_v5 }
  0x12   :  { %343 = vmatpush.bf16.msrb.mxu3 %v528_v39  ;;  %v477_v9 = vld [vmem:[%s890_s0 + $0x78] sm:$0xf0]  ;;  %v435_v12 = vld [vmem:[%s890_s0 + $0x20] sm:$0xf]  ;;  %v573_v13 = vld [vmem:[%s890_s0 + $0x2c] sm:$0xf0]  ;;  %v460_v14 = vor.u32 %v578_v7, %v459_v6 }
  0x13   :  { %563 = vmatmul.msk.bf16.vlgmr.msra.gmra.mxu3 %vm254_vm0, %v740_v55  ;;  %v480_v15 = vor.u32 %v580_v8, %v477_v9  ;;  %v571_v16 = vld [vmem:[%s890_s0 + $0x24] sm:$0xf]  ;;  %v437_v17 = vld [vmem:[%s890_s0 + $0x30] sm:$0xf0]  ;;  %v443_v18 = vld [vmem:[%s890_s0 + $0x28] sm:$0xf]  ;;  %v436_v22 = vor.u32 %v573_v13, %v435_v12 }
  0x14   :  { %262 = vmatpush.bf16.msra.mxu0 %v468_v62  ;;  %v574_v19 = vld [vmem:[%s890_s0 + $0x34] sm:$0xf0]  ;;  %v576_v20 = vld [vmem:[%s890_s0 + $0x4c] sm:$0xf]  ;;  %v461_v21 = vld [vmem:[%s890_s0 + $0x58] sm:$0xf0]  ;;  %v440_v26 = vor.u32 %v571_v16, %v437_v17 }
  0x15   :  { %317 = vmatpush.bf16.msrb.mxu1 %v492_v53  ;;  %290 = vmatpush.bf16.msra.mxu2 %v472_v63  ;;  %v419_v23 = vld [vmem:[%s890_s0] sm:$0xf]  ;;  %v569_v24 = vld [vmem:[%s890_s0 + $0xc] sm:$0xf0]  ;;  %v567_v25 = vld [vmem:[%s890_s0 + $0x4] sm:$0xf]  ;;  %v444_v30 = vor.u32 %v574_v19, %v443_v18  ;;  %v464_v31 = vor.u32 %v576_v20, %v461_v21 }
  0x16   :  { %344 = vmatpush.bf16.msrb.mxu3 %v512_v54  ;;  %v421_v27 = vld [vmem:[%s890_s0 + $0x10] sm:$0xf0]  ;;  %v427_v28 = vld [vmem:[%s890_s0 + $0x8] sm:$0xf]  ;;  %v570_v29 = vld [vmem:[%s890_s0 + $0x14] sm:$0xf0]  ;;  %v420_v39 = vor.u32 %v569_v24, %v419_v23 }
  0x17   :  { %v600_v32 = vld [vmem:[%s890_s0 + $0x10c] sm:$0xf]  ;;  %v557_v33 = vld [vmem:[%s890_s0 + $0x118] sm:$0xf0]  ;;  %v53_v34 = vld [vmem:[%s892_s2] sm:$0xff]  ;;  %v605_v38 = vmov 0   ;;  %v424_v43 = vor.u32 %v567_v25, %v421_v27  ;;  %v428_v45 = vor.u32 %v570_v29, %v427_v28 }
  0x18   :  { %263 = vmatpush.bf16.msra.mxu0 %v452_v10  ;;  %v572_v35 = vld [vmem:[%s890_s0 + $0x2c] sm:$0xf]  ;;  %v445_v36 = vld [vmem:[%s890_s0 + $0x38] sm:$0xf0]  ;;  %v411_v37 = vld [vmem:[%s891_s1] sm:$0xf]  ;;  %604 = vset.pattern.permute.xlu0 %v605_v38  ;;  %v560_v44 = vor.u32 %v600_v32, %v557_v33 }
  0x19   :  { %318 = vmatpush.bf16.msrb.mxu1 %v476_v2  ;;  %291 = vmatpush.bf16.msra.mxu2 %v456_v11  ;;  %v566_v40 = vld [vmem:[%s891_s1 + $0x4] sm:$0xf0]  ;;  %v599_v41 = vld [vmem:[%s890_s0 + $0x104] sm:$0xf]  ;;  %v549_v42 = vld [vmem:[%s890_s0 + $0x110] sm:$0xf0]  ;;  %v448_v46 = vor.u32 %v572_v35, %v445_v36 }
  0x1a   :  { %345 = vmatpush.bf16.msrb.mxu3 %v496_v3  ;;  %57 = vperm.xlu0 %604, %v53_v34   ;;  %v412_v47 = vor.u32 %v566_v40, %v411_v37  ;;  %v552_v48 = vor.u32 %v599_v41, %v549_v42  ;;  %v568_v49 = vld [vmem:[%s890_s0 + $0xc] sm:$0xf]  ;;  %v429_v50 = vld [vmem:[%s890_s0 + $0x18] sm:$0xf0]  ;;  %vm870_vm5 = vmor %vm400_vm3, %vm399_vm2 }
  0x1b   :  { %v54_v51 = vld [vmem:[%s892_s2 + $0x8] sm:$0xff]  ;;  %v432_v52 = vor.u32 %v568_v49, %v429_v50 }
  0x1c   :  { %264 = vmatpush.bf16.msra.mxu0 %v436_v22 }
  0x1d   :  { %319 = vmatpush.bf16.msrb.mxu1 %v460_v14  ;;  %292 = vmatpush.bf16.msra.mxu2 %v440_v26 }
  0x1e   :  { %346 = vmatpush.bf16.msrb.mxu3 %v480_v15 }
  0x20   :  { %265 = vmatpush.bf16.msra.mxu0 %v420_v39 }
  0x21   :  { %320 = vmatpush.bf16.msrb.mxu1 %v444_v30  ;;  %293 = vmatpush.bf16.msra.mxu2 %v424_v43 }
  0x22   :  { %347 = vmatpush.bf16.msrb.mxu3 %v464_v31  ;;  %62 = vperm.xlu0 %604, %v54_v51  }
  0x23   :  { %266 = vmatmul.bf16.vlgmr.msra.gmra.mxu0 %v412_v47 }
  0x24   :  { %363 = vmatpush.bf16.msrb.mxu0 %v560_v44  ;;  %294 = vmatmul.bf16.vlgmr.msra.gmra.mxu2 %v412_v47 }
  0x25   :  { %321 = vmatpush.bf16.msrb.mxu1 %v428_v45  ;;  %307 = vmatpush.bf16.msrb.mxu2 %v552_v48 }
  0x26   :  { %348 = vmatpush.bf16.msrb.mxu3 %v448_v46 }
  0x28   :  { %322 = vmatmul.bf16.vlgmr.msrb.gmra.mxu1 %v412_v47 }
  0x2a   :  { %349 = vmatpush.bf16.msrb.mxu3 %v432_v52 }
  0x2d   :  { %350 = vmatmul.bf16.vlgmr.msrb.gmra.mxu3 %v412_v47 }
  0x33   :  { %564 = vmatmul.msk.bf16.vlgmr.msrb.gmra.mxu0 %vm254_vm0, %v740_v55 }
  0x34   :  { %562 = vmatmul.msk.bf16.vlgmr.msrb.gmra.mxu2 %vm254_vm0, %v740_v55 }
  0x8c   :  { %v58_v59 = vpop.permute.xlu0 %57 }
  0x8d   :  { %v281_v53 = vpop.f32.mrf.mxu1 }
  0x94   :  { %v63_v3 = vpop.permute.xlu0 %62 }
  0x95   :  { %v283_v56 = vpop.f32.mrf.mxu1 }
  0x96   :  { %v337_v54 = vpop.f32.mrf.mxu3 }
  0x9e   :  { %v339_v58 = vpop.f32.mrf.mxu3 }
  0xa0   :  { %v267_v57 = vpop.f32.mrf.mxu0 }
  0xa1   :  { %v268_v6 = vadd.f32 %v267_v57, %v58_v59 }
  0xa3   :  { %v282_v11 = vadd.f32 %v281_v53, %v268_v6 }
  0xa5   :  { %v323_v60 = vpop.f32.mrf.mxu1  ;;  %v378_v21 = vmul.f32 0.01, %v282_v11  ;;  %vm370_vm6 = vcmp.gt.f32.partialorder %v282_v11, 0.0 }
  0xa6   :  { %v324_v63 = vadd.f32 %v323_v60, %v58_v59 }
  0xa7   :  { %v295_v61 = vpop.f32.mrf.mxu2  ;;  %v386_v30 = vsel %vm370_vm6, %v282_v11, %v378_v21 }
  0xa8   :  { %v269_v62 = vpop.f32.mrf.mxu0  ;;  %v338_v1 = vadd.f32 %v337_v54, %v324_v63  ;;  %v296_v17 = vadd.f32 %v295_v61, %v58_v59 }
  0xa9   :  { %v270_v22 = vadd.f32 %v269_v62, %v63_v3 }
  0xaa   :  { %v380_v8 = vmul.f32 0.01, %v338_v1  ;;  %vm372_vm1 = vcmp.gt.f32.partialorder %v338_v1, 0.0 }
  0xab   :  { %v284_v29 = vadd.f32 %v283_v56, %v270_v22 }
  0xac   :  { %v388_v14 = vsel %vm372_vm1, %v338_v1, %v380_v8 }
  0xad   :  { %v325_v4 = vpop.f32.mrf.mxu1  ;;  %v382_v38 = vmul.f32 0.01, %v284_v29  ;;  %vm374_vm10 = vcmp.gt.f32.partialorder %v284_v29, 0.0 }
  0xae   :  { %v326_v55 = vadd.f32 %v325_v4, %v63_v3 }
  0xaf   :  { %v297_v5 = vpop.f32.mrf.mxu2  ;;  %v390_v41 = vsel %vm374_vm10, %v284_v29, %v382_v38 }
  0xb0   :  { %v351_v0 = vpop.f32.mrf.mxu3  ;;  %v365_v7 = vpop.f32.mrf.mxu0  ;;  %v340_v13 = vadd.f32 %v339_v58, %v326_v55  ;;  %v298_v35 = vadd.f32 %v297_v5, %v63_v3 }
  0xb1   :  { %v352_v2 = vadd.f32 %v351_v0, %v58_v59 }
  0xb2   :  { %v384_v25 = vmul.f32 0.01, %v340_v13  ;;  %vm376_vm7 = vcmp.gt.f32.partialorder %v340_v13, 0.0 }
  0xb3   :  { %v366_v9 = vadd.f32 %v365_v7, %v352_v2 }
  0xb4   :  { %v392_v33 = vsel %vm376_vm7, %v340_v13, %v384_v25 }
  0xb5   :  { %vm373_vm4 = vcmp.gt.f32.partialorder %v366_v9, 0.0  ;;  %v381_v10 = vmul.f32 0.01, %v366_v9 }
  0xb7   :  { %v389_v15 = vsel %vm373_vm4, %v366_v9, %v381_v10  ;;  %v309_v20 = vpop.f32.mrf.mxu2 }
  0xb8   :  { %v353_v12 = vpop.f32.mrf.mxu3  ;;  %v395_v18 = vpack.c.bf16 %v389_v15, %v388_v14  ;;  %v310_v23 = vadd.f32 %v309_v20, %v296_v17  ;;  %v367_v24 = vpop.f32.mrf.mxu0 }
  0xb9   :  { %v354_v19 = vadd.f32 %v353_v12, %v63_v3 }
  0xba   :  { %402 = vst.msk [vmem:[%s893_s3 + $0x8] sm:$0xff] %vm870_vm5, %v395_v18  ;;  %vm371_vm8 = vcmp.gt.f32.partialorder %v310_v23, 0.0  ;;  %v379_v27 = vmul.f32 0.01, %v310_v23 }
  0xbb   :  { %v368_v26 = vadd.f32 %v367_v24, %v354_v19 }
  0xbc   :  { %v387_v31 = vsel %vm371_vm8, %v310_v23, %v379_v27 }
  0xbd   :  { %vm377_vm9 = vcmp.gt.f32.partialorder %v368_v26, 0.0  ;;  %v385_v28 = vmul.f32 0.01, %v368_v26  ;;  %v394_v32 = vpack.c.bf16 %v387_v31, %v386_v30 }
  0xbf   :  { %v393_v34 = vsel %vm377_vm9, %v368_v26, %v385_v28  ;;  %398 = vst [vmem:[%s893_s3] sm:$0xff] %v394_v32  ;;  %v311_v37 = vpop.f32.mrf.mxu2 }
  0xc0   :  { %v397_v36 = vpack.c.bf16 %v393_v34, %v392_v33  ;;  %v312_v39 = vadd.f32 %v311_v37, %v298_v35 }
  0xc2   :  { %404 = vst.msk [vmem:[%s893_s3 + $0x18] sm:$0xff] %vm870_vm5, %v397_v36  ;;  %vm375_vm11 = vcmp.gt.f32.partialorder %v312_v39, 0.0  ;;  %v383_v40 = vmul.f32 0.01, %v312_v39 }
  0xc4   :  { %v391_v42 = vsel %vm375_vm11, %v312_v39, %v383_v40 }
  0xc5   :  { %v396_v43 = vpack.c.bf16 %v391_v42, %v390_v41 }
  0xc7   :  { %403 = vst [vmem:[%s893_s3 + $0x10] sm:$0xff] %v396_v43 }

// kernel: net_forward.8
= control target key start
LH: loop header
LB: loop body
LE: loop exit
PB: predicated region body
PF: predicated region fallthrough
CT: control target
= control target key end

     0   :  { %vm146_vm0 = vcmask 130048   ;;  %v333_v39 = vmov 0   ;;  %vm220_vm2 = vcmask 1043456   ;;  %vm221_vm3 = vcmask 957444   ;;  %s488_s0 = inlined_call_operand.vmem [shape: bf16[144,245], index: 0, kind: input, shape index: {}]   ;;  %s489_s1 = inlined_call_operand.vmem [shape: bf16[16,144], index: 1, kind: input, shape index: {}]   ;;  %s490_s2 = inlined_call_operand.vmem [shape: f32[16,1], index: 2, kind: input, shape index: {}]   ;;  %s491_s3 = inlined_call_operand.vmem [shape: bf16[16,245], index: 3, kind: output, shape index: {}]  }
   0x1   :  { %v295_v0 = vld [vmem:[%s488_s0 + $0x70] sm:$0xf]  ;;  %v328_v1 = vld [vmem:[%s488_s0 + $0x74] sm:$0xf0]  ;;  %v327_v2 = vld [vmem:[%s488_s0 + $0x74] sm:$0xf]  ;;  %332 = vset.pattern.permute.xlu0 %v333_v39 }
   0x2   :  { %v296_v3 = vor.u32 %v328_v1, %v295_v0  ;;  %v297_v4 = vld [vmem:[%s488_s0 + $0x78] sm:$0xf0]  ;;  %v287_v5 = vld [vmem:[%s488_s0 + $0x60] sm:$0xf]  ;;  %v326_v6 = vld [vmem:[%s488_s0 + $0x64] sm:$0xf0] }
   0x3   :  { %v300_v7 = vor.u32 %v327_v2, %v297_v4  ;;  %v325_v8 = vld [vmem:[%s488_s0 + $0x64] sm:$0xf]  ;;  %v289_v9 = vld [vmem:[%s488_s0 + $0x68] sm:$0xf0]  ;;  %v288_v10 = vor.u32 %v326_v6, %v287_v5  ;;  %v279_v12 = vld [vmem:[%s488_s0 + $0x50] sm:$0xf] }
   0x4   :  { %150 = vmatpush.bf16.msra.mxu0 %v296_v3  ;;  %v292_v11 = vor.u32 %v325_v8, %v289_v9  ;;  %v324_v13 = vld [vmem:[%s488_s0 + $0x54] sm:$0xf0]  ;;  %v323_v14 = vld [vmem:[%s488_s0 + $0x54] sm:$0xf]  ;;  %v281_v15 = vld [vmem:[%s488_s0 + $0x58] sm:$0xf0] }
   0x5   :  { %178 = vmatpush.bf16.msra.mxu2 %v300_v7  ;;  %v280_v16 = vor.u32 %v324_v13, %v279_v12  ;;  %v271_v17 = vld [vmem:[%s488_s0 + $0x40] sm:$0xf]  ;;  %v284_v18 = vor.u32 %v323_v14, %v281_v15  ;;  %v322_v19 = vld [vmem:[%s488_s0 + $0x44] sm:$0xf0]  ;;  %v329_v20 = vld [vmem:[%s488_s0 + $0x84] sm:$0xf] }
   0x6   :  { %v305_v21 = vld [vmem:[%s488_s0 + $0x88] sm:$0xf0]  ;;  %v321_v22 = vld [vmem:[%s488_s0 + $0x44] sm:$0xf]  ;;  %v272_v27 = vor.u32 %v322_v19, %v271_v17  ;;  %v303_v29 = vld [vmem:[%s488_s0 + $0x80] sm:$0xf] }
   0x7   :  { %v273_v23 = vld [vmem:[%s488_s0 + $0x48] sm:$0xf0]  ;;  %v308_v24 = vor.u32 %v329_v20, %v305_v21  ;;  %v311_v25 = vld [vmem:[%s489_s1 + $0x4] sm:$0xf]  ;;  %v330_v30 = vld [vmem:[%s488_s0 + $0x84] sm:$0xf0] }
   0x8   :  { %151 = vmatpush.bf16.msra.mxu0 %v288_v10  ;;  %v233_v26 = vld [vmem:[%s489_s1 + $0x8] sm:$0xf0]  ;;  %v276_v31 = vor.u32 %v321_v22, %v273_v23  ;;  %v263_v32 = vld [vmem:[%s488_s0 + $0x30] sm:$0xf]  ;;  %v320_v33 = vld [vmem:[%s488_s0 + $0x34] sm:$0xf0]  ;;  %v304_v34 = vor.u32 %v330_v30, %v303_v29 }
   0x9   :  { %179 = vmatpush.bf16.msra.mxu2 %v292_v11  ;;  %199 = vmatpush.bf16.msra.mxu3 %v308_v24  ;;  %v236_v28 = vor.u32 %v311_v25, %v233_v26  ;;  %v319_v35 = vld [vmem:[%s488_s0 + $0x34] sm:$0xf]  ;;  %v265_v36 = vld [vmem:[%s488_s0 + $0x38] sm:$0xf0]  ;;  %v35_v37 = vld [vmem:[%s490_s2] sm:$0xff]  ;;  %v264_v38 = vor.u32 %v320_v33, %v263_v32 }
   0xa   :  { %171 = vmatpush.bf16.msra.mxu1 %v304_v34  ;;  %v268_v40 = vor.u32 %v319_v35, %v265_v36  ;;  %v255_v41 = vld [vmem:[%s488_s0 + $0x20] sm:$0xf]  ;;  %v318_v42 = vld [vmem:[%s488_s0 + $0x24] sm:$0xf0]  ;;  %39 = vperm.xlu0 %332, %v35_v37   ;;  %v317_v43 = vld [vmem:[%s488_s0 + $0x24] sm:$0xf] }
   0xb   :  { %v257_v44 = vld [vmem:[%s488_s0 + $0x28] sm:$0xf0]  ;;  %v256_v45 = vor.u32 %v318_v42, %v255_v41  ;;  %v247_v47 = vld [vmem:[%s488_s0 + $0x10] sm:$0xf]  ;;  %v316_v48 = vld [vmem:[%s488_s0 + $0x14] sm:$0xf0] }
   0xc   :  { %152 = vmatpush.bf16.msra.mxu0 %v280_v16  ;;  %310 = vmatmul.msk.bf16.vlgmr.msra.gmra.mxu3 %vm146_vm0, %v236_v28  ;;  %v260_v46 = vor.u32 %v317_v43, %v257_v44  ;;  %v315_v49 = vld [vmem:[%s488_s0 + $0x14] sm:$0xf]  ;;  %v249_v50 = vld [vmem:[%s488_s0 + $0x18] sm:$0xf0]  ;;  %v36_v51 = vld [vmem:[%s490_s2 + $0x8] sm:$0xff]  ;;  %v248_v52 = vor.u32 %v316_v48, %v247_v47 }
   0xd   :  { %180 = vmatpush.bf16.msra.mxu2 %v284_v18  ;;  %309 = vmatmul.msk.bf16.vlgmr.msra.gmra.mxu1 %vm146_vm0, %v236_v28  ;;  %v252_v53 = vor.u32 %v315_v49, %v249_v50  ;;  %v239_v54 = vld [vmem:[%s488_s0] sm:$0xf]  ;;  %v314_v55 = vld [vmem:[%s488_s0 + $0x4] sm:$0xf0]  ;;  %v313_v56 = vld [vmem:[%s488_s0 + $0x4] sm:$0xf] }
   0xe   :  { %v241_v57 = vld [vmem:[%s488_s0 + $0x8] sm:$0xf0]  ;;  %v240_v58 = vor.u32 %v314_v55, %v239_v54  ;;  %v231_v59 = vld [vmem:[%s489_s1] sm:$0xf]  ;;  %v312_v60 = vld [vmem:[%s489_s1 + $0x4] sm:$0xf0] }
   0xf   :  { %v244_v61 = vor.u32 %v313_v56, %v241_v57  ;;  %v232_v62 = vor.u32 %v312_v60, %v231_v59  ;;  %vm222_vm5 = vmor %vm221_vm3, %vm220_vm2 }
  0x10   :  { %153 = vmatpush.bf16.msra.mxu0 %v272_v27 }
  0x11   :  { %181 = vmatpush.bf16.msra.mxu2 %v276_v31 }
  0x12   :  { %44 = vperm.xlu0 %332, %v36_v51  }
  0x14   :  { %154 = vmatpush.bf16.msra.mxu0 %v264_v38 }
  0x15   :  { %182 = vmatpush.bf16.msra.mxu2 %v268_v40 }
  0x18   :  { %155 = vmatpush.bf16.msra.mxu0 %v256_v45 }
  0x19   :  { %183 = vmatpush.bf16.msra.mxu2 %v260_v46 }
  0x1c   :  { %156 = vmatpush.bf16.msra.mxu0 %v248_v52 }
  0x1d   :  { %184 = vmatpush.bf16.msra.mxu2 %v252_v53 }
  0x20   :  { %157 = vmatpush.bf16.msra.mxu0 %v240_v58 }
  0x21   :  { %185 = vmatpush.bf16.msra.mxu2 %v244_v61 }
  0x23   :  { %158 = vmatmul.bf16.vlgmr.msra.gmra.mxu0 %v232_v62 }
  0x24   :  { %186 = vmatmul.bf16.vlgmr.msra.gmra.mxu2 %v232_v62 }
  0x7c   :  { %v40_v63 = vpop.permute.xlu0 %39 }
  0x84   :  { %v45_v8 = vpop.permute.xlu0 %44 }
  0x8a   :  { %v173_v2 = vpop.f32.mrf.mxu1 }
  0x8f   :  { %v201_v4 = vpop.f32.mrf.mxu3 }
  0x92   :  { %v175_v13 = vpop.f32.mrf.mxu1 }
  0x97   :  { %v203_v20 = vpop.f32.mrf.mxu3 }
  0xa0   :  { %v159_v0 = vpop.f32.mrf.mxu0 }
  0xa1   :  { %v160_v1 = vadd.f32 %v159_v0, %v40_v63 }
  0xa3   :  { %v174_v3 = vadd.f32 %v173_v2, %v160_v1 }
  0xa5   :  { %v210_v9 = vmul.f32 0.01, %v174_v3  ;;  %vm206_vm1 = vcmp.gt.f32.partialorder %v174_v3, 0.0 }
  0xa7   :  { %v187_v5 = vpop.f32.mrf.mxu2  ;;  %v214_v14 = vsel %vm206_vm1, %v174_v3, %v210_v9 }
  0xa8   :  { %v188_v6 = vadd.f32 %v187_v5, %v40_v63  ;;  %v161_v7 = vpop.f32.mrf.mxu0 }
  0xa9   :  { %v162_v11 = vadd.f32 %v161_v7, %v45_v8 }
  0xaa   :  { %v202_v10 = vadd.f32 %v201_v4, %v188_v6 }
  0xab   :  { %v176_v16 = vadd.f32 %v175_v13, %v162_v11 }
  0xac   :  { %vm207_vm4 = vcmp.gt.f32.partialorder %v202_v10, 0.0  ;;  %v211_v12 = vmul.f32 0.01, %v202_v10 }
  0xad   :  { %v212_v21 = vmul.f32 0.01, %v176_v16  ;;  %vm208_vm6 = vcmp.gt.f32.partialorder %v176_v16, 0.0 }
  0xae   :  { %v215_v15 = vsel %vm207_vm4, %v202_v10, %v211_v12 }
  0xaf   :  { %v218_v17 = vpack.c.bf16 %v215_v15, %v214_v14  ;;  %v189_v18 = vpop.f32.mrf.mxu2  ;;  %v216_v24 = vsel %vm208_vm6, %v176_v16, %v212_v21 }
  0xb0   :  { %v190_v19 = vadd.f32 %v189_v18, %v45_v8 }
  0xb1   :  { %223 = vst.msk [vmem:[%s491_s3] sm:$0xff] %vm222_vm5, %v218_v17 }
  0xb2   :  { %v204_v22 = vadd.f32 %v203_v20, %v190_v19 }
  0xb4   :  { %vm209_vm7 = vcmp.gt.f32.partialorder %v204_v22, 0.0  ;;  %v213_v23 = vmul.f32 0.01, %v204_v22 }
  0xb6   :  { %v217_v25 = vsel %vm209_vm7, %v204_v22, %v213_v23 }
  0xb7   :  { %v219_v26 = vpack.c.bf16 %v217_v25, %v216_v24 }
  0xb9   :  { %224 = vst.msk [vmem:[%s491_s3 + $0x8] sm:$0xff] %vm222_vm5, %v219_v26 }

// kernel: net_forward.9
= control target key start
LH: loop header
LB: loop body
LE: loop exit
PB: predicated region body
PF: predicated region fallthrough
CT: control target
= control target key end

     0   :  { %s1964_s0 = inlined_call_operand.vmem [shape: bf16[784,5], index: 0, kind: input, shape index: {}]   ;;  %s1965_s1 = inlined_call_operand.vmem [shape: bf16[64,784], index: 1, kind: input, shape index: {}]   ;;  %s1966_s2 = inlined_call_operand.vmem [shape: f32[64,1], index: 2, kind: input, shape index: {}]   ;;  %s1967_s3 = inlined_call_operand.vmem [shape: f32[64,1], index: 3, kind: input, shape index: {}]   ;;  %s1968_s4 = inlined_call_operand.<no memory space> [shape: f32[1,1], index: 4, kind: input, shape index: {}]   ;;  %s1969_s5 = inlined_call_operand.hbm [shape: f32[1,1], index: 5, kind: output, shape index: {0}]   ;;  %s1970_s6 = inlined_call_operand.hbm [shape: f32[1,1], index: 6, kind: output, shape index: {1}]  }
   0x1   :  { %v12_v0 = vstv %s1968_s4 }
   0x2   :  { %13 = vst [vmem:[#allocation2] sm:$0x1] %v12_v0 }
   0x3   :  { %14 = vsyncpa [#allocation4], 0  ;;  %v1375_v1 = vld [vmem:[%s1964_s0 + $0x38] sm:$0xff]  ;;  %v1374_v4 = vld [vmem:[%s1964_s0 + $0x30] sm:$0xff]  ;;  %v1493_v13 = vmov 0  }
   0x4   :  { %v1383_v2 = vld [vmem:[%s1964_s0 + $0x78] sm:$0xff]  ;;  %659 = vmatpush.bf16.msra.mxu0 %v1375_v1  ;;  %1417 = vmatpush.bf16.msra.mxu3 %v1375_v1  ;;  %v1382_v5 = vld [vmem:[%s1964_s0 + $0x70] sm:$0xff]  ;;  %v1373_v7 = vld [vmem:[%s1964_s0 + $0x28] sm:$0xff] }
   0x5   :  { %v1391_v3 = vld [vmem:[%s1964_s0 + $0xb8] sm:$0xff]  ;;  %688 = vmatpush.bf16.msra.mxu1 %v1383_v2  ;;  %v1390_v6 = vld [vmem:[%s1964_s0 + $0xb0] sm:$0xff]  ;;  %v1381_v8 = vld [vmem:[%s1964_s0 + $0x68] sm:$0xff]  ;;  %1438 = vset.pattern.permute.xlu0 %v1493_v13 }
   0x6   :  { %717 = vmatpush.bf16.msra.mxu2 %v1391_v3  ;;  %v1389_v9 = vld [vmem:[%s1964_s0 + $0xa8] sm:$0xff]  ;;  %v1372_v10 = vld [vmem:[%s1964_s0 + $0x20] sm:$0xff]  ;;  %1439 = vset.pattern.permute.xlu1 %v1493_v13  ;;  %v1371_v15 = vld [vmem:[%s1964_s0 + $0x18] sm:$0xff] }
   0x7   :  { %v1380_v11 = vld [vmem:[%s1964_s0 + $0x60] sm:$0xff]  ;;  %1440 = vset.pattern.permute.xlu2 %v1493_v13  ;;  %v1379_v16 = vld [vmem:[%s1964_s0 + $0x58] sm:$0xff] }
   0x8   :  { %660 = vmatpush.bf16.msra.mxu0 %v1374_v4  ;;  %1418 = vmatpush.bf16.msra.mxu3 %v1374_v4  ;;  %v1388_v12 = vld [vmem:[%s1964_s0 + $0xa0] sm:$0xff]  ;;  %v1387_v17 = vld [vmem:[%s1964_s0 + $0x98] sm:$0xff] }
   0x9   :  { %689 = vmatpush.bf16.msra.mxu1 %v1382_v5  ;;  %v164_v14 = vld [vmem:[%s1966_s2] sm:$0xff] }
   0xa   :  { %718 = vmatpush.bf16.msra.mxu2 %v1390_v6  ;;  %174 = vperm.xlu0 %1438, %v164_v14  }
   0xc   :  { %661 = vmatpush.bf16.msra.mxu0 %v1373_v7  ;;  %1419 = vmatpush.bf16.msra.mxu3 %v1373_v7 }
   0xd   :  { %690 = vmatpush.bf16.msra.mxu1 %v1381_v8 }
   0xe   :  { %719 = vmatpush.bf16.msra.mxu2 %v1389_v9 }
  0x10   :  { %662 = vmatpush.bf16.msra.mxu0 %v1372_v10  ;;  %1420 = vmatpush.bf16.msra.mxu3 %v1372_v10 }
  0x11   :  { %691 = vmatpush.bf16.msra.mxu1 %v1380_v11 }
  0x12   :  { %720 = vmatpush.bf16.msra.mxu2 %v1388_v12 }
  0x13   :  { %15 = vsyncpa [#allocation6], 0  ;;  %v1370_v18 = vld [vmem:[%s1964_s0 + $0x10] sm:$0xff]  ;;  %v165_v21 = vld [vmem:[%s1966_s2 + $0x8] sm:$0xff]  ;;  %vm646_vm0 = vcmask 130048   ;;  %vm942_vm6 = vcmask 39936  }
  0x14   :  { %663 = vmatpush.bf16.msra.mxu0 %v1371_v15  ;;  %1421 = vmatpush.bf16.msra.mxu3 %v1371_v15  ;;  %v1378_v19 = vld [vmem:[%s1964_s0 + $0x50] sm:$0xff]  ;;  %v1369_v22 = vld [vmem:[%s1964_s0 + $0x8] sm:$0xff]  ;;  %v1368_v25 = vld [vmem:[%s1964_s0] sm:$0xff]  ;;  %vm31_vm14 = vcmask 0   ;;  %s1014_s10 = sshll.u32 %s1970_s6, 4  ;;  %s1003_s13 = sshll.u32 %s1969_s5, 4  ;;  %s1015_s10 = int_to_ptr.hbm [resolvable:$true] %s1014_s10  ;;  %s1004_s13 = int_to_ptr.hbm [resolvable:$true] %s1003_s13 }
  0x15   :  { %692 = vmatpush.bf16.msra.mxu1 %v1379_v16  ;;  %v1386_v20 = vld [vmem:[%s1964_s0 + $0x90] sm:$0xff]  ;;  %v1377_v23 = vld [vmem:[%s1964_s0 + $0x48] sm:$0xff]  ;;  %179 = vperm.xlu0 %1438, %v165_v21   ;;  %v1376_v27 = vld [vmem:[%s1964_s0 + $0x40] sm:$0xff] }
  0x16   :  { %721 = vmatpush.bf16.msra.mxu2 %v1387_v17  ;;  %v1385_v24 = vld [vmem:[%s1964_s0 + $0x88] sm:$0xff]  ;;  %v166_v26 = vld [vmem:[%s1966_s2 + $0x10] sm:$0xff]  ;;  %v1384_v28 = vld [vmem:[%s1964_s0 + $0x80] sm:$0xff] }
  0x17   :  { %v1030_v29 = vld [vmem:[%s1965_s1] sm:$0xf]  ;;  %v1343_v30 = vld [vmem:[%s1965_s1 + $0x18] sm:$0xf0]  ;;  %184 = vperm.xlu1 %1439, %v166_v26   ;;  %v1086_v31 = vld [vmem:[%s1965_s1 + $0x70] sm:$0xf] }
  0x18   :  { %664 = vmatpush.bf16.msra.mxu0 %v1370_v18  ;;  %1422 = vmatpush.bf16.msra.mxu3 %v1370_v18  ;;  %v1357_v32 = vld [vmem:[%s1965_s1 + $0x88] sm:$0xf0]  ;;  %v1340_v33 = vld [vmem:[%s1965_s1 + $0x4] sm:$0xf]  ;;  %v1032_v34 = vld [vmem:[%s1965_s1 + $0x1c] sm:$0xf0]  ;;  %v1031_v39 = vor.u32 %v1343_v30, %v1030_v29 }
  0x19   :  { %693 = vmatpush.bf16.msra.mxu1 %v1378_v19  ;;  %v1038_v35 = vld [vmem:[%s1965_s1 + $0x8] sm:$0xf]  ;;  %v1344_v36 = vld [vmem:[%s1965_s1 + $0x20] sm:$0xf0]  ;;  %v1407_v37 = vld [vmem:[%s1964_s0 + $0x138] sm:$0xff]  ;;  %v1087_v40 = vor.u32 %v1357_v32, %v1086_v31  ;;  %v1035_v41 = vor.u32 %v1340_v33, %v1032_v34 }
  0x1a   :  { %722 = vmatpush.bf16.msra.mxu2 %v1386_v20  ;;  %v1399_v38 = vld [vmem:[%s1964_s0 + $0xf8] sm:$0xff]  ;;  %v1039_v42 = vor.u32 %v1344_v36, %v1038_v35  ;;  %v1649_v43 = vld [vmem:[%s1964_s0 + $0x180] sm:$0xff]  ;;  %v1406_v45 = vld [vmem:[%s1964_s0 + $0x130] sm:$0xff] }
  0x1b   :  { %v1654_v44 = vld [vmem:[%s1964_s0 + $0x178] sm:$0xff]  ;;  %v1398_v46 = vld [vmem:[%s1964_s0 + $0xf0] sm:$0xff]  ;;  %v168_v49 = vld [vmem:[%s1966_s2 + $0x20] sm:$0xff] }
  0x1c   :  { %665 = vmatpush.bf16.msra.mxu0 %v1369_v22  ;;  %1423 = vmatpush.bf16.msra.mxu3 %v1369_v22  ;;  %v167_v47 = vld [vmem:[%s1966_s2 + $0x18] sm:$0xff]  ;;  %v1670_v48 = vld [vmem:[%s1964_s0 + $0x170] sm:$0xff]  ;;  %v1405_v51 = vld [vmem:[%s1964_s0 + $0x128] sm:$0xff] }
  0x1d   :  { %694 = vmatpush.bf16.msra.mxu1 %v1377_v23  ;;  %v170_v50 = vld [vmem:[%s1966_s2 + $0x30] sm:$0xff]  ;;  %v1397_v52 = vld [vmem:[%s1964_s0 + $0xe8] sm:$0xff]  ;;  %194 = vperm.xlu2 %1440, %v168_v49   ;;  %v1404_v54 = vld [vmem:[%s1964_s0 + $0x120] sm:$0xff] }
  0x1e   :  { %723 = vmatpush.bf16.msra.mxu2 %v1385_v24  ;;  %204 = vperm.xlu0 %1438, %v170_v50   ;;  %v1688_v53 = vld [vmem:[%s1964_s0 + $0x168] sm:$0xff]  ;;  %v1396_v55 = vld [vmem:[%s1964_s0 + $0xe0] sm:$0xff]  ;;  %v1058_v56 = vld [vmem:[%s1965_s1 + $0x38] sm:$0xf] }
  0x1f   :  { %189 = vperm.xlu1 %1439, %v167_v47   ;;  %v1350_v57 = vld [vmem:[%s1965_s1 + $0x50] sm:$0xf0]  ;;  %v1114_v58 = vld [vmem:[%s1965_s1 + $0xa8] sm:$0xf]  ;;  %v1364_v59 = vld [vmem:[%s1965_s1 + $0xc0] sm:$0xf0] }
  0x20   :  { %666 = vmatpush.bf16.msra.mxu0 %v1368_v25  ;;  %1424 = vmatpush.bf16.msra.mxu3 %v1368_v25  ;;  %v1347_v60 = vld [vmem:[%s1965_s1 + $0x3c] sm:$0xf]  ;;  %v1060_v61 = vld [vmem:[%s1965_s1 + $0x54] sm:$0xf0]  ;;  %v1066_v63 = vld [vmem:[%s1965_s1 + $0x40] sm:$0xf]  ;;  %v1059_v4 = vor.u32 %v1350_v57, %v1058_v56  ;;  %v1115_v5 = vor.u32 %v1364_v59, %v1114_v58 }
  0x21   :  { %695 = vmatpush.bf16.msra.mxu1 %v1376_v27  ;;  %v171_v62 = vld [vmem:[%s1966_s2 + $0x38] sm:$0xff]  ;;  %v1727_v1 = vld [vmem:[%s1964_s0 + $0x160] sm:$0xff]  ;;  %v1063_v6 = vor.u32 %v1347_v60, %v1060_v61  ;;  %v1402_v9 = vld [vmem:[%s1964_s0 + $0x110] sm:$0xff] }
  0x22   :  { %724 = vmatpush.bf16.msra.mxu2 %v1384_v28  ;;  %v1351_v0 = vld [vmem:[%s1965_s1 + $0x58] sm:$0xf0]  ;;  %v1394_v10 = vld [vmem:[%s1964_s0 + $0xd0] sm:$0xff]  ;;  %v169_v11 = vld [vmem:[%s1966_s2 + $0x28] sm:$0xff] }
  0x23   :  { %667 = vmatmul.bf16.vlgmr.msra.gmra.mxu0 %v1031_v39  ;;  %677 = vmatmul.bf16.vlgmr.msra.gmra.mxu3 %v1087_v40  ;;  %v1403_v2 = vld [vmem:[%s1964_s0 + $0x118] sm:$0xff]  ;;  %v1067_v7 = vor.u32 %v1351_v0, %v1066_v63  ;;  %v1410_v12 = vld [vmem:[%s1964_s0 + $0x150] sm:$0xff]  ;;  %v1401_v13 = vld [vmem:[%s1964_s0 + $0x108] sm:$0xff] }
  0x24   :  { %775 = vmatpush.bf16.msrb.mxu0 %v1407_v37  ;;  %746 = vmatpush.bf16.msrb.mxu3 %v1399_v38  ;;  %v1395_v3 = vld [vmem:[%s1964_s0 + $0xd8] sm:$0xff]  ;;  %v1393_v14 = vld [vmem:[%s1964_s0 + $0xc8] sm:$0xff]  ;;  %v1400_v16 = vld [vmem:[%s1964_s0 + $0x100] sm:$0xff] }
  0x25   :  { %696 = vmatmul.bf16.vlgmr.msra.gmra.mxu1 %v1035_v41  ;;  %725 = vmatmul.bf16.vlgmr.msra.gmra.mxu2 %v1039_v42  ;;  %v1739_v8 = vld [vmem:[%s1964_s0 + $0x158] sm:$0xff]  ;;  %v1409_v15 = vld [vmem:[%s1964_s0 + $0x148] sm:$0xff]  ;;  %v1392_v17 = vld [vmem:[%s1964_s0 + $0xc0] sm:$0xff] }
  0x26   :  { %840 = vmatpush.bf16.msrb.mxu2 %v1649_v43  ;;  %1425 = vmatpush.bf16.msrb.mxu1 %v1654_v44  ;;  %v1354_v18 = vld [vmem:[%s1965_s1 + $0x74] sm:$0xf]  ;;  %v1088_v19 = vld [vmem:[%s1965_s1 + $0x8c] sm:$0xf0]  ;;  %v1341_v20 = vld [vmem:[%s1965_s1 + $0xc] sm:$0xf] }
  0x27   :  { %209 = vperm.xlu1 %1439, %v171_v62   ;;  %199 = vperm.xlu2 %1440, %v169_v11   ;;  %v1040_v21 = vld [vmem:[%s1965_s1 + $0x24] sm:$0xf0]  ;;  %v1046_v22 = vld [vmem:[%s1965_s1 + $0x10] sm:$0xf]  ;;  %v1345_v23 = vld [vmem:[%s1965_s1 + $0x28] sm:$0xf0]  ;;  %v1091_v29 = vor.u32 %v1354_v18, %v1088_v19 }
  0x28   :  { %776 = vmatpush.bf16.msrb.mxu0 %v1406_v45  ;;  %747 = vmatpush.bf16.msrb.mxu3 %v1398_v46  ;;  %v1094_v24 = vld [vmem:[%s1965_s1 + $0x78] sm:$0xf]  ;;  %v1358_v25 = vld [vmem:[%s1965_s1 + $0x90] sm:$0xf0]  ;;  %v1408_v26 = vld [vmem:[%s1964_s0 + $0x140] sm:$0xff]  ;;  %v1043_v27 = vor.u32 %v1341_v20, %v1040_v21  ;;  %v1047_v28 = vor.u32 %v1345_v23, %v1046_v22  ;;  %s1496_s0 = smov [#allocation3]  }
  0x29   :  { %v1095_v30 = vor.u32 %v1358_v25, %v1094_v24  ;;  %v887_v31 = vld [vmem:[%s1967_s3 + $0x8] sm:$0xff]  ;;  %v1348_v33 = vld [vmem:[%s1965_s1 + $0x44] sm:$0xf]  ;;  %v1068_v34 = vld [vmem:[%s1965_s1 + $0x5c] sm:$0xf0]  ;;  %s1001_s11 = sshll.u32 %s1496_s0, 4  ;;  %s1002_s11 = int_to_ptr.vmem [resolvable:$true] %s1001_s11 }
  0x2a   :  { %1426 = vmatpush.bf16.msrb.mxu1 %v1670_v48  ;;  %901 = vperm.xlu0 %1438, %v887_v31   ;;  %v1361_v32 = vld [vmem:[%s1965_s1 + $0xac] sm:$0xf]  ;;  %v1074_v35 = vld [vmem:[%s1965_s1 + $0x48] sm:$0xf]  ;;  %v1352_v36 = vld [vmem:[%s1965_s1 + $0x60] sm:$0xf0]  ;;  %v1071_v40 = vor.u32 %v1348_v33, %v1068_v34 }
  0x2b   :  { %v1116_v37 = vld [vmem:[%s1965_s1 + $0xc4] sm:$0xf0]  ;;  %v1122_v38 = vld [vmem:[%s1965_s1 + $0xb0] sm:$0xf]  ;;  %v1365_v39 = vld [vmem:[%s1965_s1 + $0xc8] sm:$0xf0]  ;;  %v1075_v41 = vor.u32 %v1352_v36, %v1074_v35 }
  0x2c   :  { %777 = vmatpush.bf16.msrb.mxu0 %v1405_v51  ;;  %748 = vmatpush.bf16.msrb.mxu3 %v1397_v52  ;;  %v1119_v42 = vor.u32 %v1361_v32, %v1116_v37  ;;  %v890_v45 = vld [vmem:[%s1967_s3 + $0x20] sm:$0xff]  ;;  %v891_v46 = vld [vmem:[%s1967_s3 + $0x28] sm:$0xff]  ;;  %v1355_v47 = vld [vmem:[%s1965_s1 + $0x7c] sm:$0xf] }
  0x2d   :  { %v893_v49 = vld [vmem:[%s1967_s3 + $0x38] sm:$0xff]  ;;  %v1102_v50 = vld [vmem:[%s1965_s1 + $0x80] sm:$0xf]  ;;  %v1349_v52 = vld [vmem:[%s1965_s1 + $0x4c] sm:$0xf] }
  0x2e   :  { %1427 = vmatpush.bf16.msrb.mxu1 %v1688_v53  ;;  %v1359_v51 = vld [vmem:[%s1965_s1 + $0x98] sm:$0xf0]  ;;  %v964_v60 = vld [vmem:[#allocation2] sm:$0x1]  ;;  %v1362_v63 = vld [vmem:[%s1965_s1 + $0xb4] sm:$0xf] }
  0x2f   :  { %v1103_v57 = vor.u32 %v1359_v51, %v1102_v50  ;;  %v886_v61 = vld [vmem:[%s1967_s3] sm:$0xff]  ;;  %v889_v62 = vld [vmem:[%s1967_s3 + $0x18] sm:$0xff]  ;;  %v1124_v0 = vld [vmem:[%s1965_s1 + $0xcc] sm:$0xf0] }
  0x30   :  { %778 = vmatpush.bf16.msrb.mxu0 %v1404_v54  ;;  %749 = vmatpush.bf16.msrb.mxu3 %v1396_v55  ;;  %v1054_v54 = vld [vmem:[%s1965_s1 + $0x18] sm:$0xf]  ;;  %v1346_v55 = vld [vmem:[%s1965_s1 + $0x30] sm:$0xf0]  ;;  %v1110_v18 = vld [vmem:[%s1965_s1 + $0x88] sm:$0xf] }
  0x31   :  { %v1055_v59 = vor.u32 %v1346_v55, %v1054_v54  ;;  %896 = vperm.xlu2 %1440, %v886_v61   ;;  %v892_v11 = vld [vmem:[%s1967_s3 + $0x30] sm:$0xff]  ;;  %v1360_v19 = vld [vmem:[%s1965_s1 + $0xa0] sm:$0xf0] }
  0x32   :  { %1428 = vmatpush.bf16.msrb.mxu1 %v1727_v1  ;;  %916 = vperm.xlu0 %1438, %v890_v45   ;;  %v1111_v23 = vor.u32 %v1360_v19, %v1110_v18 }
  0x33   :  { %672 = vmatmul.bf16.gmra.mxu0 %v1059_v4  ;;  %682 = vmatmul.bf16.gmra.mxu3 %v1115_v5  ;;  %v1104_v4 = vld [vmem:[%s1965_s1 + $0x9c] sm:$0xf0]  ;;  %v1082_v5 = vld [vmem:[%s1965_s1 + $0x50] sm:$0xf] }
  0x34   :  { %779 = vmatpush.bf16.msrb.mxu0 %v1403_v2  ;;  %750 = vmatpush.bf16.msrb.mxu3 %v1395_v3  ;;  %v1366_v2 = vld [vmem:[%s1965_s1 + $0xd0] sm:$0xf0]  ;;  %v1356_v3 = vld [vmem:[%s1965_s1 + $0x84] sm:$0xf] }
  0x35   :  { %701 = vmatmul.bf16.gmra.mxu1 %v1063_v6  ;;  %730 = vmatmul.bf16.gmra.mxu2 %v1067_v7  ;;  %v1353_v6 = vld [vmem:[%s1965_s1 + $0x68] sm:$0xf0]  ;;  %v1127_v7 = vor.u32 %v1362_v63, %v1124_v0 }
  0x36   :  { %1429 = vmatpush.bf16.msrb.mxu1 %v1739_v8 }
  0x38   :  { %780 = vmatpush.bf16.msrb.mxu0 %v1402_v9  ;;  %751 = vmatpush.bf16.msrb.mxu3 %v1394_v10  ;;  %v1107_v9 = vor.u32 %v1356_v3, %v1104_v4  ;;  %v1083_v10 = vor.u32 %v1353_v6, %v1082_v5 }
  0x39   :  { %911 = vperm.xlu2 %1440, %v889_v62  }
  0x3a   :  { %1430 = vmatpush.bf16.msrb.mxu1 %v1410_v12  ;;  %931 = vperm.xlu0 %1438, %v893_v49  }
  0x3c   :  { %781 = vmatpush.bf16.msrb.mxu0 %v1401_v13  ;;  %752 = vmatpush.bf16.msrb.mxu3 %v1393_v14  ;;  %v1048_v13 = vld [vmem:[%s1965_s1 + $0x2c] sm:$0xf0]  ;;  %v1363_v14 = vld [vmem:[%s1965_s1 + $0xbc] sm:$0xf] }
  0x3e   :  { %1431 = vmatpush.bf16.msrb.mxu1 %v1409_v15 }
  0x40   :  { %782 = vmatpush.bf16.msrb.mxu0 %v1400_v16  ;;  %753 = vmatpush.bf16.msrb.mxu3 %v1392_v17  ;;  %v1367_v16 = vld [vmem:[%s1965_s1 + $0xd8] sm:$0xf0]  ;;  %v1132_v17 = vld [vmem:[%s1965_s1 + $0xd4] sm:$0xf0] }
  0x41   :  { %926 = vperm.xlu2 %1440, %v892_v11   ;;  %v1135_v22 = vor.u32 %v1363_v14, %v1132_v17 }
  0x42   :  { %1432 = vmatpush.bf16.msrb.mxu1 %v1408_v26 }
  0x43   :  { %754 = vmatmul.bf16.vlgmr.msrb.gmra.mxu3 %v1043_v27  ;;  %783 = vmatmul.bf16.vlgmr.msrb.gmra.mxu0 %v1047_v28 }
  0x44   :  { %804 = vmatpush.bf16.msra.mxu0 %v1654_v44  ;;  %1433 = vmatpush.bf16.msra.mxu3 %v1649_v43  ;;  %v1123_v43 = vor.u32 %v1365_v39, %v1122_v38  ;;  %v888_v44 = vld [vmem:[%s1967_s3 + $0x10] sm:$0xff] }
  0x45   :  { %706 = vmatmul.bf16.gmra.mxu1 %v1091_v29  ;;  %735 = vmatmul.bf16.gmra.mxu2 %v1095_v30 }
  0x46   :  { %906 = vperm.xlu1 %1439, %v888_v44  }
  0x48   :  { %805 = vmatpush.bf16.msra.mxu0 %v1670_v48  ;;  %v1096_v48 = vld [vmem:[%s1965_s1 + $0x94] sm:$0xf0] }
  0x49   :  { %v1099_v56 = vor.u32 %v1355_v47, %v1096_v48 }
  0x4c   :  { %806 = vmatpush.bf16.msra.mxu0 %v1688_v53  ;;  %v1076_v53 = vld [vmem:[%s1965_s1 + $0x64] sm:$0xf0] }
  0x4d   :  { %v1079_v58 = vor.u32 %v1349_v52, %v1076_v53 }
  0x4e   :  { %921 = vperm.xlu1 %1439, %v891_v46  }
  0x50   :  { %807 = vmatpush.bf16.msra.mxu0 %v1727_v1  ;;  %v1130_v1 = vld [vmem:[%s1965_s1 + $0xb8] sm:$0xf] }
  0x53   :  { %759 = vmatmul.bf16.gmra.mxu3 %v1071_v40  ;;  %788 = vmatmul.bf16.gmra.mxu0 %v1075_v41 }
  0x54   :  { %808 = vmatpush.bf16.msra.mxu0 %v1739_v8  ;;  %v1131_v8 = vor.u32 %v1366_v2, %v1130_v1 }
  0x55   :  { %711 = vmatmul.bf16.gmra.mxu1 %v1119_v42  ;;  %740 = vmatmul.bf16.gmra.mxu2 %v1123_v43 }
  0x56   :  { %967 = vperm.xlu1 %1439, %v964_v60  }
  0x58   :  { %809 = vmatpush.bf16.msra.mxu0 %v1410_v12  ;;  %v1342_v12 = vld [vmem:[%s1965_s1 + $0x14] sm:$0xf] }
  0x59   :  { %v1051_v20 = vor.u32 %v1342_v12, %v1048_v13 }
  0x5c   :  { %810 = vmatpush.bf16.msra.mxu0 %v1409_v15  ;;  %v1138_v15 = vld [vmem:[%s1965_s1 + $0xc0] sm:$0xf]  ;;  %s1495_s1 = smov [#allocation5]  }
  0x5d   :  { %v1139_v21 = vor.u32 %v1367_v16, %v1138_v15  ;;  %s1012_s7 = sshll.u32 %s1495_s1, 4  ;;  %s1013_s7 = int_to_ptr.vmem [resolvable:$true] %s1012_s7 }
  0x60   :  { %811 = vmatpush.bf16.msra.mxu0 %v1408_v26 }
  0x63   :  { %764 = vmatmul.bf16.gmra.mxu3 %v1099_v56  ;;  %793 = vmatmul.bf16.gmra.mxu0 %v1103_v57 }
  0x65   :  { %817 = vmatmul.bf16.vlgmr.msrb.gmra.mxu1 %v1079_v58  ;;  %1336 = vmatmul.msk.bf16.vlgmr.msrb.gmra.mxu2 %vm646_vm0, %v1055_v59 }
  0x73   :  { %769 = vmatmul.bf16.gmra.mxu3 %v1127_v7  ;;  %798 = vmatmul.bf16.gmra.mxu0 %v1131_v8 }
  0x75   :  { %822 = vmatmul.bf16.gmra.mxu1 %v1107_v9  ;;  %1337 = vmatmul.msk.bf16.gmra.mxu2 %vm646_vm0, %v1083_v10 }
  0x77   :  { %v195_v19 = vpop.permute.xlu2 %194 }
  0x7c   :  { %v175_v24 = vpop.permute.xlu0 %174 }
  0x83   :  { %812 = vmatmul.bf16.vlgmr.msra.gmra.mxu0 %v1051_v20  ;;  %1339 = vmatmul.msk.bf16.vlgmr.msra.gmra.mxu3 %vm646_vm0, %v1139_v21 }
  0x85   :  { %827 = vmatmul.bf16.gmra.mxu1 %v1135_v22  ;;  %1338 = vmatmul.msk.bf16.gmra.mxu2 %vm646_vm0, %v1111_v23 }
  0x87   :  { %v180_v30 = vpop.permute.xlu0 %179 }
  0x89   :  { %v185_v37 = vpop.permute.xlu1 %184 }
  0x91   :  { %v190_v47 = vpop.permute.xlu1 %189 }
  0xa0   :  { %v668_v25 = vpop.f32.mrf.mxu0 }
  0xa1   :  { %v669_v26 = vadd.f32 %v668_v25, %v175_v24 }
  0xa2   :  { %v697_v27 = vpop.f32.mrf.mxu1 }
  0xa3   :  { %v698_v28 = vadd.f32 %v697_v27, %v669_v26  ;;  %v200_v26 = vpop.permute.xlu2 %199  ;;  %v205_v27 = vpop.permute.xlu0 %204 }
  0xa6   :  { %v678_v29 = vpop.f32.mrf.mxu3 }
  0xa7   :  { %v679_v25 = vadd.f32 %v678_v29, %v195_v19 }
  0xa8   :  { %v726_v31 = vpop.f32.mrf.mxu2  ;;  %v670_v33 = vpop.f32.mrf.mxu0 }
  0xa9   :  { %v727_v32 = vadd.f32 %v726_v31, %v698_v28  ;;  %v671_v34 = vadd.f32 %v670_v33, %v180_v30  ;;  %v210_v31 = vpop.permute.xlu1 %209 }
  0xaa   :  { %v699_v35 = vpop.f32.mrf.mxu1 }
  0xab   :  { %v700_v36 = vadd.f32 %v699_v35, %v671_v34 }
  0xae   :  { %v1926_v38 = vpop.f32.mrf.mxu3 }
  0xb0   :  { %v728_v39 = vpop.f32.mrf.mxu2  ;;  %v673_v41 = vpop.f32.mrf.mxu0 }
  0xb1   :  { %v1928_v40 = vadd.f32 %v728_v39, %v700_v36  ;;  %v674_v42 = vadd.f32 %v673_v41, %v185_v37 }
  0xb2   :  { %v702_v43 = vpop.f32.mrf.mxu1 }
  0xb3   :  { %v703_v44 = vadd.f32 %v702_v43, %v674_v42 }
  0xb6   :  { %v683_v45 = vpop.f32.mrf.mxu3 }
  0xb8   :  { %v731_v46 = vpop.f32.mrf.mxu2  ;;  %v675_v49 = vpop.f32.mrf.mxu0 }
  0xb9   :  { %v732_v48 = vadd.f32 %v731_v46, %v703_v44  ;;  %v676_v50 = vadd.f32 %v675_v49, %v190_v47  ;;  %v681_v47 = vadd.f32 %v1926_v38, %v200_v26 }
  0xba   :  { %v704_v51 = vpop.f32.mrf.mxu1 }
  0xbb   :  { %v705_v52 = vadd.f32 %v704_v51, %v676_v50 }
  0xbe   :  { %v685_v53 = vpop.f32.mrf.mxu3 }
  0xbf   :  { %v686_v42 = vadd.f32 %v685_v53, %v210_v31 }
  0xc0   :  { %v733_v54 = vpop.f32.mrf.mxu2  ;;  %v784_v56 = vpop.f32.mrf.mxu0 }
  0xc1   :  { %v734_v55 = vadd.f32 %v733_v54, %v705_v52 }
  0xc2   :  { %v707_v57 = vpop.f32.mrf.mxu1 }
  0xc3   :  { %v708_v30 = vadd.f32 %v707_v57, %v679_v25 }
  0xc6   :  { %v755_v58 = vpop.f32.mrf.mxu3 }
  0xc7   :  { %v756_v60 = vadd.f32 %v755_v58, %v727_v32  ;;  %v684_v32 = vadd.f32 %v683_v45, %v205_v27  ;;  %v897_v45 = vpop.permute.xlu2 %896 }
  0xc8   :  { %v736_v59 = vpop.f32.mrf.mxu2  ;;  %v1930_v61 = vpop.f32.mrf.mxu0 }
  0xc9   :  { %v785_v63 = vadd.f32 %v784_v56, %v756_v60  ;;  %v737_v35 = vadd.f32 %v736_v59, %v708_v30  ;;  %v902_v59 = vpop.permute.xlu0 %901 }
  0xca   :  { %v709_v62 = vpop.f32.mrf.mxu1 }
  0xcb   :  { %v710_v54 = vadd.f32 %v709_v62, %v681_v47 }
  0xce   :  { %v757_v0 = vpop.f32.mrf.mxu3 }
  0xd0   :  { %v738_v1 = vpop.f32.mrf.mxu2  ;;  %v789_v2 = vpop.f32.mrf.mxu0 }
  0xd1   :  { %v739_v60 = vadd.f32 %v738_v1, %v710_v54  ;;  %v907_v1 = vpop.permute.xlu1 %906  ;;  %v917_v31 = vpop.permute.xlu0 %916 }
  0xd2   :  { %v712_v3 = vpop.f32.mrf.mxu1 }
  0xd3   :  { %v713_v37 = vadd.f32 %v712_v3, %v684_v32 }
  0xd6   :  { %v760_v4 = vpop.f32.mrf.mxu3 }
  0xd7   :  { %v761_v28 = vadd.f32 %v760_v4, %v732_v48  ;;  %v758_v48 = vadd.f32 %v757_v0, %v1928_v40 }
  0xd8   :  { %v741_v5 = vpop.f32.mrf.mxu2  ;;  %v791_v6 = vpop.f32.mrf.mxu0 }
  0xd9   :  { %v790_v39 = vadd.f32 %v789_v2, %v761_v28  ;;  %v742_v29 = vadd.f32 %v741_v5, %v713_v37 }
  0xda   :  { %v714_v7 = vpop.f32.mrf.mxu1 }
  0xdb   :  { %v715_v51 = vadd.f32 %v714_v7, %v686_v42 }
  0xde   :  { %v762_v8 = vpop.f32.mrf.mxu3 }
  0xdf   :  { %v763_v33 = vadd.f32 %v762_v8, %v734_v55 }
  0xe0   :  { %v743_v9 = vpop.f32.mrf.mxu2  ;;  %v794_v10 = vpop.f32.mrf.mxu0 }
  0xe1   :  { %v792_v50 = vadd.f32 %v791_v6, %v763_v33  ;;  %v744_v58 = vadd.f32 %v743_v9, %v715_v51  ;;  %v787_v6 = vadd.f32 %v1930_v61, %v758_v48 }
  0xe2   :  { %v818_v11 = vpop.f32.mrf.mxu1 }
  0xe3   :  { %v819_v49 = vadd.f32 %v818_v11, %v790_v39 }
  0xe6   :  { %v765_v12 = vpop.f32.mrf.mxu3 }
  0xe7   :  { %v766_v43 = vadd.f32 %v765_v12, %v737_v35 }
  0xe8   :  { %v842_v13 = vpop.f32.mrf.mxu2  ;;  %v1932_v14 = vpop.f32.mrf.mxu0 }
  0xe9   :  { %v795_v53 = vadd.f32 %v794_v10, %v766_v43 }
  0xea   :  { %v820_v15 = vpop.f32.mrf.mxu1 }
  0xeb   :  { %v821_v55 = vadd.f32 %v820_v15, %v792_v50 }
  0xee   :  { %v767_v16 = vpop.f32.mrf.mxu3 }
  0xef   :  { %v768_v40 = vadd.f32 %v767_v16, %v739_v60 }
  0xf0   :  { %v1934_v17 = vpop.f32.mrf.mxu2  ;;  %v799_v18 = vpop.f32.mrf.mxu0 }
  0xf1   :  { %v797_v61 = vadd.f32 %v1932_v14, %v768_v40 }
  0xf2   :  { %v823_v20 = vpop.f32.mrf.mxu1 }
  0xf3   :  { %v824_v3 = vadd.f32 %v823_v20, %v795_v53 }
  0xf6   :  { %v770_v21 = vpop.f32.mrf.mxu3 }
  0xf7   :  { %v771_v56 = vadd.f32 %v770_v21, %v742_v29  ;;  %v912_v21 = vpop.permute.xlu2 %911  ;;  %v922_v29 = vpop.permute.xlu1 %921 }
  0xf8   :  { %v847_v22 = vpop.f32.mrf.mxu2  ;;  %v801_v23 = vpop.f32.mrf.mxu0 }
  0xf9   :  { %v848_v57 = vadd.f32 %v847_v22, %v819_v49  ;;  %v800_v7 = vadd.f32 %v799_v18, %v771_v56 }
  0xfa   :  { %v1936_v24 = vpop.f32.mrf.mxu1 }
  0xfb   :  { %v872_v0 = vmul.f32 0.01, %v848_v57  ;;  %vm864_vm2 = vcmp.gt.f32.partialorder %v848_v57, 0.0  ;;  %v826_v26 = vadd.f32 %v1936_v24, %v797_v61 }
  0xfd   :  { %v880_v20 = vsel %vm864_vm2, %v848_v57, %v872_v0  ;;  %v932_v57 = vpop.permute.xlu0 %931 }
  0xfe   :  { %v772_v34 = vpop.f32.mrf.mxu3 }
  0xff   :  { %v773_v38 = vadd.f32 %v772_v34, %v744_v58 }
 0x100   :  { %v849_v36 = vpop.f32.mrf.mxu2  ;;  %v813_v41 = vpop.f32.mrf.mxu0 }
 0x101   :  { %v814_v44 = vadd.f32 %v813_v41, %v785_v63  ;;  %v850_v63 = vadd.f32 %v849_v36, %v821_v55  ;;  %v802_v19 = vadd.f32 %v801_v23, %v773_v38  ;;  %v936_v23 = vmul.f32 %v907_v1, %v880_v20 }
 0x102   :  { %v828_v46 = vpop.f32.mrf.mxu1 }
 0x103   :  { %v843_v52 = vadd.f32 %v842_v13, %v814_v44  ;;  %v873_v9 = vmul.f32 0.01, %v850_v63  ;;  %v829_v12 = vadd.f32 %v828_v46, %v800_v7  ;;  %vm865_vm3 = vcmp.gt.f32.partialorder %v850_v63, 0.0 }
 0x104   :  { %v946_v44 = vsel %vm942_vm6, %v936_v23, 0.0 }
 0x105   :  { %v870_v4 = vmul.f32 0.01, %v843_v52  ;;  %vm862_vm1 = vcmp.gt.f32.partialorder %v843_v52, 0.0  ;;  %v881_v27 = vsel %vm865_vm3, %v850_v63, %v873_v9 }
 0x106   :  { %v857_v2 = vpop.f32.mrf.mxu3  ;;  %v937_v35 = vmul.f32 %v912_v21, %v881_v27 }
 0x107   :  { %v878_v13 = vsel %vm862_vm1, %v843_v52, %v870_v4  ;;  %v858_v16 = vadd.f32 %v857_v2, %v829_v12 }
 0x108   :  { %v852_v5 = vpop.f32.mrf.mxu2  ;;  %v815_v62 = vpop.f32.mrf.mxu0  ;;  %v934_v28 = vmul.f32 %v897_v45, %v878_v13  ;;  %v948_v48 = vsel %vm942_vm6, %v937_v35, 0.0 }
 0x109   :  { %v853_v8 = vadd.f32 %v852_v5, %v824_v3  ;;  %v816_v11 = vadd.f32 %v815_v62, %v787_v6  ;;  %vm868_vm7 = vcmp.gt.f32.partialorder %v858_v16, 0.0  ;;  %v876_v37 = vmul.f32 0.01, %v858_v16  ;;  %v927_v45 = vpop.permute.xlu2 %926  ;;  %v968_v62 = vpop.permute.xlu1 %967 }
 0x10a   :  { %v830_v10 = vpop.f32.mrf.mxu1  ;;  %v943_v39 = vsel %vm942_vm6, %v934_v28, 0.0  ;;  %v973_v5 = vlaneseq }
 0x10b   :  { %v845_v15 = vadd.f32 %v1934_v17, %v816_v11  ;;  %v874_v22 = vmul.f32 0.01, %v853_v8  ;;  %v831_v25 = vadd.f32 %v830_v10, %v802_v19  ;;  %vm866_vm5 = vcmp.gt.f32.partialorder %v853_v8, 0.0 }
 0x10c   :  { %v884_v49 = vsel %vm868_vm7, %v858_v16, %v876_v37  ;;  %v974_v0 = vand.u32 127, %v973_v5  ;;  %v970_v11 = vperm.slane %v968_v62, 0  ;;  %v1494_v19 = vmov 0.0  }
 0x10d   :  { %vm863_vm4 = vcmp.gt.f32.partialorder %v845_v15, 0.0  ;;  %v871_v18 = vmul.f32 0.01, %v845_v15  ;;  %v882_v36 = vsel %vm866_vm5, %v853_v8, %v874_v22  ;;  %v940_v56 = vmul.f32 %v927_v45, %v884_v49  ;;  %33 = vst.msk [vmem:[#allocation5] sm:$0x1] %vm31_vm14, %v1494_v19 }
 0x10e   :  { %v859_v30 = vpop.f32.mrf.mxu3  ;;  %v938_v46 = vmul.f32 %v917_v31, %v882_v36  ;;  %vm978_vm10 = vcmp.ge.s32.totalorder %v974_v0, 3  ;;  %vm979_vm11 = vcmp.lt.s32.totalorder %v974_v0, 5  ;;  %vm977_vm13 = vcmp.lt.s32.totalorder %v974_v0, 3  ;;  %32 = vst.msk [vmem:[#allocation3] sm:$0x1] %vm31_vm14, %v1494_v19 }
 0x10f   :  { %v879_v32 = vsel %vm863_vm4, %v845_v15, %v871_v18  ;;  %v860_v17 = vadd.f32 %v859_v30, %v831_v25  ;;  %v954_v63 = vsel %vm942_vm6, %v940_v56, 0.0  ;;  %vm980_vm12 = vmand %vm978_vm10, %vm979_vm11 }
 0x110   :  { %v854_v33 = vpop.f32.mrf.mxu2  ;;  %v935_v34 = vmul.f32 %v902_v59, %v879_v32  ;;  %v950_v55 = vsel %vm942_vm6, %v938_v46, 0.0 }
 0x111   :  { %v855_v14 = vadd.f32 %v854_v33, %v826_v26  ;;  %v877_v43 = vmul.f32 0.01, %v860_v17  ;;  %vm869_vm9 = vcmp.gt.f32.partialorder %v860_v17, 0.0 }
 0x112   :  { %v944_v24 = vsel %vm942_vm6, %v935_v34, 0.0 }
 0x113   :  { %vm867_vm8 = vcmp.gt.f32.partialorder %v855_v14, 0.0  ;;  %v875_v41 = vmul.f32 0.01, %v855_v14  ;;  %v945_v42 = vadd.f32 %v944_v24, %v943_v39  ;;  %v885_v54 = vsel %vm869_vm9, %v860_v17, %v877_v43 }
 0x114   :  { %v941_v53 = vmul.f32 %v932_v57, %v885_v54  ;;  %v989_v20 = vld [vmem:[#allocation5] sm:$0x1] }
 0x115   :  { %v883_v47 = vsel %vm867_vm8, %v855_v14, %v875_v41  ;;  %v947_v50 = vadd.f32 %v946_v44, %v945_v42  ;;  %v981_v61 = vld [vmem:[#allocation3] sm:$0x1] }
 0x116   :  { %v939_v51 = vmul.f32 %v922_v29, %v883_v47  ;;  %v956_v3 = vsel %vm942_vm6, %v941_v53, 0.0 }
 0x117   :  { %v949_v52 = vadd.f32 %v948_v48, %v947_v50 }
 0x118   :  { %v952_v59 = vsel %vm942_vm6, %v939_v51, 0.0 }
 0x119   :  { %v951_v58 = vadd.f32 %v950_v55, %v949_v52 }
 0x11b   :  { %v953_v60 = vadd.f32 %v952_v59, %v951_v58 }
 0x11d   :  { %v955_v2 = vadd.f32 %v954_v63, %v953_v60 }
 0x11f   :  { %v957_v38 = vadd.f32 %v956_v3, %v955_v2 }
 0x121   :  { %v958_v4 = vrot.slane %v957_v38, 4 }
 0x123   :  { %v959_v6 = vadd.f32 %v958_v4, %v957_v38 }
 0x125   :  { %v960_v40 = vrot.slane %v959_v6, 2 }
 0x127   :  { %v961_v7 = vadd.f32 %v960_v40, %v959_v6 }
 0x129   :  { %v962_v8 = vrot.slane %v961_v7, 1 }
 0x12b   :  { %v963_v9 = vadd.f32 %v962_v8, %v961_v7 }
 0x12d   :  { %v971_v12 = vadd.f32 %v970_v11, %v963_v9 }
 0x12f   :  { %v990_v10 = vsel %vm980_vm12, %v971_v12, 0.0  ;;  %v982_v1 = vsel %vm977_vm13, %v971_v12, 0.0 }
 0x130   :  { %v991_v13 = vsel %vm942_vm6, %v990_v10, 0.0  ;;  %v983_v15 = vsel %vm942_vm6, %v982_v1, 0.0 }
 0x131   :  { %992 = vadd.xlane.f32.xlu0 %v991_v13  ;;  %984 = vadd.xlane.f32.xlu2 %v983_v15 }
 0x1a4   :  { %v993_v16 = vpop.xlane.xlu0 %992  ;;  %v985_v21 = vpop.xlane.xlu2 %984 }
 0x1a5   :  { %v994_v22 = vadd.f32 %v993_v16, %v989_v20  ;;  %v986_v18 = vadd.f32 %v985_v21, %v981_v61 }
 0x1a7   :  { %995 = vst.msk [vmem:[#allocation5] sm:$0x1] %vm31_vm14, %v994_v22 }
 0x1a8   :  { %988 = vst.msk [vmem:[#allocation3] sm:$0x1] %vm31_vm14, %v986_v18  ;;  %1017 = dma.vmem_to_hbm [thread:$0]  %s1013_s7, 16, %s1015_s10, [#allocation6]  }
 0x1a9   :  { %1006 = dma.vmem_to_hbm [thread:$0]  %s1002_s11, 16, %s1004_s13, [#allocation4]  }
 0x1aa   :  { %1489 = dma.done.wait [#allocation4], 16  }
 0x1ab   :  { %1490 = vsyncadd [#allocation4], 4294967280 }
 0x1ac   :  { %1491 = dma.done.wait [#allocation6], 16  }
 0x1ad   :  { %1492 = vsyncadd [#allocation6], 4294967280 }
 0x1ae   :  { %1026 = vsyncpa [#allocation4], 1 }
 0x1af   :  { %1027 = vsyncpa [#allocation6], 1 }

</bundles_post_ra>
